<compile_context>
chip_gen: v7x
topology: tpu7x:2x2x1
jax: 0.10.0
libtpu: 0.0.40
codegen_flags: <defaults>
</compile_context>

<pallas_src>
import numpy as np
import jax
import jax.numpy as jnp
from jax.experimental import pallas as pl
from jax.experimental.pallas import tpu as pltpu


def resnet_block_kernel(x_ref, w1_ref, s1_ref, t1_ref, w2_ref, s2_ref, t2_ref,
                        o_ref, hpad_ref):
    Hp2, Wp2, Cp = x_ref.shape[1], x_ref.shape[2], x_ref.shape[3]
    H, W = Hp2 - 2, Wp2 - 2

    def conv3x3(y_pad, w_ref):
        # y_pad: (H+2, W+2, Cp) bf16, w_ref: (9*Cp, Cp) bf16 -> (H*W, Cp) f32
        taps = []
        for dy in range(3):
            for dx in range(3):
                taps.append(y_pad[dy:dy + H, dx:dx + W, :].reshape(H * W, Cp))
        lhs = jnp.concatenate(taps, axis=-1)                    # (H*W, 9*Cp) bf16
        return jnp.dot(lhs, w_ref[...],
                       preferred_element_type=jnp.float32)      # single MXU matmul

    x_pad = x_ref[0]                                            # (H+2, W+2, Cp) bf16

    # --- conv block, branch 1: conv -> folded BN -> LeakyReLU(0.2) ---
    h = conv3x3(x_pad, w1_ref)
    h = h * s1_ref[...] + t1_ref[...]                           # BN (eval) + folded bias
    h = jnp.where(h >= 0.0, h, 0.2 * h)                         # LeakyReLU(0.2)
    # TODO(synk): nn.Dropout(0.2) is identity in eval mode; training-mode random
    # masking is not implemented here.
    h_b = h.reshape(H, W, Cp).astype(jnp.bfloat16)

    # --- reflect-pad h into the VMEM scratch (interior + halo), no concatenates ---
    hpad_ref[1:H + 1, 1:W + 1, :] = h_b
    hpad_ref[0:1, 1:W + 1, :] = h_b[1:2]                        # top row    = orig row 1
    hpad_ref[H + 1:H + 2, 1:W + 1, :] = h_b[H - 2:H - 1]        # bottom row = orig row H-2
    hpad_ref[:, 0:1, :] = hpad_ref[:, 2:3, :]                   # left col  (fixes corners)
    hpad_ref[:, W + 1:W + 2, :] = hpad_ref[:, W - 1:W, :]       # right col (fixes corners)

    # --- conv block, branch 2: conv -> folded BN, fused residual add ---
    h2 = conv3x3(hpad_ref[...], w2_ref)
    h2 = h2 * s2_ref[...] + t2_ref[...]
    resid = x_pad[1:H + 1, 1:W + 1, :].astype(jnp.float32).reshape(H * W, Cp)
    o_ref[0] = (resid + h2).reshape(H, W, Cp)


def resnet_block_forward(x_nchw, params):
    B, C, H, W = x_nchw.shape
    Cp = ((C + 127) // 128) * 128                # lane-dense channel dim

    # NCHW -> NHWC, zero-pad channels, reflect-pad spatial, cast to bf16.
    x = jnp.transpose(x_nchw, (0, 2, 3, 1))
    x = jnp.pad(x, ((0, 0), (0, 0), (0, 0), (0, Cp - C)))
    x = jnp.pad(x, ((0, 0), (1, 1), (1, 1), (0, 0)), mode="reflect")
    x = x.astype(jnp.bfloat16)                   # (B, H+2, W+2, Cp)

    def prep_w(w):                               # HWIO (3,3,C,C) -> (9*Cp, Cp) bf16
        wp = jnp.zeros((3, 3, Cp, Cp), jnp.float32).at[:, :, :C, :C].set(w)
        return wp.reshape(9 * Cp, Cp).astype(jnp.bfloat16)

    def prep_vec(v):                             # (1,C) -> (1,Cp) f32, zero-padded
        return jnp.pad(v.astype(jnp.float32), ((0, 0), (0, Cp - C)))

    w1 = prep_w(params["w1"])
    w2 = prep_w(params["w2"])
    s1 = prep_vec(params["s1"])
    s2 = prep_vec(params["s2"])
    # fold conv bias into BN shift:  s*(conv+b)+t = s*conv + (t + s*b)
    t1 = prep_vec(params["t1"] + params["s1"] * params["b1"])
    t2 = prep_vec(params["t2"] + params["s2"] * params["b2"])

    full_w = lambda b: (0, 0)

    out = pl.pallas_call(
        resnet_block_kernel,
        out_shape=jax.ShapeDtypeStruct((B, H, W, Cp), jnp.float32),
        grid_spec=pltpu.PrefetchScalarGridSpec(
            num_scalar_prefetch=0,
            grid=(B,),
            in_specs=[
                pl.BlockSpec((1, H + 2, W + 2, Cp), lambda b: (b, 0, 0, 0)),  # x (padded)
                pl.BlockSpec((9 * Cp, Cp), full_w),                           # w1
                pl.BlockSpec((1, Cp), full_w),                                # bn1 scale
                pl.BlockSpec((1, Cp), full_w),                                # bn1 shift (+bias)
                pl.BlockSpec((9 * Cp, Cp), full_w),                           # w2
                pl.BlockSpec((1, Cp), full_w),                                # bn2 scale
                pl.BlockSpec((1, Cp), full_w),                                # bn2 shift (+bias)
            ],
            out_specs=pl.BlockSpec((1, H, W, Cp), lambda b: (b, 0, 0, 0)),
            scratch_shapes=[pltpu.VMEM((H + 2, W + 2, Cp), jnp.bfloat16)],
        ),
        compiler_params=pltpu.CompilerParams(
            dimension_semantics=("parallel",)),
    )(x, w1, s1, t1, w2, s2, t2)

    out = out[..., :C]                           # drop channel padding
    return jnp.transpose(out, (0, 3, 1, 2))      # NHWC -> NCHW


def init_params(key, dim):
    """Deterministic synthetic parameters (Conv2d(dim,dim,3,bias=True) x2 + BN x2)."""
    ks = jax.random.split(key, 12)
    eps = 1e-5
    std = 1.0 / np.sqrt(dim * 9)                 # ~kaiming scale for 3x3 conv

    def bn_fold(kg, kb, km, kv):
        gamma = 1.0 + 0.1 * jax.random.normal(kg, (dim,), jnp.float32)
        beta = 0.1 * jax.random.normal(kb, (dim,), jnp.float32)
        mean = 0.1 * jax.random.normal(km, (dim,), jnp.float32)
        var = 1.0 + 0.1 * jnp.abs(jax.random.normal(kv, (dim,), jnp.float32))
        scale = gamma / jnp.sqrt(var + eps)
        shift = beta - mean * scale
        return scale.reshape(1, dim), shift.reshape(1, dim)

    w1 = std * jax.random.normal(ks[0], (3, 3, dim, dim), jnp.float32)  # HWIO
    b1 = std * jax.random.normal(ks[1], (1, dim), jnp.float32)
    s1, t1 = bn_fold(ks[2], ks[3], ks[4], ks[5])
    w2 = std * jax.random.normal(ks[6], (3, 3, dim, dim), jnp.float32)
    b2 = std * jax.random.normal(ks[7], (1, dim), jnp.float32)
    s2, t2 = bn_fold(ks[8], ks[9], ks[10], ks[11])
    return dict(w1=w1, b1=b1, s1=s1, t1=t1, w2=w2, b2=b2, s2=s2, t2=t2)


def reference_forward(x_nchw, p):
    """Pure-JAX f32 reference (same math, XLA convs) for a sanity check."""
    x = jnp.transpose(x_nchw, (0, 2, 3, 1))

    def conv(y, w, b):
        yp = jnp.pad(y, ((0, 0), (1, 1), (1, 1), (0, 0)), mode="reflect")
        out = jax.lax.conv_general_dilated(
            yp, w, window_strides=(1, 1), padding="VALID",
            dimension_numbers=("NHWC", "HWIO", "NHWC"),
            precision=jax.lax.Precision.HIGHEST)
        return out + b.reshape(1, 1, 1, -1)

    h = conv(x, p["w1"], p["b1"])
    h = h * p["s1"].reshape(1, 1, 1, -1) + p["t1"].reshape(1, 1, 1, -1)
    h = jnp.where(h >= 0.0, h, 0.2 * h)
    h = conv(h, p["w2"], p["b2"])
    h = h * p["s2"].reshape(1, 1, 1, -1) + p["t2"].reshape(1, 1, 1, -1)
    return jnp.transpose(x + h, (0, 3, 1, 2))


if __name__ == "__main__":
    B, dim, H, W = 2, 8, 16, 16                  # ResnetBlock(dim=8, 'reflect', BN, dropout, bias)
    key = jax.random.PRNGKey(0)
    kx, kp = jax.random.split(key)
    x = jax.random.normal(kx, (B, dim, H, W), jnp.float32)   # NCHW, like PyTorch
    params = init_params(kp, dim)

    out = resnet_block_forward(x, params)
    out = jax.block_until_ready(out)

    ref = reference_forward(x, params)
    # Relaxed tolerance: kernel runs the two 3x3 convs as bf16 MXU matmuls with f32
    # accumulation; reference is full f32.
    np.testing.assert_allclose(np.asarray(out), np.asarray(ref),
                               rtol=3e-2, atol=3e-2)

    print("KERNEL_OK")
</pallas_src>

<mosaic_0001>
module attributes {stable_mosaic.version = 11 : i64} {
  func.func @resnet_block_kernel(%arg0: i32, %arg1: memref<1x18x18x128xbf16, #tpu.memory_space<vmem>>, %arg2: memref<1152x128xbf16, #tpu.memory_space<vmem>>, %arg3: memref<1x128xf32, #tpu.memory_space<vmem>>, %arg4: memref<1x128xf32, #tpu.memory_space<vmem>>, %arg5: memref<1152x128xbf16, #tpu.memory_space<vmem>>, %arg6: memref<1x128xf32, #tpu.memory_space<vmem>>, %arg7: memref<1x128xf32, #tpu.memory_space<vmem>>, %arg8: memref<1x16x16x128xf32, #tpu.memory_space<vmem>>, %arg9: memref<18x18x128xbf16, #tpu.memory_space<vmem>>) attributes {dimension_semantics = [#tpu.dimension_semantics<parallel>], iteration_bounds = array<i64: 2>, scalar_prefetch = 0 : i64, scratch_operands = 1 : i64, tpu.core_type = #tpu.core_type<tc>, window_params = [{transform_indices = @transform_0, window_bounds = array<i64: 1, 18, 18, 128>}, {pipeline_mode = #tpu.pipeline_mode<synchronous>, transform_indices = @transform_1, window_bounds = array<i64: 1152, 128>}, {pipeline_mode = #tpu.pipeline_mode<synchronous>, transform_indices = @transform_2, window_bounds = array<i64: 1, 128>}, {pipeline_mode = #tpu.pipeline_mode<synchronous>, transform_indices = @transform_3, window_bounds = array<i64: 1, 128>}, {pipeline_mode = #tpu.pipeline_mode<synchronous>, transform_indices = @transform_4, window_bounds = array<i64: 1152, 128>}, {pipeline_mode = #tpu.pipeline_mode<synchronous>, transform_indices = @transform_5, window_bounds = array<i64: 1, 128>}, {pipeline_mode = #tpu.pipeline_mode<synchronous>, transform_indices = @transform_6, window_bounds = array<i64: 1, 128>}, {transform_indices = @transform_7, window_bounds = array<i64: 1, 16, 16, 128>}]} {
    %c0 = arith.constant 0 : index
    %c0_0 = arith.constant 0 : index
    %c0_1 = arith.constant 0 : index
    %c0_2 = arith.constant 0 : index
    %0 = vector.load %arg1[%c0, %c0_0, %c0_1, %c0_2] : memref<1x18x18x128xbf16, #tpu.memory_space<vmem>>, vector<1x18x18x128xbf16>
    %1 = vector.shape_cast %0 : vector<1x18x18x128xbf16> to vector<18x18x128xbf16>
    %2 = vector.extract_strided_slice %1 {offsets = [0, 0, 0], sizes = [16, 16, 128], strides = [1, 1, 1]} : vector<18x18x128xbf16> to vector<16x16x128xbf16>
    %3 = vector.shape_cast %2 : vector<16x16x128xbf16> to vector<256x128xbf16>
    %4 = vector.extract_strided_slice %1 {offsets = [0, 1, 0], sizes = [16, 16, 128], strides = [1, 1, 1]} : vector<18x18x128xbf16> to vector<16x16x128xbf16>
    %5 = vector.shape_cast %4 : vector<16x16x128xbf16> to vector<256x128xbf16>
    %6 = vector.extract_strided_slice %1 {offsets = [0, 2, 0], sizes = [16, 16, 128], strides = [1, 1, 1]} : vector<18x18x128xbf16> to vector<16x16x128xbf16>
    %7 = vector.shape_cast %6 : vector<16x16x128xbf16> to vector<256x128xbf16>
    %8 = vector.extract_strided_slice %1 {offsets = [1, 0, 0], sizes = [16, 16, 128], strides = [1, 1, 1]} : vector<18x18x128xbf16> to vector<16x16x128xbf16>
    %9 = vector.shape_cast %8 : vector<16x16x128xbf16> to vector<256x128xbf16>
    %10 = vector.extract_strided_slice %1 {offsets = [1, 1, 0], sizes = [16, 16, 128], strides = [1, 1, 1]} : vector<18x18x128xbf16> to vector<16x16x128xbf16>
    %11 = vector.shape_cast %10 : vector<16x16x128xbf16> to vector<256x128xbf16>
    %12 = vector.extract_strided_slice %1 {offsets = [1, 2, 0], sizes = [16, 16, 128], strides = [1, 1, 1]} : vector<18x18x128xbf16> to vector<16x16x128xbf16>
    %13 = vector.shape_cast %12 : vector<16x16x128xbf16> to vector<256x128xbf16>
    %14 = vector.extract_strided_slice %1 {offsets = [2, 0, 0], sizes = [16, 16, 128], strides = [1, 1, 1]} : vector<18x18x128xbf16> to vector<16x16x128xbf16>
    %15 = vector.shape_cast %14 : vector<16x16x128xbf16> to vector<256x128xbf16>
    %16 = vector.extract_strided_slice %1 {offsets = [2, 1, 0], sizes = [16, 16, 128], strides = [1, 1, 1]} : vector<18x18x128xbf16> to vector<16x16x128xbf16>
    %17 = vector.shape_cast %16 : vector<16x16x128xbf16> to vector<256x128xbf16>
    %18 = vector.extract_strided_slice %1 {offsets = [2, 2, 0], sizes = [16, 16, 128], strides = [1, 1, 1]} : vector<18x18x128xbf16> to vector<16x16x128xbf16>
    %19 = vector.shape_cast %18 : vector<16x16x128xbf16> to vector<256x128xbf16>
    %20 = tpu.concatenate %3, %5, %7, %9, %11, %13, %15, %17, %19 in 1 : vector<256x128xbf16>, vector<256x128xbf16>, vector<256x128xbf16>, vector<256x128xbf16>, vector<256x128xbf16>, vector<256x128xbf16>, vector<256x128xbf16>, vector<256x128xbf16>, vector<256x128xbf16> -> vector<256x1152xbf16>
    %c0_3 = arith.constant 0 : index
    %c0_4 = arith.constant 0 : index
    %21 = vector.load %arg2[%c0_3, %c0_4] : memref<1152x128xbf16, #tpu.memory_space<vmem>>, vector<1152x128xbf16>
    %cst = arith.constant dense<0.000000e+00> : vector<256x128xf32>
    %22 = tpu.matmul %20, %21, %cst {dimension_numbers = #tpu.dot_dimension_numbers<[1], [0], [0], [1], [0, 0, 1, 1], [], []>} : vector<256x1152xbf16>, vector<1152x128xbf16>, vector<256x128xf32> -> vector<256x128xf32>
    %c0_5 = arith.constant 0 : index
    %c0_6 = arith.constant 0 : index
    %23 = vector.load %arg3[%c0_5, %c0_6] : memref<1x128xf32, #tpu.memory_space<vmem>>, vector<1x128xf32>
    %24 = vector.broadcast %23 : vector<1x128xf32> to vector<256x128xf32>
    %25 = arith.mulf %22, %24 : vector<256x128xf32>
    %c0_7 = arith.constant 0 : index
    %c0_8 = arith.constant 0 : index
    %26 = vector.load %arg4[%c0_7, %c0_8] : memref<1x128xf32, #tpu.memory_space<vmem>>, vector<1x128xf32>
    %27 = vector.broadcast %26 : vector<1x128xf32> to vector<256x128xf32>
    %28 = arith.addf %25, %27 : vector<256x128xf32>
    %cst_9 = arith.constant 0.000000e+00 : f32
    %29 = vector.broadcast %cst_9 : f32 to vector<256x128xf32>
    %30 = arith.cmpf oge, %28, %29 : vector<256x128xf32>
    %cst_10 = arith.constant 2.000000e-01 : f32
    %31 = vector.broadcast %cst_10 : f32 to vector<256x128xf32>
    %32 = arith.mulf %31, %28 : vector<256x128xf32>
    %33 = arith.select %30, %28, %32 : vector<256x128xi1>, vector<256x128xf32>
    %34 = vector.shape_cast %33 : vector<256x128xf32> to vector<16x16x128xf32>
    %35 = arith.truncf %34 : vector<16x16x128xf32> to vector<16x16x128xbf16>
    %c1 = arith.constant 1 : index
    %c1_11 = arith.constant 1 : index
    %c0_12 = arith.constant 0 : index
    %36 = vector.load %arg9[%c1, %c1_11, %c0_12] : memref<18x18x128xbf16, #tpu.memory_space<vmem>>, vector<16x16x128xbf16>
    tpu.vector_store %arg9[%c1, %c1_11, %c0_12], %35 {strides = array<i32>} : memref<18x18x128xbf16, #tpu.memory_space<vmem>>, vector<16x16x128xbf16>,
    %37 = vector.extract_strided_slice %35 {offsets = [1, 0, 0], sizes = [1, 16, 128], strides = [1, 1, 1]} : vector<16x16x128xbf16> to vector<1x16x128xbf16>
    %c0_13 = arith.constant 0 : index
    %c1_14 = arith.constant 1 : index
    %c0_15 = arith.constant 0 : index
    %38 = vector.load %arg9[%c0_13, %c1_14, %c0_15] : memref<18x18x128xbf16, #tpu.memory_space<vmem>>, vector<1x16x128xbf16>
    tpu.vector_store %arg9[%c0_13, %c1_14, %c0_15], %37 {strides = array<i32>} : memref<18x18x128xbf16, #tpu.memory_space<vmem>>, vector<1x16x128xbf16>,
    %39 = vector.extract_strided_slice %35 {offsets = [14, 0, 0], sizes = [1, 16, 128], strides = [1, 1, 1]} : vector<16x16x128xbf16> to vector<1x16x128xbf16>
    %c17 = arith.constant 17 : index
    %c1_16 = arith.constant 1 : index
    %c0_17 = arith.constant 0 : index
    %40 = vector.load %arg9[%c17, %c1_16, %c0_17] : memref<18x18x128xbf16, #tpu.memory_space<vmem>>, vector<1x16x128xbf16>
    tpu.vector_store %arg9[%c17, %c1_16, %c0_17], %39 {strides = array<i32>} : memref<18x18x128xbf16, #tpu.memory_space<vmem>>, vector<1x16x128xbf16>,
    %c0_18 = arith.constant 0 : index
    %c2 = arith.constant 2 : index
    %c0_19 = arith.constant 0 : index
    %41 = vector.load %arg9[%c0_18, %c2, %c0_19] : memref<18x18x128xbf16, #tpu.memory_space<vmem>>, vector<18x1x128xbf16>
    %c0_20 = arith.constant 0 : index
    %c0_21 = arith.constant 0 : index
    %c0_22 = arith.constant 0 : index
    %42 = vector.load %arg9[%c0_20, %c0_21, %c0_22] : memref<18x18x128xbf16, #tpu.memory_space<vmem>>, vector<18x1x128xbf16>
    tpu.vector_store %arg9[%c0_20, %c0_21, %c0_22], %41 {strides = array<i32>} : memref<18x18x128xbf16, #tpu.memory_space<vmem>>, vector<18x1x128xbf16>,
    %c0_23 = arith.constant 0 : index
    %c15 = arith.constant 15 : index
    %c0_24 = arith.constant 0 : index
    %43 = vector.load %arg9[%c0_23, %c15, %c0_24] : memref<18x18x128xbf16, #tpu.memory_space<vmem>>, vector<18x1x128xbf16>
    %c0_25 = arith.constant 0 : index
    %c17_26 = arith.constant 17 : index
    %c0_27 = arith.constant 0 : index
    %44 = vector.load %arg9[%c0_25, %c17_26, %c0_27] : memref<18x18x128xbf16, #tpu.memory_space<vmem>>, vector<18x1x128xbf16>
    tpu.vector_store %arg9[%c0_25, %c17_26, %c0_27], %43 {strides = array<i32>} : memref<18x18x128xbf16, #tpu.memory_space<vmem>>, vector<18x1x128xbf16>,
    %c0_28 = arith.constant 0 : index
    %c0_29 = arith.constant 0 : index
    %c0_30 = arith.constant 0 : index
    %45 = vector.load %arg9[%c0_28, %c0_29, %c0_30] : memref<18x18x128xbf16, #tpu.memory_space<vmem>>, vector<18x18x128xbf16>
    %46 = vector.extract_strided_slice %45 {offsets = [0, 0, 0], sizes = [16, 16, 128], strides = [1, 1, 1]} : vector<18x18x128xbf16> to vector<16x16x128xbf16>
    %47 = vector.shape_cast %46 : vector<16x16x128xbf16> to vector<256x128xbf16>
    %48 = vector.extract_strided_slice %45 {offsets = [0, 1, 0], sizes = [16, 16, 128], strides = [1, 1, 1]} : vector<18x18x128xbf16> to vector<16x16x128xbf16>
    %49 = vector.shape_cast %48 : vector<16x16x128xbf16> to vector<256x128xbf16>
    %50 = vector.extract_strided_slice %45 {offsets = [0, 2, 0], sizes = [16, 16, 128], strides = [1, 1, 1]} : vector<18x18x128xbf16> to vector<16x16x128xbf16>
    %51 = vector.shape_cast %50 : vector<16x16x128xbf16> to vector<256x128xbf16>
    %52 = vector.extract_strided_slice %45 {offsets = [1, 0, 0], sizes = [16, 16, 128], strides = [1, 1, 1]} : vector<18x18x128xbf16> to vector<16x16x128xbf16>
    %53 = vector.shape_cast %52 : vector<16x16x128xbf16> to vector<256x128xbf16>
    %54 = vector.extract_strided_slice %45 {offsets = [1, 1, 0], sizes = [16, 16, 128], strides = [1, 1, 1]} : vector<18x18x128xbf16> to vector<16x16x128xbf16>
    %55 = vector.shape_cast %54 : vector<16x16x128xbf16> to vector<256x128xbf16>
    %56 = vector.extract_strided_slice %45 {offsets = [1, 2, 0], sizes = [16, 16, 128], strides = [1, 1, 1]} : vector<18x18x128xbf16> to vector<16x16x128xbf16>
    %57 = vector.shape_cast %56 : vector<16x16x128xbf16> to vector<256x128xbf16>
    %58 = vector.extract_strided_slice %45 {offsets = [2, 0, 0], sizes = [16, 16, 128], strides = [1, 1, 1]} : vector<18x18x128xbf16> to vector<16x16x128xbf16>
    %59 = vector.shape_cast %58 : vector<16x16x128xbf16> to vector<256x128xbf16>
    %60 = vector.extract_strided_slice %45 {offsets = [2, 1, 0], sizes = [16, 16, 128], strides = [1, 1, 1]} : vector<18x18x128xbf16> to vector<16x16x128xbf16>
    %61 = vector.shape_cast %60 : vector<16x16x128xbf16> to vector<256x128xbf16>
    %62 = vector.extract_strided_slice %45 {offsets = [2, 2, 0], sizes = [16, 16, 128], strides = [1, 1, 1]} : vector<18x18x128xbf16> to vector<16x16x128xbf16>
    %63 = vector.shape_cast %62 : vector<16x16x128xbf16> to vector<256x128xbf16>
    %64 = tpu.concatenate %47, %49, %51, %53, %55, %57, %59, %61, %63 in 1 : vector<256x128xbf16>, vector<256x128xbf16>, vector<256x128xbf16>, vector<256x128xbf16>, vector<256x128xbf16>, vector<256x128xbf16>, vector<256x128xbf16>, vector<256x128xbf16>, vector<256x128xbf16> -> vector<256x1152xbf16>
    %c0_31 = arith.constant 0 : index
    %c0_32 = arith.constant 0 : index
    %65 = vector.load %arg5[%c0_31, %c0_32] : memref<1152x128xbf16, #tpu.memory_space<vmem>>, vector<1152x128xbf16>
    %cst_33 = arith.constant dense<0.000000e+00> : vector<256x128xf32>
    %66 = tpu.matmul %64, %65, %cst_33 {dimension_numbers = #tpu.dot_dimension_numbers<[1], [0], [0], [1], [0, 0, 1, 1], [], []>} : vector<256x1152xbf16>, vector<1152x128xbf16>, vector<256x128xf32> -> vector<256x128xf32>
    %c0_34 = arith.constant 0 : index
    %c0_35 = arith.constant 0 : index
    %67 = vector.load %arg6[%c0_34, %c0_35] : memref<1x128xf32, #tpu.memory_space<vmem>>, vector<1x128xf32>
    %68 = vector.broadcast %67 : vector<1x128xf32> to vector<256x128xf32>
    %69 = arith.mulf %66, %68 : vector<256x128xf32>
    %c0_36 = arith.constant 0 : index
    %c0_37 = arith.constant 0 : index
    %70 = vector.load %arg7[%c0_36, %c0_37] : memref<1x128xf32, #tpu.memory_space<vmem>>, vector<1x128xf32>
    %71 = vector.broadcast %70 : vector<1x128xf32> to vector<256x128xf32>
    %72 = arith.addf %69, %71 : vector<256x128xf32>
    %73 = vector.extract_strided_slice %1 {offsets = [1, 1, 0], sizes = [16, 16, 128], strides = [1, 1, 1]} : vector<18x18x128xbf16> to vector<16x16x128xbf16>
    %74 = arith.extf %73 : vector<16x16x128xbf16> to vector<16x16x128xf32>
    %75 = vector.shape_cast %74 : vector<16x16x128xf32> to vector<256x128xf32>
    %76 = arith.addf %75, %72 : vector<256x128xf32>
    %77 = vector.shape_cast %76 : vector<256x128xf32> to vector<16x16x128xf32>
    %c0_38 = arith.constant 0 : index
    %c0_39 = arith.constant 0 : index
    %c0_40 = arith.constant 0 : index
    %c0_41 = arith.constant 0 : index
    %78 = vector.load %arg8[%c0_38, %c0_39, %c0_40, %c0_41] : memref<1x16x16x128xf32, #tpu.memory_space<vmem>>, vector<1x16x16x128xf32>
    %79 = vector.shape_cast %78 : vector<1x16x16x128xf32> to vector<16x16x128xf32>
    %80 = vector.shape_cast %77 : vector<16x16x128xf32> to vector<1x16x16x128xf32>
    tpu.vector_store %arg8[%c0_38, %c0_39, %c0_40, %c0_41], %80 {strides = array<i32>} : memref<1x16x16x128xf32, #tpu.memory_space<vmem>>, vector<1x16x16x128xf32>,
    return
  }
  func.func @transform_0(%arg0: i32) -> (i32, i32, i32, i32) {
    %c0_i32 = arith.constant 0 : i32
    %c0_i32_0 = arith.constant 0 : i32
    %c0_i32_1 = arith.constant 0 : i32
    %c0_i32_2 = arith.constant 0 : i32
    return %arg0, %c0_i32, %c0_i32_0, %c0_i32_1 : i32, i32, i32, i32
  }
  func.func @transform_1(%arg0: i32) -> (i32, i32) {
    %c0_i32 = arith.constant 0 : i32
    %c0_i32_0 = arith.constant 0 : i32
    %c0_i32_1 = arith.constant 0 : i32
    return %c0_i32, %c0_i32_0 : i32, i32
  }
  func.func @transform_2(%arg0: i32) -> (i32, i32) {
    %c0_i32 = arith.constant 0 : i32
    %c0_i32_0 = arith.constant 0 : i32
    %c0_i32_1 = arith.constant 0 : i32
    return %c0_i32, %c0_i32_0 : i32, i32
  }
  func.func @transform_3(%arg0: i32) -> (i32, i32) {
    %c0_i32 = arith.constant 0 : i32
    %c0_i32_0 = arith.constant 0 : i32
    %c0_i32_1 = arith.constant 0 : i32
    return %c0_i32, %c0_i32_0 : i32, i32
  }
  func.func @transform_4(%arg0: i32) -> (i32, i32) {
    %c0_i32 = arith.constant 0 : i32
    %c0_i32_0 = arith.constant 0 : i32
    %c0_i32_1 = arith.constant 0 : i32
    return %c0_i32, %c0_i32_0 : i32, i32
  }
  func.func @transform_5(%arg0: i32) -> (i32, i32) {
    %c0_i32 = arith.constant 0 : i32
    %c0_i32_0 = arith.constant 0 : i32
    %c0_i32_1 = arith.constant 0 : i32
    return %c0_i32, %c0_i32_0 : i32, i32
  }
  func.func @transform_6(%arg0: i32) -> (i32, i32) {
    %c0_i32 = arith.constant 0 : i32
    %c0_i32_0 = arith.constant 0 : i32
    %c0_i32_1 = arith.constant 0 : i32
    return %c0_i32, %c0_i32_0 : i32, i32
  }
  func.func @transform_7(%arg0: i32) -> (i32, i32, i32, i32) {
    %c0_i32 = arith.constant 0 : i32
    %c0_i32_0 = arith.constant 0 : i32
    %c0_i32_1 = arith.constant 0 : i32
    %c0_i32_2 = arith.constant 0 : i32
    return %arg0, %c0_i32, %c0_i32_0, %c0_i32_1 : i32, i32, i32, i32
  }
}

</mosaic_0001>

<bundles_post_ra>
// kernel: tpu_custom_call.1
= control target key start
LH: loop header
LB: loop body
LE: loop exit
PB: predicated region body
PF: predicated region fallthrough
CT: control target
= control target key end

     0   :  { %12 = vsyncpa [#allocation4], 0  ;;  %s10916_s0 = inlined_call_operand.vmem [shape: bf16[2,18,18,128], index: 0, kind: input, shape index: {}]   ;;  %s10917_s1 = inlined_call_operand.vmem [shape: bf16[1152,128], index: 1, kind: input, shape index: {}]   ;;  %s10918_s2 = inlined_call_operand.vmem [shape: f32[1,128], index: 2, kind: input, shape index: {}]   ;;  %s10919_s3 = inlined_call_operand.vmem [shape: f32[1,128], index: 3, kind: input, shape index: {}]   ;;  %s10920_s4 = inlined_call_operand.hbm [shape: bf16[1152,128], index: 4, kind: input, shape index: {}]   ;;  %s10921_s5 = inlined_call_operand.vmem [shape: f32[1,128], index: 5, kind: input, shape index: {}]   ;;  %s10922_s6 = inlined_call_operand.vmem [shape: f32[1,128], index: 6, kind: input, shape index: {}]   ;;  %s10923_s7 = inlined_call_operand.hbm [shape: f32[2,16,16,128], index: 7, kind: output, shape index: {}]  }
   0x1   :  { %13 = vsyncpa [#allocation5], 0 }
   0x2   :  { %15 = vsyncpa [#allocation5 + $0x1], 0  ;;  %s8152_s24 = smov 0   ;;  %s8154_s25 = smov 0  }
   0x3   :  { %s8156_s26 = smov 0   ;;  %s8158_s27 = smov 0  }
   0x4 LB: > { %s8173_s28 = sadd.s32 4294967295, %s8104_s27   ;;  %s6279_s29 = sadd.s32 4294967294, %s8104_s27   ;;  %s8104_s27 = sphi %s8158_s27, %s11040_s27   ;;  %s8100_s26 = sphi %s8156_s26, %s11039_s26   ;;  %s8096_s25 = sphi %s8154_s25, %s11038_s25   ;;  %s8092_s24 = sphi %s8152_s24, %s11037_s24  }
   0x5   : > { %s8177_s30 = sadd.s32 1, %s8104_s27   ;;  %s180_s8 = sadd.s32 1, %s8100_s26 }
   0x6   : > { %s177_s9 = ssub.s32 %s8104_s27, %s8177_s30  ;;  %p190_p0 = scmp.ne.s32.totalorder %s8100_s26, %s8096_s25 }
   0x7   : > { %p178_p1 = scmp.eq.s32.totalorder %s177_s9, 0  ;;  %p191_p2 = scmp.eq.s32.totalorder %s8173_s28, 1 }
   0x8   : > { %p196_p3 = scmp.ne.s32.totalorder %s8096_s25, %s8092_s24  ;;  %p197_p4 = scmp.eq.s32.totalorder %s6279_s29, 1 }
   0x9   : > { %s8188_s10 = scalar_select %p178_p1, %s8100_s26, %s180_s8  }
   0xa   : > { %p8190_p5 = por %p191_p2, %p190_p0  ;;  %p8194_p6 = por %p197_p4, %p196_p3 }
   0xb   : > { %p6280_p7 = scmp.ge.s32.totalorder %s8104_s27, 1  ;;  %p204_p8 = scmp.lt.s32.totalorder %s8104_s27, 3 }
   0xc   : > { %s10968_s11 = scalar_select %p8190_p5, 1, 0 }
   0xd   : > { %s10969_s12 = scalar_select %p8194_p6, 1, 0 }
   0xe   : > { %p10924_p9 = scmp.eq.s32.totalorder %s8173_s28, 0  ;;  %p8201_p10 = pnand %p6280_p7, %p204_p8 }
   0xf   : > { %s8106_s14 = smov [#allocation3]   ;;  %s8010_s19 = scalar_lea.hbm %s10920_s4, 9216 }
  0x10   : > { %s10970_s13 = scalar_select %p8201_p10, 1, 0 }
  0x11   : > { %s225_s15 = sshll.u32 %s8106_s14, 4  ;;  %p7732_p11 = pneg %p8201_p10  ;;  %s226_s15 = int_to_ptr.vmem [resolvable:$true] %s225_s15 }
  0x12   : > { %p8011_p13 = scmp.ne.s32.totalorder %s10920_s4, %s8010_s19  ;;  %p8017_p3 = scmp.lt.u32.totalorder %s8010_s19, %s10920_s4 }
  0x13   : > { %p8209_p12 = pnand %p10924_p9, %p7732_p11 }
  0x15   : > { %p8012_p0 = pneg %p8209_p12 }
  0x17   : > { %p8013_p1 = pnand %p8012_p0, %p8011_p13 }
  0x19   : > { %p8014_p2 = pneg %p8013_p1 }
  0x1b   : > { %p8019_p4 = pnand %p8017_p3, %p8014_p2 }
  0x1d   : > { %8022 = shalt.err (!%p8019_p4)
}
  0x1e   : > { %s8023_s29 = scalar_lea.vmem %s226_s15, 9216  ;;  %p8031_p9 = scmp.lt.s32.totalorder %s226_s15, %s226_s15 }
  0x1f   : > { %p8024_p7 = scmp.ne.s32.totalorder %s226_s15, %s8023_s29  ;;  %p8032_p6 = scmp.lt.s32.totalorder %s8023_s29, %s8023_s29 }
  0x21   : > { %p8026_p8 = pnand %p8024_p7, %p8012_p0  ;;  %p8033_p5 = por %p8032_p6, %p8031_p9 }
  0x23   : > { %p8027_p11 = pneg %p8026_p8 }
  0x25   : > { %p8034_p10 = pnand %p8033_p5, %p8027_p11 }
  0x27   : > { %8037 = shalt.err (!%p8034_p10)
}
  0x28   : > { %s8107_s8 = smov 64   ;;  %s8108_s9 = smov 4  }
  0x29   : > { %7735 = dma.hbm_to_vmem [thread:$0]  (!%p8209_p12), %s10920_s4, 9216, %s226_s15, [#allocation4], %s8107_s8, %s8107_s8, %s8108_s9  }
  0x2a   : > { %p10972_p13 = scmp.ne.s32.totalorder %s10970_s13, 0 }
  0x2c   : > { %255 = sbr.rel (%p10972_p13) target bundleno = 1252 (0x4e4), region = 48 }
  0x33   : > { %p10973_p1 = scmp.eq.s32.totalorder %s8173_s28, 0 }
  0x35   : > { %8083 = dma.done.wait (%p10973_p1), [#allocation4], 9216   ;;  %p10974_p0 = pmov %p10973_p1 }
  0x36   : > { %v7780_v0 = vld [vmem:[%s10917_s1 + $0x40] sm:$0xff]   ;;  %v7784_v4 = vld [vmem:[%s10917_s1 + $0x48] sm:$0xff]   ;;  %v7788_v8 = vld [vmem:[%s10917_s1 + $0x50] sm:$0xff]   ;;  %p287_p5 = scmp.lt.s32.totalorder %s8173_s28, 1  ;;  %vm347_vm0 = vsmask.f32 3328 }
  0x37   : > { %8085 = vsyncadd (%p10974_p0), [#allocation4], 4294958080  ;;  %v7781_v1 = vld [vmem:[%s10917_s1 + $0xc0] sm:$0xff]   ;;  %6685 = vmatprep.subr.bf16.mxu0 %v7780_v0  ;;  %v7785_v5 = vld [vmem:[%s10917_s1 + $0xc8] sm:$0xff]   ;;  %vm348_vm1 = vsmask.f32 7440 }
  0x38   : > { %v7782_v2 = vld [vmem:[%s10917_s1] sm:$0xff]   ;;  %6797 = vmatprep.subr.bf16.mxu1 %v7781_v1  ;;  %v7786_v6 = vld [vmem:[%s10917_s1 + $0x8] sm:$0xff]   ;;  %v7789_v9 = vld [vmem:[%s10917_s1 + $0xd0] sm:$0xff]   ;;  %s288_s20 = scalar_select %p287_p5, %s8173_s28, 1  ;;  %vm782_vm2 = vcmask 1042432   ;;  %vm783_vm3 = vcmask 1046532  }
  0x39   : > { %v7783_v3 = vld [vmem:[%s10917_s1 + $0x80] sm:$0xff]   ;;  %6686 = vmatpush3.bf16.msra.mxu0 %v7782_v2  ;;  %v7787_v7 = vld [vmem:[%s10917_s1 + $0x88] sm:$0xff]   ;;  %v7790_v10 = vld [vmem:[%s10917_s1 + $0x10] sm:$0xff]   ;;  %vm2832_vm6 = vsmask.f32 256  ;;  %vm3156_vm7 = vcmask 1043456  }
  0x3a   : > { %6798 = vmatpush3.bf16.msra.mxu1 %v7783_v3  ;;  %6687 = vmatprep.subr.bf16.mxu0 %v7784_v4  ;;  %v7791_v11 = vld [vmem:[%s10917_s1 + $0x90] sm:$0xff]   ;;  %v7792_v12 = vld [vmem:[%s10917_s1 + $0x58] sm:$0xff]   ;;  %v7796_v16 = vld [vmem:[%s10917_s1 + $0x60] sm:$0xff]   ;;  %s7725_s9 = smul.u32 216, %s288_s20  ;;  %vm3157_vm8 = vsmask.f32 7938 }
  0x3b   : > { %6799 = vmatprep.subr.bf16.mxu1 %v7785_v5  ;;  %v7793_v13 = vld [vmem:[%s10917_s1 + $0xd8] sm:$0xff]   ;;  %v7797_v17 = vld [vmem:[%s10917_s1 + $0xe0] sm:$0xff]   ;;  %v7800_v20 = vld [vmem:[%s10917_s1 + $0x68] sm:$0xff]   ;;  %vm3163_vm10 = vcmask 1040384   ;;  %vm2833_vm12 = vsmask.f32 4368 }
  0x3c   : > { %v7794_v14 = vld [vmem:[%s10917_s1 + $0x18] sm:$0xff]   ;;  %v7798_v18 = vld [vmem:[%s10917_s1 + $0x20] sm:$0xff]   ;;  %v7801_v21 = vld [vmem:[%s10917_s1 + $0xe8] sm:$0xff]   ;;  %s8330_s23 = scalar_lea.vmem %s10916_s0, %s7725_s9  ;;  %s284_s8 = sand.u32 1, %s8096_s25  }
  0x3d   : > { %6688 = vmatpush3.bf16.msra.mxu0 %v7786_v6  ;;  %v7795_v15 = vld [vmem:[%s10917_s1 + $0x98] sm:$0xff]   ;;  %v7799_v19 = vld [vmem:[%s10917_s1 + $0xa0] sm:$0xff]   ;;  %v7802_v22 = vld [vmem:[%s10917_s1 + $0x28] sm:$0xff]   ;;  %s6285_s19 = sshll.u32 %s284_s8, 8  ;;  %p11035_p9 = scmp.ne.s32.totalorder %s10968_s11, 0 }
  0x3e   : > { %6800 = vmatpush3.bf16.msra.mxu1 %v7787_v7  ;;  %6689 = vmatprep.subr.bf16.mxu0 %v7788_v8  ;;  %v7803_v23 = vld [vmem:[%s10917_s1 + $0xa8] sm:$0xff]   ;;  %v7804_v24 = vld [vmem:[%s10917_s1 + $0x70] sm:$0xff]   ;;  %v7808_v28 = vld [vmem:[%s10917_s1 + $0x78] sm:$0xff]   ;;  %s10684_s21 = scalar_lea.vmem [#allocation6], %s6285_s19  ;;  %s8109_s29 = smov [#allocation6]  }
  0x3f   : > { %6801 = vmatprep.subr.bf16.mxu1 %v7789_v9  ;;  %v7805_v25 = vld [vmem:[%s10917_s1 + $0xf0] sm:$0xff]   ;;  %v7809_v29 = vld [vmem:[%s10917_s1 + $0xf8] sm:$0xff]   ;;  %v8339_v32 = vld [vmem:[%s8330_s23] sm:$0xf]  ;;  %s6205_s16 = sshll.u32 %s10684_s21, 4  ;;  %s8042_s14 = sshll.u32 %s8109_s29, 4  ;;  %s10868_s16 = int_to_ptr.vmem [resolvable:$true] %s6205_s16  ;;  %s8043_s14 = int_to_ptr.vmem [resolvable:$false] %s8042_s14 }
  0x40   : > { %v7806_v26 = vld [vmem:[%s10917_s1 + $0x30] sm:$0xff]   ;;  %v7810_v30 = vld [vmem:[%s10917_s1 + $0x38] sm:$0xff]   ;;  %v8342_v33 = vld [vmem:[%s8330_s23 + $0x4] sm:$0xf]  ;;  %v351_v35 = vshrl.u32 %v8339_v32, 16  ;;  %v354_v36 = vshll.u32 %v8339_v32, 16  ;;  %p8045_p2 = scmp.lt.s32.totalorder %s10868_s16, %s8043_s14 }
  0x41   : > { %6690 = vmatpush3.bf16.msra.mxu0 %v7790_v10  ;;  %v7807_v27 = vld [vmem:[%s10917_s1 + $0xb0] sm:$0xff]   ;;  %v7811_v31 = vld [vmem:[%s10917_s1 + $0xb8] sm:$0xff]   ;;  %v295_v34 = vld [vmem:[%s8330_s23 + $0x8] sm:$0x1]  ;;  %v360_v37 = vshll.u32 %v8342_v33, 16  ;;  %v364_v38 = vshrl.u32 %v8342_v33, 16  ;;  %v6305_v51 = vcombine.low %v8339_v32, %v8342_v33 }
  0x42   : > { %6802 = vmatpush3.bf16.msra.mxu1 %v7791_v11  ;;  %6691 = vmatprep.subr.bf16.mxu0 %v7792_v12  ;;  %v8350_v39 = vld [vmem:[%s8330_s23 + $0xc] sm:$0xf]  ;;  %v370_v40 = vshll.u32 %v295_v34, 16  ;;  %v297_v41 = vld [vmem:[%s8330_s23 + $0x10] sm:$0xf]  ;;  %v6287_v42 = vrot.slane %v8339_v32, 9  ;;  %vm8359_vm4 = vmor %vm782_vm2, %vm783_vm3 }
  0x43   : > { %6803 = vmatprep.subr.bf16.mxu1 %v7793_v13  ;;  %v7814_v43 = vld [vmem:[%s10917_s1 + $0x140] sm:$0xff]   ;;  %v353_v44 = vrot.slane %v351_v35, 4  ;;  %v356_v45 = vrot.slane %v354_v36, 5  ;;  %v362_v46 = vrot.slane %v360_v37, 5  ;;  %v366_v47 = vrot.slane %v364_v38, 4  ;;  %vm8373_vm5 = vmor %vm347_vm0, %vm348_vm1  ;;  %v7819_v38 = vld [vmem:[%s10917_s1 + $0x108] sm:$0xff]  }
  0x44   : > { %v790_v49 = vrot.slane %v295_v34, 5  ;;  %v8364_v50 = vcombine.low %v8350_v39, %v297_v41  ;;  %v787_v52 = vrot.slane %v8342_v33, 5  ;;  %v372_v55 = vrot.slane %v370_v40, 5  ;;  %v298_v56 = vld [vmem:[%s8330_s23 + $0x14] sm:$0x1]  ;;  %vm9385_vm15 = vmand %vm3156_vm7, %vm3157_vm8  ;;  %v7953_v48 = vld [vmem:[#allocation3 + $0x210] sm:$0xff]  }
  0x45   : > { %6692 = vmatpush3.bf16.msra.mxu0 %v7794_v14  ;;  %v357_v53 = vor.u32 %v356_v45, %v353_v44  ;;  %v367_v54 = vor.u32 %v366_v47, %v362_v46  ;;  %v375_v57 = vshrl.u32 %v8350_v39, 16  ;;  %v378_v61 = vshll.u32 %v8350_v39, 16  ;;  %v8382_v63 = vld [vmem:[%s8330_s23 + $0x18] sm:$0xf]  ;;  %v8385_v4 = vld [vmem:[%s8330_s23 + $0x1c] sm:$0xf]  ;;  %vm9391_vm1 = vmand %vm3163_vm10, %vm2832_vm6 }
  0x46   : > { %6804 = vmatpush3.bf16.msra.mxu1 %v7795_v15  ;;  %6693 = vmatprep.subr.bf16.mxu0 %v7796_v16  ;;  %v788_v59 = vsel %vm8359_vm4, %v6287_v42, %v787_v52  ;;  %v789_v60 = vrot.slane %v787_v52, 4  ;;  %v384_v62 = vshll.u32 %v297_v41, 16  ;;  %v388_v3 = vshrl.u32 %v297_v41, 16  ;;  %v7815_v14 = vld [vmem:[%s10917_s1 + $0x100] sm:$0xff]   ;;  %v8418_v33 = vld [vmem:[%s8330_s23 + $0x28] sm:$0xf]  ;;  %vm9397_vm2 = vmor %vm2832_vm6, %vm2833_vm12 }
  0x47   : > { %6805 = vmatprep.subr.bf16.mxu1 %v7797_v17  ;;  %1950 = vmatprep.mubr.bf16.mxu1 %v8364_v50  ;;  %v358_v0 = vrot.slane %v357_v53, 4  ;;  %v368_v1 = vrot.slane %v367_v54, 4  ;;  %v377_v2 = vrot.slane %v375_v57, 4  ;;  %v380_v6 = vrot.slane %v378_v61, 5  ;;  %v8454_v61 = vld [vmem:[%s8330_s23 + $0x30] sm:$0xf]  ;;  %vm9448_vm6 = vmand %vm3163_vm10, %vm3157_vm8 }
  0x48   : > { %v791_v5 = vsel %vm8359_vm4, %v789_v60, %v790_v49  ;;  %v386_v7 = vrot.slane %v384_v62, 5  ;;  %v394_v8 = vshll.u32 %v298_v56, 16  ;;  %v390_v12 = vrot.slane %v388_v3, 4  ;;  %v8442_v49 = vld [vmem:[%s8330_s23 + $0x2c] sm:$0x1]  ;;  %s8038_s22 = scalar_lea.vmem %s10868_s16, 4096 }
  0x49   : > { %6694 = vmatpush3.bf16.msra.mxu0 %v7798_v18  ;;  %v363_v9 = vsel %vm8373_vm5, %v358_v0, %v362_v46  ;;  %v373_v10 = vsel %vm8373_vm5, %v368_v1, %v372_v55  ;;  %v6337_v11 = vcombine.low %v788_v59, %v791_v5  ;;  %v381_v15 = vor.u32 %v380_v6, %v377_v2  ;;  %v8401_v18 = vld [vmem:[%s8330_s23 + $0x20] sm:$0x1]  ;;  %v7823_v55 = vld [vmem:[%s10917_s1 + $0x110] sm:$0xff]   ;;  %v7826_v2 = vld [vmem:[%s10917_s1 + $0x158] sm:$0xff]   ;;  %p8039_p6 = scmp.ne.s32.totalorder %s10868_s16, %s8038_s22  ;;  %s8044_s17 = scalar_lea.vmem %s8043_s14, 8192 }
  0x4a   : > { %6806 = vmatpush3.bf16.msra.mxu1 %v7799_v19  ;;  %6695 = vmatprep.subr.bf16.mxu0 %v7800_v20  ;;  %v6321_v13 = vcombine.low %v363_v9, %v373_v10  ;;  %v396_v16 = vrot.slane %v394_v8, 5  ;;  %v8398_v17 = vcombine.low %v8382_v63, %v8385_v4  ;;  %v391_v19 = vor.u32 %v390_v12, %v386_v7  ;;  %p8046_p3 = scmp.lt.s32.totalorder %s8044_s17, %s8038_s22 }
  0x4b   : > { %6807 = vmatprep.subr.bf16.mxu1 %v7801_v21  ;;  %v6288_v20 = vrot.slane %v8350_v39, 9  ;;  %v794_v21 = vrot.slane %v297_v41, 5  ;;  %v412_v32 = vshrl.u32 %v8385_v4, 16  ;;  %v418_v42 = vshll.u32 %v8401_v18, 16  ;;  %p8040_p10 = pnand %p8039_p6, %p11035_p9 }
  0x4c   : > { %1789 = vmatprep.mubr.bf16.mxu0 %v6321_v13  ;;  %v6289_v53 = vrot.slane %v8382_v63, 9  ;;  %v801_v54 = vrot.slane %v8385_v4, 5  ;;  %v804_v57 = vrot.slane %v8401_v18, 5  ;;  %v432_v1 = vshll.u32 %v8418_v33, 16  ;;  %p8047_p4 = por %p8046_p3, %p8045_p2 }
  0x4d   : > { %6696 = vmatpush3.bf16.msra.mxu0 %v7802_v22  ;;  %v797_v22 = vrot.slane %v298_v56, 5  ;;  %v414_v41 = vrot.slane %v412_v32, 4  ;;  %v420_v52 = vrot.slane %v418_v42, 5  ;;  %v436_v6 = vshrl.u32 %v8418_v33, 16  ;;  %p8041_p12 = pneg %p8040_p10 }
  0x4e   : > { %6808 = vmatpush3.bf16.msra.mxu1 %v7803_v23  ;;  %6697 = vmatprep.subr.bf16.mxu0 %v7804_v24  ;;  %v8405_v23 = vld [vmem:[%s8330_s23 + $0x24] sm:$0xf]  ;;  %v7818_v24 = vld [vmem:[%s10917_s1 + $0x148] sm:$0xff]   ;;  %v803_v0 = vrot.slane %v801_v54, 4  ;;  %v434_v10 = vrot.slane %v432_v1, 5 }
  0x4f   : > { %6809 = vmatprep.subr.bf16.mxu1 %v7805_v25  ;;  %v382_v25 = vrot.slane %v381_v15, 4  ;;  %v8439_v47 = vcombine.low %v8405_v23, %v8418_v33  ;;  %v423_v59 = vshrl.u32 %v8405_v23, 16  ;;  %v426_v60 = vshll.u32 %v8405_v23, 16  ;;  %p8048_p7 = pnand %p8047_p4, %p8041_p12 }
  0x50   : > { %v805_v9 = vsel %vm8359_vm4, %v803_v0, %v804_v57  ;;  %v438_v15 = vrot.slane %v436_v6, 4 }
  0x51   : > { %6698 = vmatpush3.bf16.msra.mxu0 %v7806_v26  ;;  %v399_v26 = vshrl.u32 %v8382_v63, 16  ;;  %v387_v34 = vsel %vm8373_vm5, %v382_v25, %v386_v7  ;;  %v428_v5 = vrot.slane %v426_v60, 5  ;;  %v8468_v7 = vld [vmem:[%s8330_s23 + $0x34] sm:$0xf]  ;;  %v7830_v25 = vld [vmem:[%s10917_s1 + $0x160] sm:$0xff]   ;;  %v6291_v60 = vrot.slane %v8454_v61, 9 }
  0x52   : > { %6810 = vmatpush3.bf16.msra.mxu1 %v7807_v27  ;;  %6699 = vmatprep.subr.bf16.mxu0 %v7808_v28  ;;  %v402_v27 = vshll.u32 %v8382_v63, 16  ;;  %v408_v28 = vshll.u32 %v8385_v4, 16  ;;  %v802_v63 = vsel %vm8359_vm4, %v6289_v53, %v801_v54  ;;  %v425_v4 = vrot.slane %v423_v59, 4 }
  0x53   : > { %6811 = vmatprep.subr.bf16.mxu1 %v7809_v29  ;;  %v392_v29 = vrot.slane %v391_v19, 4  ;;  %v401_v35 = vrot.slane %v399_v26, 4  ;;  %v8478_v13 = vcombine.low %v802_v63, %v805_v9  ;;  %v8488_v19 = vcombine.low %v8454_v61, %v8468_v7 }
  0x54   : > { %v404_v36 = vrot.slane %v402_v27, 5  ;;  %v410_v37 = vrot.slane %v408_v28, 5  ;;  %v439_v27 = vor.u32 %v438_v15, %v434_v10  ;;  %v811_v28 = vrot.slane %v8442_v49, 5  ;;  %v7838_v15 = vld [vmem:[%s10917_s1 + $0x170] sm:$0xff]  }
  0x55   : > { %6700 = vmatpush3.bf16.msra.mxu0 %v7810_v30  ;;  %v795_v30 = vsel %vm8359_vm4, %v6288_v20, %v794_v21  ;;  %v397_v39 = vsel %vm8373_vm5, %v392_v29, %v396_v16  ;;  %v8481_v16 = vld [vmem:[%s8330_s23 + $0x38] sm:$0x1]  ;;  %v6290_v20 = vrot.slane %v8405_v23, 9  ;;  %v447_v29 = vshrl.u32 %v8454_v61, 16  ;;  %v7831_v23 = vld [vmem:[%s10917_s1 + $0x120] sm:$0xff]  }
  0x56   : > { %6812 = vmatpush3.bf16.msra.mxu1 %v7811_v31  ;;  %6909 = vmatprep.subr.bf16.mxu0 %v7814_v43  ;;  %v796_v31 = vrot.slane %v794_v21, 4  ;;  %v7822_v43 = vld [vmem:[%s10917_s1 + $0x150] sm:$0xff]   ;;  %v8433_v44 = vcombine.low %v387_v34, %v397_v39  ;;  %v405_v46 = vor.u32 %v404_v36, %v401_v35  ;;  %v808_v21 = vrot.slane %v8418_v33, 5  ;;  %v7841_v35 = vld [vmem:[%s10917_s1 + $0x180] sm:$0xff]  }
  0x57   : > { %v450_v33 = vshll.u32 %v8454_v61, 16  ;;  %v456_v34 = vshll.u32 %v8468_v7, 16  ;;  %v460_v39 = vshrl.u32 %v8468_v7, 16  ;;  %v815_v0 = vrot.slane %v8468_v7, 5 }
  0x58   : > { %1790 = vmatmul.mubr.bf16.vlgmr.msra.gmra.mrb[0].mxu0 %v6305_v51  ;;  %v798_v40 = vsel %vm8359_vm4, %v796_v31, %v797_v22  ;;  %v415_v51 = vor.u32 %v414_v41, %v410_v37  ;;  %v406_v56 = vrot.slane %v405_v46, 4  ;;  %v8493_v22 = vld [vmem:[%s8330_s23 + $0x3c] sm:$0xf]  ;;  %v809_v31 = vsel %vm8359_vm4, %v6290_v20, %v808_v21 }
  0x59   : > { %1951 = vmatmul.mubr.bf16.vlgmr.msra.gmra.mrb[0].mxu1 %v6337_v11  ;;  %6910 = vmatpush3.bf16.msra.mxu0 %v7815_v14  ;;  %v8435_v45 = vcombine.low %v795_v30, %v798_v40  ;;  %v442_v11 = vshll.u32 %v8442_v49, 16  ;;  %v429_v14 = vor.u32 %v428_v5, %v425_v4  ;;  %v7840_v30 = vld [vmem:[%s10917_s1 + $0x1c0] sm:$0xff]   ;;  %v810_v32 = vrot.slane %v808_v21, 4  ;;  %v7842_v40 = vld [vmem:[%s10917_s1 + $0x1c8] sm:$0xff]   ;;  %v7846_v21 = vld [vmem:[%s10917_s1 + $0x190] sm:$0xff]  }
  0x5a   : > { %1958 = vmatprep.mubr.bf16.mxu1 %v8398_v17  ;;  %6911 = vmatprep.subr.bf16.mxu0 %v7818_v24  ;;  %v416_v62 = vrot.slane %v415_v51, 4  ;;  %v411_v3 = vsel %vm8373_vm5, %v406_v56, %v410_v37  ;;  %v8496_v24 = vld [vmem:[%s8330_s23 + $0x40] sm:$0xf]  ;;  %v440_v37 = vrot.slane %v439_v27, 4  ;;  %v452_v42 = vrot.slane %v450_v33, 5  ;;  %v7834_v49 = vld [vmem:[%s10917_s1 + $0x168] sm:$0xff]  }
  0x5b   : > { %1797 = vmatprep.mubr.bf16.mxu0 %v8433_v44  ;;  %v444_v18 = vrot.slane %v442_v11, 5  ;;  %v430_v26 = vrot.slane %v429_v14, 4  ;;  %7021 = vmatprep.subr.bf16.mxu1 %v7840_v30  ;;  %v812_v41 = vsel %vm8359_vm4, %v810_v32, %v811_v28  ;;  %v466_v46 = vshll.u32 %v8481_v16, 16  ;;  %v8557_v4 = vld [vmem:[%s8330_s23 + $0x44] sm:$0x1]  ;;  %v7839_v28 = vld [vmem:[%s10917_s1 + $0x130] sm:$0xff]  }
  0x5c   : > { %v421_v8 = vsel %vm8373_vm5, %v416_v62, %v420_v52  ;;  %v8533_v52 = vcombine.low %v809_v31, %v812_v41  ;;  %v462_v53 = vrot.slane %v460_v39, 4  ;;  %v8537_v54 = vcombine.low %v8493_v22, %v8496_v24  ;;  %7022 = vmatpush3.bf16.msra.mxu1 %v7841_v35  ;;  %v7845_v62 = vld [vmem:[%s10917_s1 + $0x1d0] sm:$0xff]   ;;  %v8565_v14 = vld [vmem:[%s8330_s23 + $0x48] sm:$0xf]  ;;  %v8587_v31 = vld [vmem:[%s8330_s23 + $0x4c] sm:$0xf] }
  0x5d   : > { %6912 = vmatpush3.bf16.msra.mxu0 %v7819_v38  ;;  %v8476_v12 = vcombine.low %v411_v3, %v421_v8  ;;  %v435_v36 = vsel %vm8373_vm5, %v430_v26, %v434_v10  ;;  %v449_v38 = vrot.slane %v447_v29, 4  ;;  %v445_v51 = vsel %vm8373_vm5, %v440_v37, %v444_v18  ;;  %7023 = vmatprep.subr.bf16.mxu1 %v7842_v40  ;;  %v7835_v3 = vld [vmem:[%s10917_s1 + $0x128] sm:$0xff]   ;;  %v7847_v32 = vld [vmem:[%s10917_s1 + $0x1d8] sm:$0xff]  }
  0x5e   : > { %6913 = vmatprep.subr.bf16.mxu0 %v7822_v43  ;;  %v458_v43 = vrot.slane %v456_v34, 5  ;;  %v8543_v56 = vcombine.low %v435_v36, %v445_v51  ;;  %v468_v59 = vrot.slane %v466_v46, 5  ;;  %v818_v1 = vrot.slane %v8481_v16, 5  ;;  %v7850_v33 = vld [vmem:[%s10917_s1 + $0x178] sm:$0xff]   ;;  %v8614_v51 = vld [vmem:[%s8330_s23 + $0x54] sm:$0xf] }
  0x5f   : > { %v453_v57 = vor.u32 %v452_v42, %v449_v38  ;;  %v474_v5 = vshll.u32 %v8493_v22, 16  ;;  %v480_v6 = vshll.u32 %v8496_v24, 16  ;;  %v484_v7 = vshrl.u32 %v8496_v24, 16  ;;  %v8601_v38 = vld [vmem:[%s8330_s23 + $0x50] sm:$0x1] }
  0x60   : > { %1798 = vmatmul.mubr.bf16.gmra.mrb[4].mxu0 %v8364_v50  ;;  %v7827_v50 = vld [vmem:[%s10917_s1 + $0x118] sm:$0xff]   ;;  %v463_v63 = vor.u32 %v462_v53, %v458_v43  ;;  %v816_v9 = vsel %vm8359_vm4, %v6291_v60, %v815_v0  ;;  %v817_v10 = vrot.slane %v815_v0, 4  ;;  %v490_v27 = vshll.u32 %v8557_v4, 16 }
  0x61   : > { %1959 = vmatmul.mubr.bf16.gmra.mrb[4].mxu1 %v8435_v45  ;;  %6914 = vmatpush3.bf16.msra.mxu0 %v7823_v55  ;;  %v7844_v55 = vld [vmem:[%s10917_s1 + $0x188] sm:$0xff]   ;;  %v454_v61 = vrot.slane %v453_v57, 4  ;;  %v482_v18 = vrot.slane %v480_v6, 5  ;;  %v486_v20 = vrot.slane %v484_v7, 4  ;;  %v6292_v36 = vrot.slane %v8493_v22, 9  ;;  %v7851_v53 = vld [vmem:[%s10917_s1 + $0x138] sm:$0xff]  }
  0x62   : > { %1966 = vmatprep.mubr.bf16.mxu1 %v8439_v47  ;;  %6915 = vmatprep.subr.bf16.mxu0 %v7826_v2  ;;  %v471_v2 = vshrl.u32 %v8493_v22, 16  ;;  %v464_v8 = vrot.slane %v463_v63, 4  ;;  %v819_v26 = vsel %vm8359_vm4, %v817_v10, %v818_v1  ;;  %v492_v35 = vrot.slane %v490_v27, 5  ;;  %v7854_v27 = vld [vmem:[%s10917_s1 + $0x1e8] sm:$0xff]  }
  0x63   : > { %1805 = vmatprep.mubr.bf16.mxu0 %v8476_v12  ;;  %7024 = vmatpush3.bf16.msra.mxu1 %v7844_v55  ;;  %v459_v16 = vsel %vm8373_vm5, %v454_v61, %v458_v43  ;;  %v487_v30 = vor.u32 %v486_v20, %v482_v18  ;;  %v8596_v34 = vcombine.low %v816_v9, %v819_v26  ;;  %v822_v37 = vrot.slane %v8496_v24, 5  ;;  %v7849_v43 = vld [vmem:[%s10917_s1 + $0x198] sm:$0xff]   ;;  %v7853_v9 = vld [vmem:[%s10917_s1 + $0x1a0] sm:$0xff]  }
  0x64   : > { %v473_v11 = vrot.slane %v471_v2, 4  ;;  %7025 = vmatprep.subr.bf16.mxu1 %v7845_v62  ;;  %v495_v41 = vshrl.u32 %v8565_v14, 16  ;;  %v498_v42 = vshll.u32 %v8565_v14, 16  ;;  %v825_v24 = vrot.slane %v8557_v4, 5  ;;  %v8631_v61 = vld [vmem:[%s8330_s23 + $0x58] sm:$0xf] }
  0x65   : > { %6916 = vmatpush3.bf16.msra.mxu0 %v7827_v50  ;;  %v476_v50 = vrot.slane %v474_v5, 5  ;;  %v488_v40 = vrot.slane %v487_v30, 4  ;;  %v824_v22 = vrot.slane %v822_v37, 4  ;;  %v504_v46 = vshll.u32 %v8587_v31, 16  ;;  %v7852_v4 = vld [vmem:[%s10917_s1 + $0x1e0] sm:$0xff]  }
  0x66   : > { %6917 = vmatprep.subr.bf16.mxu0 %v7830_v25  ;;  %v469_v25 = vsel %vm8373_vm5, %v464_v8, %v468_v59  ;;  %v497_v59 = vrot.slane %v495_v41, 4  ;;  %v500_v60 = vrot.slane %v498_v42, 5  ;;  %v8625_v62 = vcombine.low %v8565_v14, %v8587_v31  ;;  %v8655_v26 = vld [vmem:[%s8330_s23 + $0x60] sm:$0xf]  ;;  %v7857_v42 = vld [vmem:[%s10917_s1 + $0x1f0] sm:$0xff]  }
  0x67   : > { %v8584_v29 = vcombine.low %v459_v16, %v469_v25  ;;  %7026 = vmatpush3.bf16.msra.mxu1 %v7846_v21  ;;  %v493_v57 = vsel %vm8373_vm5, %v488_v40, %v492_v35  ;;  %v506_v63 = vrot.slane %v504_v46, 5  ;;  %v823_v1 = vsel %vm8359_vm4, %v6292_v36, %v822_v37 }
  0x68   : > { %1806 = vmatmul.mubr.bf16.gmra.mrb[8].mxu0 %v8398_v17  ;;  %7027 = vmatprep.subr.bf16.mxu1 %v7847_v32  ;;  %v501_v2 = vor.u32 %v500_v60, %v497_v59  ;;  %v826_v6 = vsel %vm8359_vm4, %v824_v22, %v825_v24  ;;  %v829_v8 = vrot.slane %v8587_v31, 5  ;;  %v519_v16 = vshrl.u32 %v8614_v51, 16  ;;  %v8663_v32 = vld [vmem:[%s8330_s23 + $0x64] sm:$0xf]  ;;  %v7858_v60 = vld [vmem:[%s10917_s1 + $0x1b0] sm:$0xff]  }
  0x69   : > { %1967 = vmatmul.mubr.bf16.gmra.mrb[8].mxu1 %v8478_v13  ;;  %6918 = vmatpush3.bf16.msra.mxu0 %v7831_v23  ;;  %v477_v23 = vor.u32 %v476_v50, %v473_v11  ;;  %v522_v50 = vshll.u32 %v8614_v51, 16  ;;  %v6293_v20 = vrot.slane %v8565_v14, 9  ;;  %v832_v21 = vrot.slane %v8601_v38, 5  ;;  %v7856_v14 = vld [vmem:[%s10917_s1 + $0x1a8] sm:$0xff]  }
  0x6a   : > { %1974 = vmatprep.mubr.bf16.mxu1 %v8488_v19  ;;  %1813 = vmatprep.mubr.bf16.mxu0 %v8543_v56  ;;  %v502_v10 = vrot.slane %v501_v2, 4  ;;  %v528_v25 = vshll.u32 %v8631_v61, 16  ;;  %v8673_v35 = vcombine.low %v8614_v51, %v8631_v61  ;;  %v6294_v24 = vrot.slane %v8614_v51, 9  ;;  %v8700_v2 = vld [vmem:[%s8330_s23 + $0x6c] sm:$0xf] }
  0x6b   : > { %6919 = vmatprep.subr.bf16.mxu0 %v7834_v49  ;;  %v478_v39 = vrot.slane %v477_v23, 4  ;;  %v508_v49 = vshrl.u32 %v8587_v31, 16  ;;  %7028 = vmatpush3.bf16.msra.mxu1 %v7849_v43  ;;  %v521_v23 = vrot.slane %v519_v16, 4  ;;  %v524_v30 = vrot.slane %v522_v50, 5 }
  0x6c   : > { %7029 = vmatprep.subr.bf16.mxu1 %v7852_v4  ;;  %v532_v31 = vshrl.u32 %v8631_v61, 16  ;;  %v530_v36 = vrot.slane %v528_v25, 5  ;;  %v830_v43 = vsel %vm8359_vm4, %v6293_v20, %v829_v8  ;;  %v836_v46 = vrot.slane %v8631_v61, 5  ;;  %v7860_v20 = vld [vmem:[%s10917_s1 + $0x1b8] sm:$0xff]  }
  0x6d   : > { %6920 = vmatpush3.bf16.msra.mxu0 %v7835_v3  ;;  %v483_v55 = vsel %vm8373_vm5, %v478_v39, %v482_v18  ;;  %v510_v0 = vrot.slane %v508_v49, 4  ;;  %v514_v3 = vshll.u32 %v8601_v38, 16  ;;  %v507_v38 = vsel %vm8373_vm5, %v502_v10, %v506_v63  ;;  %v8688_v49 = vld [vmem:[%s8330_s23 + $0x68] sm:$0x1] }
  0x6e   : > { %6921 = vmatprep.subr.bf16.mxu0 %v7838_v15  ;;  %v8636_v5 = vcombine.low %v483_v55, %v493_v57  ;;  %v8646_v15 = vld [vmem:[%s8330_s23 + $0x5c] sm:$0x1]  ;;  %v525_v40 = vor.u32 %v524_v30, %v521_v23  ;;  %v534_v41 = vrot.slane %v532_v31, 4  ;;  %v543_v59 = vshrl.u32 %v8655_v26, 16 }
  0x6f   : > { %v511_v7 = vor.u32 %v510_v0, %v506_v63  ;;  %v516_v11 = vrot.slane %v514_v3, 5  ;;  %7030 = vmatpush3.bf16.msra.mxu1 %v7853_v9  ;;  %v538_v37 = vshll.u32 %v8646_v15, 16  ;;  %v839_v57 = vrot.slane %v8646_v15, 5  ;;  %v7859_v3 = vld [vmem:[%s10917_s1 + $0x1f8] sm:$0xff]  }
  0x70   : > { %1814 = vmatmul.mubr.bf16.gmra.mrb[12].mxu0 %v8439_v47  ;;  %7031 = vmatprep.subr.bf16.mxu1 %v7854_v27  ;;  %v535_v55 = vor.u32 %v534_v41, %v530_v36  ;;  %v838_v0 = vrot.slane %v836_v46, 4  ;;  %v546_v51 = vshll.u32 %v8655_v26, 16  ;;  %v8732_v25 = vcombine.low %v8655_v26, %v8663_v32 }
  0x71   : > { %1975 = vmatmul.mubr.bf16.gmra.mrb[12].mxu1 %v8533_v52  ;;  %1821 = vmatprep.mubr.bf16.mxu0 %v8584_v29  ;;  %v512_v18 = vrot.slane %v511_v7, 4  ;;  %v540_v22 = vrot.slane %v538_v37, 5  ;;  %v556_v7 = vshrl.u32 %v8663_v32, 16  ;;  %v567_v31 = vshrl.u32 %v8700_v2, 16 }
  0x72   : > { %1982 = vmatprep.mubr.bf16.mxu1 %v8537_v54  ;;  %6922 = vmatpush3.bf16.msra.mxu0 %v7839_v28  ;;  %v831_v28 = vrot.slane %v829_v8, 4  ;;  %v536_v4 = vrot.slane %v535_v55, 4  ;;  %v8712_v8 = vld [vmem:[%s10917_s1 + $0x200] sm:$0xff]   ;;  %v548_v9 = vrot.slane %v546_v51, 5  ;;  %10979 = vst [vmem:[#allocation9_spill] sm:$0xff] %v8732_v25  ;;  %v840_v23 = vsel %vm8359_vm4, %v838_v0, %v839_v57 }
  0x73   : > { %6923 = vmatprep.subr.bf16.mxu0 %v7850_v33  ;;  %v8669_v33 = vcombine.low %v823_v1, %v826_v6  ;;  %v517_v39 = vsel %vm8373_vm5, %v512_v18, %v516_v11  ;;  %7032 = vmatpush3.bf16.msra.mxu1 %v7856_v14  ;;  %v552_v1 = vshll.u32 %v8663_v32, 16  ;;  %v545_v6 = vrot.slane %v543_v59, 4  ;;  %v8716_v11 = vld [vmem:[%s8330_s23 + $0x70] sm:$0xf]  ;;  %v8751_v55 = vld [vmem:[%s8330_s23 + $0x78] sm:$0xf] }
  0x74   : > { %v8695_v63 = vcombine.low %v507_v38, %v517_v39  ;;  %7033 = vmatprep.subr.bf16.mxu1 %v7857_v42  ;;  %v833_v61 = vsel %vm8359_vm4, %v831_v28, %v832_v21  ;;  %v541_v16 = vsel %vm8373_vm5, %v536_v4, %v540_v22  ;;  %v558_v50 = vrot.slane %v556_v7, 4  ;;  %v8757_v59 = vld [vmem:[%s8330_s23 + $0x7c] sm:$0xf] }
  0x75   : > { %v554_v10 = vrot.slane %v552_v1, 5  ;;  %v562_v18 = vshll.u32 %v8688_v49, 16  ;;  %v8728_v21 = vcombine.low %v830_v43, %v833_v61  ;;  %v549_v27 = vor.u32 %v548_v9, %v545_v6 }
  0x76   : > { %6924 = vmatpush3.bf16.msra.mxu0 %v7851_v53  ;;  %v526_v53 = vrot.slane %v525_v40, 4  ;;  %v837_v28 = vsel %vm8359_vm4, %v6294_v24, %v836_v46  ;;  %v570_v37 = vshll.u32 %v8700_v2, 16  ;;  %v576_v38 = vshll.u32 %v8716_v11, 16 }
  0x77   : > { %7034 = vmatpush3.bf16.msra.mxu1 %v7858_v60  ;;  %v559_v30 = vor.u32 %v558_v50, %v554_v10  ;;  %7629 = vmatprep.subr.bf16.mxu0 %v8712_v8  ;;  %v580_v39 = vshrl.u32 %v8716_v11, 16  ;;  %v550_v40 = vrot.slane %v549_v27, 4  ;;  %v564_v42 = vrot.slane %v562_v18, 5 }
  0x78   : > { %1822 = vmatmul.mubr.bf16.gmra.mrb[16].mxu0 %v8488_v19  ;;  %v531_v15 = vsel %vm8373_vm5, %v526_v53, %v530_v36  ;;  %7035 = vmatprep.subr.bf16.mxu1 %v7859_v3  ;;  %v8743_v36 = vld [vmem:[%s8330_s23 + $0x74] sm:$0x1]  ;;  %v843_v43 = vrot.slane %v8663_v32, 5  ;;  %v569_v22 = vrot.slane %v567_v31, 4  ;;  %v572_v24 = vrot.slane %v570_v37, 5 }
  0x79   : > { %1983 = vmatmul.mubr.bf16.gmra.mrb[16].mxu1 %v8596_v34  ;;  %1829 = vmatprep.mubr.bf16.mxu0 %v8636_v5  ;;  %v8740_v14 = vcombine.low %v531_v15, %v541_v16  ;;  %v560_v41 = vrot.slane %v559_v30, 4  ;;  %v578_v46 = vrot.slane %v576_v38, 5  ;;  %v582_v53 = vrot.slane %v580_v39, 4  ;;  %v8777_v15 = vld [vmem:[%s8330_s23 + $0x84] sm:$0xf] }
  0x7a   : > { %1990 = vmatprep.mubr.bf16.mxu1 %v8625_v62  ;;  %v8754_v57 = vcombine.low %v837_v28, %v840_v23  ;;  %v6295_v32 = vrot.slane %v8655_v26, 9  ;;  %v845_v60 = vrot.slane %v843_v43, 4  ;;  %v846_v0 = vrot.slane %v8688_v49, 5 }
  0x7b   : > { %7036 = vmatpush3.bf16.msra.mxu1 %v7860_v20  ;;  %v586_v51 = vshll.u32 %v8743_v36, 16  ;;  %v555_v1 = vsel %vm8373_vm5, %v550_v40, %v554_v10  ;;  %v565_v3 = vsel %vm8373_vm5, %v560_v41, %v564_v42  ;;  %v573_v61 = vor.u32 %v572_v24, %v569_v22  ;;  %v8780_v10 = vld [vmem:[%s8330_s23 + $0x88] sm:$0xf]  ;;  %v325_v40 = vld [vmem:[%s8330_s23 + $0x80] sm:$0x1] }
  0x7c   : > { %10980 = vst [vmem:[#allocation10_spill] sm:$0xff] %v8754_v57  ;;  %v583_v4 = vor.u32 %v582_v53, %v578_v46  ;;  %v591_v6 = vshrl.u32 %v8751_v55, 16  ;;  %v594_v7 = vshll.u32 %v8751_v55, 16  ;;  %v600_v26 = vshll.u32 %v8757_v59, 16 }
  0x7d   : > { %v604_v49 = vshrl.u32 %v8757_v59, 16  ;;  %v8774_v9 = vcombine.low %v8700_v2, %v8716_v11  ;;  %v844_v16 = vsel %vm8359_vm4, %v6295_v32, %v843_v43  ;;  %v847_v50 = vsel %vm8359_vm4, %v845_v60, %v846_v0 }
  0x7e   : > { %v588_v18 = vrot.slane %v586_v51, 5  ;;  %v850_v20 = vrot.slane %v8716_v11, 5  ;;  %v8787_v27 = vcombine.low %v555_v1, %v565_v3  ;;  %v574_v28 = vrot.slane %v573_v61, 4  ;;  %v8818_v61 = vld [vmem:[%s8330_s23 + $0x94] sm:$0xf] }
  0x7f   : > { %10981 = vst [vmem:[#allocation11_spill] sm:$0xff] %v8774_v9  ;;  %v584_v23 = vrot.slane %v583_v4, 4  ;;  %v593_v30 = vrot.slane %v591_v6, 4  ;;  %v596_v31 = vrot.slane %v594_v7, 5  ;;  %v8790_v37 = vrot.slane %v600_v26, 5 }
  0x80   : > { %1830 = vmatmul.mubr.bf16.gmra.mrb[20].mxu0 %v8537_v54  ;;  %v606_v38 = vrot.slane %v604_v49, 4  ;;  %v8793_v39 = vcombine.low %v844_v16, %v847_v50  ;;  %v6296_v11 = vrot.slane %v8700_v2, 9  ;;  %v615_v41 = vshrl.u32 %v8777_v15, 16 }
  0x81   : > { %1991 = vmatmul.mubr.bf16.gmra.mrb[20].mxu1 %v8669_v33  ;;  %1837 = vmatprep.mubr.bf16.mxu0 %v8695_v63  ;;  %v618_v42 = vshll.u32 %v8777_v15, 16  ;;  %v624_v43 = vshll.u32 %v8780_v10, 16  ;;  %v579_v22 = vsel %vm8373_vm5, %v574_v28, %v578_v46  ;;  %v852_v24 = vrot.slane %v850_v20, 4  ;;  %v8815_v46 = vld [vmem:[%s8330_s23 + $0x90] sm:$0xf] }
  0x82   : > { %1998 = vmatprep.mubr.bf16.mxu1 %v8673_v35  ;;  %10982 = vst [vmem:[#allocation12_spill] sm:$0xff] %v8793_v39  ;;  %v853_v53 = vrot.slane %v8743_v36, 5  ;;  %v628_v32 = vshrl.u32 %v8780_v10, 16  ;;  %v589_v2 = vsel %vm8373_vm5, %v584_v23, %v588_v18  ;;  %v597_v60 = vor.u32 %v596_v31, %v593_v30 }
  0x83   : > { %v607_v0 = vor.u32 %v606_v38, %v8790_v37  ;;  %v610_v51 = vshll.u32 %v325_v40, 16  ;;  %v8811_v1 = vcombine.low %v8751_v55, %v8757_v59  ;;  %v857_v3 = vrot.slane %v8757_v59, 5  ;;  %v8830_v59 = vld [vmem:[%s8330_s23 + $0x8c] sm:$0x1] }
  0x84   : > { %v617_v36 = vrot.slane %v615_v41, 4  ;;  %v620_v4 = vrot.slane %v618_v42, 5  ;;  %v8820_v6 = vrot.slane %v624_v43, 5  ;;  %v630_v7 = vrot.slane %v628_v32, 4  ;;  %v8855_v32 = vld [vmem:[%s8330_s23 + $0xa0] sm:$0xf] }
  0x85   : > { %10983 = vst [vmem:[#allocation13_spill] sm:$0xff] %v8811_v1  ;;  %v8822_v26 = vcombine.low %v579_v22, %v589_v2  ;;  %v851_v49 = vsel %vm8359_vm4, %v6296_v11, %v850_v20  ;;  %v854_v16 = vsel %vm8359_vm4, %v852_v24, %v853_v53  ;;  %v6297_v50 = vrot.slane %v8751_v55, 9  ;;  %v8845_v22 = vld [vmem:[%s8330_s23 + $0x9c] sm:$0xf] }
  0x86   : > { %v598_v18 = vrot.slane %v597_v60, 4  ;;  %v608_v28 = vrot.slane %v607_v0, 4  ;;  %v612_v23 = vrot.slane %v610_v51, 5  ;;  %v860_v30 = vrot.slane %v325_v40, 5  ;;  %v8842_v40 = vld [vmem:[%s8330_s23 + $0x98] sm:$0x1] }
  0x87   : > { %10984 = vst [vmem:[#allocation14_spill] sm:$0xff] %v8822_v26  ;;  %v639_v20 = vshrl.u32 %v8815_v46, 16  ;;  %v642_v31 = vshll.u32 %v8815_v46, 16  ;;  %v648_v38 = vshll.u32 %v8818_v61, 16  ;;  %v652_v55 = vshrl.u32 %v8818_v61, 16 }
  0x88   : > { %1838 = vmatmul.mubr.bf16.gmra.mrb[24].mxu0 %v8625_v62  ;;  %v859_v11 = vrot.slane %v857_v3, 4  ;;  %v621_v41 = vor.u32 %v620_v4, %v617_v36  ;;  %v631_v42 = vor.u32 %v630_v7, %v8820_v6  ;;  %v634_v43 = vshll.u32 %v8830_v59, 16 }
  0x89   : > { %1999 = vmatmul.mubr.bf16.gmra.mrb[24].mxu1 %v8728_v21  ;;  %1845 = vmatprep.mubr.bf16.mxu0 %v8740_v14  ;;  %v8848_v24 = vcombine.low %v851_v49, %v854_v16  ;;  %v8852_v53 = vcombine.low %v8777_v15, %v8780_v10  ;;  %v603_v2 = vsel %vm8373_vm5, %v598_v18, %v8790_v37  ;;  %v864_v51 = vrot.slane %v8780_v10, 5 }
  0x8a   : > { %2006 = vmatprep.mubr.bf16.mxu1 %v8732_v25  ;;  %v613_v60 = vsel %vm8373_vm5, %v608_v28, %v612_v23  ;;  %v858_v0 = vsel %vm8359_vm4, %v6297_v50, %v857_v3  ;;  %v641_v36 = vrot.slane %v639_v20, 4  ;;  %v644_v4 = vrot.slane %v642_v31, 5  ;;  %v8875_v50 = vld [vmem:[%s8330_s23 + $0xa8] sm:$0xf]  ;;  %v8882_v31 = vld [vmem:[%s8330_s23 + $0xac] sm:$0xf] }
  0x8b   : > { %10985 = vst [vmem:[#allocation15_spill] sm:$0xff] %v8848_v24  ;;  %v8865_v7 = vrot.slane %v648_v38, 5  ;;  %v654_v49 = vrot.slane %v652_v55, 4  ;;  %v861_v16 = vsel %vm8359_vm4, %v859_v11, %v860_v30  ;;  %v632_v37 = vrot.slane %v631_v42, 4  ;;  %v8888_v42 = vld [vmem:[%s8330_s23 + $0xa4] sm:$0x1] }
  0x8c   : > { %v636_v18 = vrot.slane %v634_v43, 5  ;;  %v658_v28 = vshll.u32 %v8842_v40, 16  ;;  %v663_v3 = vshrl.u32 %v8845_v22, 16  ;;  %v666_v10 = vshll.u32 %v8845_v22, 16 }
  0x8d   : > { %v6298_v23 = vrot.slane %v8777_v15, 9  ;;  %v672_v30 = vshll.u32 %v8855_v32, 16  ;;  %v676_v20 = vshrl.u32 %v8855_v32, 16  ;;  %v866_v38 = vrot.slane %v864_v51, 4 }
  0x8e   : > { %v867_v55 = vrot.slane %v8830_v59, 5  ;;  %v645_v11 = vor.u32 %v644_v4, %v641_v36  ;;  %v8891_v43 = vcombine.low %v858_v0, %v861_v16  ;;  %v660_v59 = vrot.slane %v658_v28, 5 }
  0x8f   : > { %v871_v36 = vrot.slane %v8818_v61, 5  ;;  %v665_v4 = vrot.slane %v663_v3, 4  ;;  %v8904_v0 = vrot.slane %v672_v30, 5  ;;  %v678_v16 = vrot.slane %v676_v20, 4 }
  0x90   : > { %1846 = vmatmul.mubr.bf16.gmra.mrb[28].mxu0 %v8673_v35  ;;  %10987 = vst [vmem:[#allocation17_spill] sm:$0xff] %v8891_v43  ;;  %v865_v28 = vsel %vm8359_vm4, %v6298_v23, %v864_v51  ;;  %v682_v3 = vshll.u32 %v8888_v42, 16 }
  0x91   : > { %2007 = vmatmul.mubr.bf16.gmra.mrb[28].mxu1 %v8754_v57  ;;  %1853 = vmatprep.mubr.bf16.mxu0 %v8787_v27 }
  0x92   : > { %2014 = vmatprep.mubr.bf16.mxu1 %v8774_v9 }
  0x98   : > { %1854 = vmatmul.mubr.bf16.gmra.mrb[32].mxu0 %v8732_v25 }
  0x99   : > { %2015 = vmatmul.mubr.bf16.gmra.mrb[32].mxu1 %v8793_v39  ;;  %1861 = vmatprep.mubr.bf16.mxu0 %v8822_v26  ;;  %v622_v39 = vrot.slane %v621_v41, 4  ;;  %v8869_v26 = vcombine.low %v603_v2, %v613_v60  ;;  %v655_v41 = vor.u32 %v654_v49, %v8865_v7  ;;  %v637_v2 = vsel %vm8373_vm5, %v632_v37, %v636_v18 }
  0x9a   : > { %2022 = vmatprep.mubr.bf16.mxu1 %v8811_v1  ;;  %v8900_v60 = vcombine.low %v8815_v46, %v8818_v61  ;;  %v668_v49 = vrot.slane %v666_v10, 5  ;;  %v696_v18 = vshll.u32 %v8882_v31, 16  ;;  %v868_v61 = vsel %vm8359_vm4, %v866_v38, %v867_v55 }
  0x9b   : > { %10986 = vst [vmem:[#allocation16_spill] sm:$0xff] %v8869_v26  ;;  %v627_v15 = vsel %vm8373_vm5, %v622_v39, %v8820_v6  ;;  %v690_v39 = vshll.u32 %v8875_v50, 16  ;;  %v646_v6 = vrot.slane %v645_v11, 4  ;;  %v656_v37 = vrot.slane %v655_v41, 4 }
  0x9c   : > { %v878_v10 = vrot.slane %v8855_v32, 5  ;;  %v8916_v30 = vcombine.low %v627_v15, %v637_v2  ;;  %v669_v20 = vor.u32 %v668_v49, %v665_v4  ;;  %v8920_v51 = vrot.slane %v696_v18, 5  ;;  %v8928_v2 = vld [vmem:[%s8330_s23 + $0xb0] sm:$0x1] }
  0x9d   : > { %v692_v41 = vrot.slane %v690_v39, 5  ;;  %v8923_v38 = vcombine.low %v865_v28, %v868_v61  ;;  %v6299_v55 = vrot.slane %v8815_v46, 9  ;;  %v874_v15 = vrot.slane %v8842_v40, 5  ;;  %v8940_v39 = vld [vmem:[%s8330_s23 + $0xb8] sm:$0xf] }
  0x9e   : > { %10988 = vst [vmem:[#allocation18_spill] sm:$0xff] %v8916_v30  ;;  %v661_v4 = vsel %vm8373_vm5, %v656_v37, %v660_v59  ;;  %v684_v49 = vrot.slane %v682_v3, 5  ;;  %v670_v46 = vrot.slane %v669_v20, 4  ;;  %v6300_v40 = vrot.slane %v8845_v22, 9 }
  0x9f   : > { %v881_v18 = vrot.slane %v8888_v42, 5  ;;  %v706_v59 = vshll.u32 %v8928_v2, 16  ;;  %v724_v42 = vshrl.u32 %v8940_v39, 16 }
  0xa0   : > { %1862 = vmatmul.mubr.bf16.gmra.mrb[36].mxu0 %v8774_v9  ;;  %v700_v9 = vshrl.u32 %v8882_v31, 16 }
  0xa1   : > { %2023 = vmatmul.mubr.bf16.gmra.mrb[36].mxu1 %v8848_v24  ;;  %1869 = vmatprep.mubr.bf16.mxu0 %v8869_v26  ;;  %v687_v24 = vshrl.u32 %v8875_v50, 16  ;;  %v679_v26 = vor.u32 %v678_v16, %v8904_v0  ;;  %v8937_v16 = vld [vmem:[%s8330_s23 + $0xb4] sm:$0xf]  ;;  %v726_v57 = vrot.slane %v724_v42, 4 }
  0xa2   : > { %2030 = vmatprep.mubr.bf16.mxu1 %v8852_v53  ;;  %v702_v23 = vrot.slane %v700_v9, 4  ;;  %v873_v9 = vrot.slane %v871_v36, 4  ;;  %v711_v37 = vshrl.u32 %v8937_v16, 16  ;;  %v714_v3 = vshll.u32 %v8937_v16, 16 }
  0xa3   : > { %v689_v11 = vrot.slane %v687_v24, 4  ;;  %v651_v24 = vsel %vm8373_vm5, %v646_v6, %v8865_v7  ;;  %v680_v61 = vrot.slane %v679_v26, 4  ;;  %v8949_v6 = vcombine.low %v8845_v22, %v8855_v32 }
  0xa4   : > { %v703_v7 = vor.u32 %v702_v23, %v8920_v51  ;;  %v8953_v20 = vcombine.low %v651_v24, %v661_v4  ;;  %v888_v23 = vrot.slane %v8928_v2, 5  ;;  %v708_v32 = vrot.slane %v706_v59, 5 }
  0xa5   : > { %v693_v28 = vor.u32 %v692_v41, %v689_v11  ;;  %v6301_v11 = vrot.slane %v8875_v50, 9  ;;  %v885_v41 = vrot.slane %v8882_v31, 5  ;;  %v872_v24 = vsel %vm8359_vm4, %v6299_v55, %v871_v36 }
  0xa6   : > { %v704_v22 = vrot.slane %v703_v7, 4  ;;  %v875_v4 = vsel %vm8359_vm4, %v873_v9, %v874_v15  ;;  %v675_v7 = vsel %vm8373_vm5, %v670_v46, %v8904_v0  ;;  %v685_v36 = vsel %vm8373_vm5, %v680_v61, %v684_v49  ;;  %v340_v15 = vld [vmem:[%s8330_s23 + $0xbc] sm:$0x1] }
  0xa7   : > { %v694_v26 = vrot.slane %v693_v28, 4  ;;  %v713_v28 = vrot.slane %v711_v37, 4  ;;  %v8968_v2 = vcombine.low %v872_v24, %v875_v4  ;;  %v8977_v55 = vcombine.low %v8875_v50, %v8882_v31 }
  0xa8   : > { %1870 = vmatmul.mubr.bf16.gmra.mrb[40].mxu0 %v8811_v1  ;;  %v716_v1 = vrot.slane %v714_v3, 5  ;;  %v8980_v9 = vcombine.low %v675_v7, %v685_v36  ;;  %v887_v0 = vrot.slane %v885_v41, 4  ;;  %v730_v49 = vshll.u32 %v340_v15, 16  ;;  %v7862_v7 = vld [vmem:[%s10917_s1 + $0x208] sm:$0xff]   ;;  %v7863_v36 = vld [vmem:[%s10917_s1 + $0x210] sm:$0xff]  }
  0xa9   : > { %2031 = vmatmul.mubr.bf16.gmra.mrb[40].mxu1 %v8891_v43  ;;  %1877 = vmatprep.mubr.bf16.mxu0 %v8916_v30  ;;  %v880_v43 = vrot.slane %v878_v10, 4  ;;  %v720_v30 = vshll.u32 %v8940_v39, 16  ;;  %v699_v31 = vsel %vm8373_vm5, %v694_v26, %v8920_v51  ;;  %v886_v61 = vsel %vm8359_vm4, %v6301_v11, %v885_v41  ;;  %v9015_v26 = vld [vmem:[%s8330_s23 + $0xc4] sm:$0xf] }
  0xaa   : > { %2038 = vmatprep.mubr.bf16.mxu1 %v8900_v60  ;;  %v889_v37 = vsel %vm8359_vm4, %v887_v0, %v888_v23  ;;  %v732_v42 = vrot.slane %v730_v49, 5  ;;  %v6302_v41 = vrot.slane %v8937_v16, 9 }
  0xab   : > { %v722_v25 = vrot.slane %v720_v30, 5  ;;  %v879_v30 = vsel %vm8359_vm4, %v6300_v40, %v878_v10  ;;  %v882_v59 = vsel %vm8359_vm4, %v880_v43, %v881_v18  ;;  %v709_v10 = vsel %vm8373_vm5, %v704_v22, %v708_v32 }
  0xac   : > { %v8990_v50 = vcombine.low %v879_v30, %v882_v59  ;;  %v717_v43 = vor.u32 %v716_v1, %v713_v28  ;;  %v8999_v40 = vcombine.low %v8937_v16, %v8940_v39  ;;  %v9001_v18 = vcombine.low %v699_v31, %v709_v10 }
  0xad   : > { %v727_v46 = vor.u32 %v726_v57, %v722_v25  ;;  %v892_v1 = vrot.slane %v8940_v39, 5  ;;  %v9012_v57 = vld [vmem:[%s8330_s23 + $0xc0] sm:$0xf]  ;;  %v9018_v11 = vcombine.low %v886_v61, %v889_v37  ;;  %v895_v32 = vrot.slane %v340_v15, 5  ;;  %v10998_v15 = vld [vmem:[#allocation17_spill] sm:$0xff] }
  0xae   : > { %v718_v51 = vrot.slane %v717_v43, 4  ;;  %v9027_v24 = vcombine.low %v9012_v57, %v9015_v26  ;;  %v907_v30 = vshll.u32 %v9015_v26, 16  ;;  %v911_v59 = vshrl.u32 %v9015_v26, 16 }
  0xaf   : > { %v728_v3 = vrot.slane %v727_v46, 4  ;;  %v894_v22 = vrot.slane %v892_v1, 4  ;;  %v893_v16 = vsel %vm8359_vm4, %v6302_v41, %v892_v1 }
  0xb0   : > { %1878 = vmatmul.mubr.bf16.gmra.mrb[44].mxu0 %v8852_v53  ;;  %v723_v23 = vsel %vm8373_vm5, %v718_v51, %v722_v25  ;;  %v9115_v46 = vrot.slane %v907_v30, 5  ;;  %v913_v61 = vrot.slane %v911_v59, 4 }
  0xb1   : > { %2039 = vmatmul.mubr.bf16.gmra.mrb[44].mxu1 %v8923_v38  ;;  %1885 = vmatprep.mubr.bf16.mxu0 %v8953_v20  ;;  %v733_v39 = vsel %vm8373_vm5, %v728_v3, %v732_v42  ;;  %v896_v25 = vsel %vm8359_vm4, %v894_v22, %v895_v32  ;;  %v9118_v3 = vld [vmem:[%s8330_s23 + $0xc8] sm:$0x1] }
  0xb2   : > { %2046 = vmatprep.mubr.bf16.mxu1 %v8949_v6  ;;  %v9029_v4 = vcombine.low %v723_v23, %v733_v39  ;;  %v9039_v28 = vcombine.low %v893_v16, %v896_v25  ;;  %v9121_v23 = vld [vmem:[%s8330_s23 + $0xcc] sm:$0xf]  ;;  %v9124_v39 = vld [vmem:[%s8330_s23 + $0xd0] sm:$0xf]  ;;  %v914_v25 = vor.u32 %v913_v61, %v9115_v46 }
  0xb8   : > { %1886 = vmatmul.mubr.bf16.gmra.mrb[48].mxu0 %v8900_v60 }
  0xb9   : > { %2047 = vmatmul.mubr.bf16.gmra.mrb[48].mxu1 %v8968_v2  ;;  %1893 = vmatprep.mubr.bf16.mxu0 %v8980_v9 }
  0xba   : > { %2054 = vmatprep.mubr.bf16.mxu1 %v8977_v55 }
  0xc0   : > { %1894 = vmatmul.mubr.bf16.gmra.mrb[52].mxu0 %v8949_v6 }
  0xc1   : > { %2055 = vmatmul.mubr.bf16.gmra.mrb[52].mxu1 %v8990_v50  ;;  %1901 = vmatprep.mubr.bf16.mxu0 %v9001_v18 }
  0xc2   : > { %2062 = vmatprep.mubr.bf16.mxu1 %v8999_v40 }
  0xc8   : > { %1902 = vmatmul.mubr.bf16.gmra.mrb[56].mxu0 %v8977_v55 }
  0xc9   : > { %2063 = vmatmul.mubr.bf16.gmra.mrb[56].mxu1 %v9018_v11  ;;  %1909 = vmatprep.mubr.bf16.mxu0 %v9029_v4 }
  0xca   : > { %2070 = vmatprep.mubr.bf16.mxu1 %v9027_v24 }
  0xd0   : > { %1910 = vmatmul.mubr.bf16.gmra.mrb[60].mxu0 %v8999_v40 }
  0xd1   : > { %2071 = vmatmul.mubr.bf16.gmra.mrb[60].mxu1 %v9039_v28  ;;  %2111 = vmatprep.mubr.bf16.mxu0 %v8435_v45  ;;  %v7864_v45 = vld [vmem:[%s10917_s1 + $0x218] sm:$0xff]  }
  0xd2   : > { %2272 = vmatprep.mubr.bf16.mxu1 %v8476_v12 }
  0xd8   : > { %2112 = vmatmul.mubr.bf16.vlgmr.msra.gmra.mrb[64].mxu0 %v8433_v44  ;;  %v7866_v44 = vld [vmem:[%s10917_s1 + $0x228] sm:$0xff]  }
  0xd9   : > { %2273 = vmatmul.mubr.bf16.vlgmr.msra.gmra.mrb[64].mxu1 %v8398_v17  ;;  %7630 = vmatpush3.bf16.msra.mxu0 %v8712_v8  ;;  %v7865_v17 = vld [vmem:[%s10917_s1 + $0x220] sm:$0xff]   ;;  %v10996_v8 = vld [vmem:[#allocation13_spill] sm:$0xff] }
  0xda   : > { %2280 = vmatprep.mubr.bf16.mxu1 %v8543_v56  ;;  %2119 = vmatprep.mubr.bf16.mxu0 %v8478_v13 }
  0xdb   : > { %7631 = vmatprep.subr.bf16.mxu0 %v7862_v7 }
  0xdd   : > { %7632 = vmatpush3.bf16.msra.mxu0 %v7862_v7  ;;  %v917_v7 = vshll.u32 %v9118_v3, 16 }
  0xde   : > { %7633 = vmatprep.subr.bf16.mxu0 %v7863_v36 }
  0xe0   : > { %2120 = vmatmul.mubr.bf16.gmra.mrb[68].mxu0 %v8476_v12  ;;  %v7868_v12 = vld [vmem:[%s10917_s1 + $0x238] sm:$0xff]  }
  0xe1   : > { %2281 = vmatmul.mubr.bf16.gmra.mrb[68].mxu1 %v8439_v47  ;;  %2127 = vmatprep.mubr.bf16.mxu0 %v8533_v52  ;;  %v7867_v47 = vld [vmem:[%s10917_s1 + $0x230] sm:$0xff]  }
  0xe2   : > { %2288 = vmatprep.mubr.bf16.mxu1 %v8584_v29  ;;  %7634 = vmatpush3.bf16.msra.mxu0 %v7863_v36 }
  0xe3   : > { %7635 = vmatprep.subr.bf16.mxu0 %v7864_v45 }
  0xe6   : > { %7636 = vmatpush3.bf16.msra.mxu0 %v7864_v45  ;;  %v932_v45 = vshrl.u32 %v9121_v23, 16 }
  0xe7   : > { %7637 = vmatprep.subr.bf16.mxu0 %v7865_v17 }
  0xe8   : > { %2128 = vmatmul.mubr.bf16.gmra.mrb[72].mxu0 %v8543_v56  ;;  %v10991_v56 = vld [vmem:[#allocation14_spill] sm:$0xff]  ;;  %v934_v30 = vrot.slane %v932_v45, 4 }
  0xe9   : > { %2289 = vmatmul.mubr.bf16.gmra.mrb[72].mxu1 %v8488_v19  ;;  %2135 = vmatprep.mubr.bf16.mxu0 %v8596_v34  ;;  %v10989_v19 = vld [vmem:[#allocation10_spill] sm:$0xff] }
  0xea   : > { %2296 = vmatprep.mubr.bf16.mxu1 %v8636_v5  ;;  %7638 = vmatpush3.bf16.msra.mxu0 %v7865_v17  ;;  %v935_v17 = vshll.u32 %v9121_v23, 16 }
  0xeb   : > { %7639 = vmatprep.subr.bf16.mxu0 %v7866_v44 }
  0xec   : > { %v937_v59 = vrot.slane %v935_v17, 5 }
  0xee   : > { %7640 = vmatpush3.bf16.msra.mxu0 %v7866_v44  ;;  %v941_v44 = vshll.u32 %v9124_v39, 16 }
  0xef   : > { %7641 = vmatprep.subr.bf16.mxu0 %v7867_v47 }
  0xf0   : > { %2136 = vmatmul.mubr.bf16.gmra.mrb[76].mxu0 %v8584_v29  ;;  %v10992_v29 = vld [vmem:[#allocation12_spill] sm:$0xff] }
  0xf1   : > { %2297 = vmatmul.mubr.bf16.gmra.mrb[76].mxu1 %v8537_v54  ;;  %2143 = vmatprep.mubr.bf16.mxu0 %v8669_v33  ;;  %v10990_v54 = vld [vmem:[#allocation9_spill] sm:$0xff] }
  0xf2   : > { %2304 = vmatprep.mubr.bf16.mxu1 %v8695_v63  ;;  %7642 = vmatpush3.bf16.msra.mxu0 %v7867_v47 }
  0xf3   : > { %7643 = vmatprep.subr.bf16.mxu0 %v7868_v12 }
  0xf6   : > { %7644 = vmatpush3.bf16.msra.mxu0 %v7868_v12 }
  0xf8   : > { %2144 = vmatmul.mubr.bf16.gmra.mrb[80].mxu0 %v8636_v5  ;;  %v10994_v5 = vld [vmem:[#allocation16_spill] sm:$0xff] }
  0xf9   : > { %2305 = vmatmul.mubr.bf16.gmra.mrb[80].mxu1 %v8625_v62  ;;  %2151 = vmatprep.mubr.bf16.mxu0 %v8728_v21  ;;  %v10993_v62 = vld [vmem:[#allocation11_spill] sm:$0xff] }
  0xfa   : > { %2312 = vmatprep.mubr.bf16.mxu1 %v8740_v14 }
 0x100   : > { %2152 = vmatmul.mubr.bf16.gmra.mrb[84].mxu0 %v8695_v63  ;;  %v10997_v63 = vld [vmem:[#allocation18_spill] sm:$0xff] }
 0x101   : > { %2313 = vmatmul.mubr.bf16.gmra.mrb[84].mxu1 %v8673_v35  ;;  %2159 = vmatprep.mubr.bf16.mxu0 %v10989_v19  ;;  %v10995_v35 = vld [vmem:[#allocation15_spill] sm:$0xff] }
 0x102   : > { %2320 = vmatprep.mubr.bf16.mxu1 %v8787_v27 }
 0x108   : > { %2160 = vmatmul.mubr.bf16.gmra.mrb[88].mxu0 %v8740_v14  ;;  %v898_v14 = vshrl.u32 %v9012_v57, 16 }
 0x109   : > { %2321 = vmatmul.mubr.bf16.gmra.mrb[88].mxu1 %v10990_v54  ;;  %2167 = vmatprep.mubr.bf16.mxu0 %v10992_v29 }
 0x10a   : > { %2328 = vmatprep.mubr.bf16.mxu1 %v10991_v56 }
 0x110   : > { %2168 = vmatmul.mubr.bf16.gmra.mrb[92].mxu0 %v8787_v27  ;;  %v901_v27 = vshll.u32 %v9012_v57, 16 }
 0x111   : > { %2329 = vmatmul.mubr.bf16.gmra.mrb[92].mxu1 %v10993_v62  ;;  %2175 = vmatprep.mubr.bf16.mxu0 %v10995_v35 }
 0x112   : > { %2336 = vmatprep.mubr.bf16.mxu1 %v10994_v5  ;;  %v903_v49 = vrot.slane %v901_v27, 5 }
 0x118   : > { %2176 = vmatmul.mubr.bf16.gmra.mrb[96].mxu0 %v10991_v56 }
 0x119   : > { %2337 = vmatmul.mubr.bf16.gmra.mrb[96].mxu1 %v10996_v8  ;;  %2183 = vmatprep.mubr.bf16.mxu0 %v10998_v15 }
 0x11a   : > { %2344 = vmatprep.mubr.bf16.mxu1 %v10997_v63 }
 0x120   : > { %2184 = vmatmul.mubr.bf16.gmra.mrb[100].mxu0 %v10994_v5 }
 0x121   : > { %2345 = vmatmul.mubr.bf16.gmra.mrb[100].mxu1 %v8852_v53  ;;  %2191 = vmatprep.mubr.bf16.mxu0 %v8923_v38 }
 0x122   : > { %2352 = vmatprep.mubr.bf16.mxu1 %v8953_v20 }
 0x128   : > { %2192 = vmatmul.mubr.bf16.gmra.mrb[104].mxu0 %v10997_v63  ;;  %v919_v63 = vrot.slane %v917_v7, 5 }
 0x129   : > { %2353 = vmatmul.mubr.bf16.gmra.mrb[104].mxu1 %v8900_v60  ;;  %2199 = vmatprep.mubr.bf16.mxu0 %v8968_v2  ;;  %v900_v60 = vrot.slane %v898_v14, 4 }
 0x12a   : > { %2360 = vmatprep.mubr.bf16.mxu1 %v8980_v9 }
 0x12b   : > { %v6701_v31 = vpop.f32.mrb[0].mxu0  ;;  %v904_v32 = vor.u32 %v903_v49, %v900_v60 }
 0x12c   : > { %v6813_v53 = vpop.f32.mrb[0].mxu1  ;;  %v6702_v37 = vpop.f32.mrb[1].mxu0 }
 0x12d   : > { %v6814_v0 = vpop.f32.mrb[1].mxu1  ;;  %v6703_v42 = vadd.f32 %v6702_v37, %v6701_v31  ;;  %v6704_v1 = vpop.f32.mrb[2].mxu0  ;;  %v905_v8 = vrot.slane %v904_v32, 4 }
 0x12e   : > { %v6815_v10 = vadd.f32 %v6814_v0, %v6813_v53  ;;  %v6816_v43 = vpop.f32.mrb[2].mxu1  ;;  %v6705_v22 = vpop.f32.mrb[3].mxu0  ;;  %v943_v53 = vrot.slane %v941_v44, 5 }
 0x12f   : > { %v6817_v51 = vpop.f32.mrb[3].mxu1  ;;  %v6706_v16 = vadd.f32 %v6705_v22, %v6704_v1  ;;  %v910_v37 = vsel %vm8373_vm5, %v905_v8, %v9115_v46  ;;  %v938_v1 = vor.u32 %v937_v59, %v934_v30 }
 0x130   : > { %v6818_v41 = vadd.f32 %v6817_v51, %v6816_v43  ;;  %v9130_v36 = vadd.f32 %v6815_v10, %v6703_v42  ;;  %2200 = vmatmul.mubr.bf16.gmra.mrb[108].mxu0 %v8953_v20  ;;  %v915_v20 = vrot.slane %v914_v25, 4  ;;  %v9141_v10 = vld [vmem:[%s8330_s23 + $0xd4] sm:$0x1]  ;;  %v926_v25 = vrot.slane %v9015_v26, 5 }
 0x131   : > { %2361 = vmatmul.mubr.bf16.gmra.mrb[108].mxu1 %v8949_v6  ;;  %v945_v6 = vshrl.u32 %v9124_v39, 16  ;;  %2207 = vmatprep.mubr.bf16.mxu0 %v8990_v50  ;;  %v951_v22 = vshll.u32 %v9141_v10, 16  ;;  %v929_v26 = vrot.slane %v9118_v3, 5 }
 0x132   : > { %2368 = vmatprep.mubr.bf16.mxu1 %v9001_v18  ;;  %v9138_v12 = vadd.f32 %v6818_v41, %v6706_v16  ;;  %v920_v42 = vsel %vm8373_vm5, %v915_v20, %v919_v63  ;;  %v6303_v20 = vrot.slane %v9012_v57, 9  ;;  %v928_v63 = vrot.slane %v926_v25, 4 }
 0x133   : > { %v6707_v56 = vpop.f32.mrb[4].mxu0  ;;  %v947_v0 = vrot.slane %v945_v6, 4  ;;  %v6354_v17 = vcombine.low %v910_v37, %v920_v42  ;;  %v939_v6 = vrot.slane %v938_v1, 4 }
 0x134   : > { %v6819_v47 = vpop.f32.mrb[4].mxu1  ;;  %v6708_v14 = vpop.f32.mrb[5].mxu0  ;;  %v927_v3 = vsel %vm8359_vm4, %v6303_v20, %v926_v25 }
 0x135   : > { %v6820_v54 = vpop.f32.mrb[5].mxu1  ;;  %v6709_v60 = vadd.f32 %v6708_v14, %v6707_v56  ;;  %v6710_v49 = vpop.f32.mrb[6].mxu0  ;;  %v948_v41 = vor.u32 %v947_v0, %v943_v53  ;;  %v944_v30 = vsel %vm8373_vm5, %v939_v6, %v943_v53 }
 0x136   : > { %v6821_v62 = vadd.f32 %v6820_v54, %v6819_v47  ;;  %v6822_v5 = vpop.f32.mrb[6].mxu1  ;;  %v6711_v43 = vpop.f32.mrb[7].mxu0  ;;  %v953_v54 = vrot.slane %v951_v22, 5 }
 0x137   : > { %v6823_v27 = vpop.f32.mrb[7].mxu1  ;;  %v6712_v61 = vadd.f32 %v6711_v43, %v6710_v49  ;;  %v949_v47 = vrot.slane %v948_v41, 4 }
 0x138   : > { %v6824_v31 = vadd.f32 %v6823_v27, %v6822_v5  ;;  %v9148_v51 = vadd.f32 %v6821_v62, %v6709_v60  ;;  %2208 = vmatmul.mubr.bf16.gmra.mrb[112].mxu0 %v8980_v9  ;;  %v930_v60 = vsel %vm8359_vm4, %v928_v63, %v929_v26 }
 0x139   : > { %2369 = vmatmul.mubr.bf16.gmra.mrb[112].mxu1 %v8977_v55  ;;  %2215 = vmatprep.mubr.bf16.mxu0 %v9018_v11  ;;  %v954_v59 = vsel %vm8373_vm5, %v949_v47, %v953_v54  ;;  %v9175_v41 = vcombine.low %v927_v3, %v930_v60 }
 0x13a   : > { %2376 = vmatprep.mubr.bf16.mxu1 %v9029_v4  ;;  %v9155_v55 = vadd.f32 %v6824_v31, %v6712_v61  ;;  %v6357_v43 = vcombine.low %v944_v30, %v954_v59 }
 0x13b   : > { %v6713_v46 = vpop.f32.mrb[8].mxu0 }
 0x13c   : > { %v6825_v32 = vpop.f32.mrb[8].mxu1  ;;  %v6714_v9 = vpop.f32.mrb[9].mxu0 }
 0x13d   : > { %v6826_v16 = vpop.f32.mrb[9].mxu1  ;;  %v6715_v56 = vadd.f32 %v6714_v9, %v6713_v46  ;;  %v6716_v62 = vpop.f32.mrb[10].mxu0 }
 0x13e   : > { %v6827_v7 = vadd.f32 %v6826_v16, %v6825_v32  ;;  %v6828_v45 = vpop.f32.mrb[10].mxu1  ;;  %v6717_v8 = vpop.f32.mrb[11].mxu0 }
 0x13f   : > { %v6829_v44 = vpop.f32.mrb[11].mxu1  ;;  %v6718_v14 = vadd.f32 %v6717_v8, %v6716_v62 }
 0x140   : > { %v6830_v5 = vadd.f32 %v6829_v44, %v6828_v45  ;;  %v9161_v27 = vadd.f32 %v6827_v7, %v6715_v56  ;;  %2216 = vmatmul.mubr.bf16.gmra.mrb[116].mxu0 %v9001_v18  ;;  %v6356_v45 = vcombine.low %v9121_v23, %v9124_v39 }
 0x141   : > { %2377 = vmatmul.mubr.bf16.gmra.mrb[116].mxu1 %v8999_v40  ;;  %2223 = vmatprep.mubr.bf16.mxu0 %v9039_v28 }
 0x142   : > { %2384 = vmatprep.mubr.bf16.mxu1 %v6354_v17  ;;  %v9169_v40 = vadd.f32 %v6830_v5, %v6718_v14 }
 0x143   : > { %v6719_v49 = vpop.f32.mrb[12].mxu0 }
 0x144   : > { %v6831_v0 = vpop.f32.mrb[12].mxu1  ;;  %v6720_v53 = vpop.f32.mrb[13].mxu0 }
 0x145   : > { %v6832_v57 = vpop.f32.mrb[13].mxu1  ;;  %v6721_v37 = vadd.f32 %v6720_v53, %v6719_v49  ;;  %v6722_v42 = vpop.f32.mrb[14].mxu0 }
 0x146   : > { %v6833_v18 = vadd.f32 %v6832_v57, %v6831_v0  ;;  %v6834_v31 = vpop.f32.mrb[14].mxu1  ;;  %v6723_v22 = vpop.f32.mrb[15].mxu0 }
 0x147   : > { %v6835_v61 = vpop.f32.mrb[15].mxu1  ;;  %v6724_v32 = vadd.f32 %v6723_v22, %v6722_v42 }
 0x148   : > { %v6836_v1 = vadd.f32 %v6835_v61, %v6834_v31  ;;  %v9178_v16 = vadd.f32 %v6833_v18, %v6721_v37  ;;  %2224 = vmatmul.mubr.bf16.gmra.mrb[120].mxu0 %v9029_v4 }
 0x149   : > { %2385 = vmatmul.mubr.bf16.gmra.mrb[120].mxu1 %v9027_v24  ;;  %2231 = vmatprep.mubr.bf16.mxu0 %v9175_v41 }
 0x14a   : > { %2392 = vmatprep.mubr.bf16.mxu1 %v6357_v43  ;;  %v9182_v46 = vadd.f32 %v6836_v1, %v6724_v32 }
 0x14b   : > { %v6725_v9 = vpop.f32.mrb[16].mxu0 }
 0x14c   : > { %v6837_v25 = vpop.f32.mrb[16].mxu1  ;;  %v6726_v47 = vpop.f32.mrb[17].mxu0 }
 0x14d   : > { %v6838_v7 = vpop.f32.mrb[17].mxu1  ;;  %v6727_v54 = vadd.f32 %v6726_v47, %v6725_v9  ;;  %v6728_v56 = vpop.f32.mrb[18].mxu0  ;;  %v7871_v47 = vld [vmem:[#allocation3] sm:$0xff]  }
 0x14e   : > { %v6839_v44 = vadd.f32 %v6838_v7, %v6837_v25  ;;  %v6840_v6 = vpop.f32.mrb[18].mxu1  ;;  %v6729_v5 = vpop.f32.mrb[19].mxu0 }
 0x14f   : > { %v6841_v24 = vpop.f32.mrb[19].mxu1  ;;  %v6730_v4 = vadd.f32 %v6729_v5, %v6728_v56 }
 0x150   : > { %v6842_v62 = vadd.f32 %v6841_v24, %v6840_v6  ;;  %v9186_v8 = vadd.f32 %v6839_v44, %v6727_v54  ;;  %2232 = vmatmul.mubr.bf16.gmra.mrb[124].mxu0 %v6354_v17  ;;  %v7870_v6 = vld [vmem:[#allocation3 + $0x40] sm:$0xff]  }
 0x151   : > { %2393 = vmatmul.mubr.bf16.gmra.mrb[124].mxu1 %v6356_v45  ;;  %7645 = vmatprep.mubr.bf16.mxu0 %v8478_v13 }
 0x152   : > { %v9189_v63 = vadd.f32 %v6842_v62, %v6730_v4  ;;  %7157 = vmatprep.subr.bf16.mxu1 %v7870_v6 }
 0x153   : > { %v6731_v14 = vpop.f32.mrb[20].mxu0  ;;  %7158 = vmatpush3.bf16.msra.mxu1 %v7871_v47 }
 0x154   : > { %v6843_v20 = vpop.f32.mrb[20].mxu1  ;;  %v6732_v0 = vpop.f32.mrb[21].mxu0 }
 0x155   : > { %v6844_v26 = vpop.f32.mrb[21].mxu1  ;;  %v6733_v3 = vadd.f32 %v6732_v0, %v6731_v14  ;;  %v6734_v60 = vpop.f32.mrb[22].mxu0 }
 0x156   : > { %v6845_v30 = vadd.f32 %v6844_v26, %v6843_v20  ;;  %v6846_v59 = vpop.f32.mrb[22].mxu1  ;;  %v6735_v18 = vpop.f32.mrb[23].mxu0 }
 0x157   : > { %v6847_v57 = vpop.f32.mrb[23].mxu1  ;;  %v6736_v31 = vadd.f32 %v6735_v18, %v6734_v60 }
 0x158   : > { %v6848_v49 = vadd.f32 %v6847_v57, %v6846_v59  ;;  %v9191_v43 = vadd.f32 %v6845_v30, %v6733_v3  ;;  %7646 = vmatmul.mubr.bf16.vlgmr.msra.gmra.mrb[128].mxu0 %v8533_v52 }
 0x159   : > { %7649 = vmatprep.mubr.bf16.mxu0 %v8596_v34 }
 0x15a   : > { %v9195_v13 = vadd.f32 %v6848_v49, %v6736_v31 }
 0x15b   : > { %v6737_v61 = vpop.f32.mrb[24].mxu0 }
 0x15c   : > { %v6849_v17 = vpop.f32.mrb[24].mxu1  ;;  %v6738_v1 = vpop.f32.mrb[25].mxu0 }
 0x15d   : > { %v6850_v53 = vpop.f32.mrb[25].mxu1  ;;  %v6739_v32 = vadd.f32 %v6738_v1, %v6737_v61  ;;  %v6740_v25 = vpop.f32.mrb[26].mxu0 }
 0x15e   : > { %v6851_v37 = vadd.f32 %v6850_v53, %v6849_v17  ;;  %v6852_v42 = vpop.f32.mrb[26].mxu1  ;;  %v6741_v45 = vpop.f32.mrb[27].mxu0 }
 0x15f   : > { %v6853_v22 = vpop.f32.mrb[27].mxu1  ;;  %v6742_v9 = vadd.f32 %v6741_v45, %v6740_v25 }
 0x160   : > { %v6854_v7 = vadd.f32 %v6853_v22, %v6852_v42  ;;  %v9197_v44 = vadd.f32 %v6851_v37, %v6739_v32  ;;  %7650 = vmatmul.mubr.bf16.gmra.mrb[132].mxu0 %v8669_v33  ;;  %v7872_v22 = vld [vmem:[#allocation3 + $0x48] sm:$0xff]  }
 0x161   : > { %7653 = vmatprep.mubr.bf16.mxu0 %v8728_v21  ;;  %7159 = vmatprep.subr.bf16.mxu1 %v7872_v22  ;;  %v7873_v32 = vld [vmem:[#allocation3 + $0x8] sm:$0xff]  }
 0x162   : > { %v9201_v34 = vadd.f32 %v6854_v7, %v6742_v9  ;;  %7160 = vmatpush3.bf16.msra.mxu1 %v7873_v32 }
 0x163   : > { %v6743_v54 = vpop.f32.mrb[28].mxu0 }
 0x164   : > { %v6855_v52 = vpop.f32.mrb[28].mxu1  ;;  %v6744_v5 = vpop.f32.mrb[29].mxu0 }
 0x165   : > { %v6856_v24 = vpop.f32.mrb[29].mxu1  ;;  %v6745_v20 = vadd.f32 %v6744_v5, %v6743_v54  ;;  %v6746_v26 = vpop.f32.mrb[30].mxu0 }
 0x166   : > { %v6857_v56 = vadd.f32 %v6856_v24, %v6855_v52  ;;  %v6858_v62 = vpop.f32.mrb[30].mxu1  ;;  %v6747_v30 = vpop.f32.mrb[31].mxu0 }
 0x167   : > { %v6859_v4 = vpop.f32.mrb[31].mxu1  ;;  %v6748_v59 = vadd.f32 %v6747_v30, %v6746_v26 }
 0x168   : > { %v6860_v14 = vadd.f32 %v6859_v4, %v6858_v62  ;;  %v9203_v33 = vadd.f32 %v6857_v56, %v6745_v20  ;;  %7654 = vmatmul.mubr.bf16.gmra.mrb[136].mxu0 %v10989_v19 }
 0x169   : > { %7657 = vmatprep.mubr.bf16.mxu0 %v10992_v29 }
 0x16a   : > { %v9207_v0 = vadd.f32 %v6860_v14, %v6748_v59 }
 0x16b   : > { %v6749_v3 = vpop.f32.mrb[32].mxu0 }
 0x16c   : > { %v6861_v21 = vpop.f32.mrb[32].mxu1  ;;  %v6750_v18 = vpop.f32.mrb[33].mxu0 }
 0x16d   : > { %v6862_v57 = vpop.f32.mrb[33].mxu1  ;;  %v6751_v17 = vadd.f32 %v6750_v18, %v6749_v3  ;;  %v6752_v53 = vpop.f32.mrb[34].mxu0 }
 0x16e   : > { %v6863_v60 = vadd.f32 %v6862_v57, %v6861_v21  ;;  %v6864_v49 = vpop.f32.mrb[34].mxu1  ;;  %v6753_v37 = vpop.f32.mrb[35].mxu0 }
 0x16f   : > { %v6865_v31 = vpop.f32.mrb[35].mxu1  ;;  %v6754_v1 = vadd.f32 %v6753_v37, %v6752_v53  ;;  %v7875_v53 = vld [vmem:[#allocation3 + $0x10] sm:$0xff]  }
 0x170   : > { %v6866_v61 = vadd.f32 %v6865_v31, %v6864_v49  ;;  %v9209_v42 = vadd.f32 %v6863_v60, %v6751_v17  ;;  %7658 = vmatmul.mubr.bf16.gmra.mrb[140].mxu0 %v10995_v35  ;;  %v7874_v31 = vld [vmem:[#allocation3 + $0x50] sm:$0xff]  }
 0x171   : > { %7661 = vmatprep.mubr.bf16.mxu0 %v10998_v15  ;;  %7161 = vmatprep.subr.bf16.mxu1 %v7874_v31 }
 0x172   : > { %v9212_v19 = vadd.f32 %v6866_v61, %v6754_v1  ;;  %7162 = vmatpush3.bf16.msra.mxu1 %v7875_v53 }
 0x173   : > { %v6755_v7 = vpop.f32.mrb[36].mxu0 }
 0x174   : > { %v6867_v29 = vpop.f32.mrb[36].mxu1  ;;  %v6756_v6 = vpop.f32.mrb[37].mxu0 }
 0x175   : > { %v6868_v25 = vpop.f32.mrb[37].mxu1  ;;  %v6757_v47 = vadd.f32 %v6756_v6, %v6755_v7  ;;  %v6758_v24 = vpop.f32.mrb[38].mxu0  ;;  %v963_v6 = vrot.slane %v9141_v10, 5 }
 0x176   : > { %v6869_v45 = vadd.f32 %v6868_v25, %v6867_v29  ;;  %v6870_v9 = vpop.f32.mrb[38].mxu1  ;;  %v6759_v56 = vpop.f32.mrb[39].mxu0  ;;  %v6304_v25 = vrot.slane %v9121_v23, 9 }
 0x177   : > { %v6871_v52 = vpop.f32.mrb[39].mxu1  ;;  %v6760_v35 = vadd.f32 %v6759_v56, %v6758_v24 }
 0x178   : > { %v6872_v54 = vadd.f32 %v6871_v52, %v6870_v9  ;;  %v9215_v62 = vadd.f32 %v6869_v45, %v6757_v47  ;;  %7662 = vmatmul.mubr.bf16.gmra.mrb[144].mxu0 %v8923_v38 }
 0x179   : > { %7665 = vmatprep.mubr.bf16.mxu0 %v8968_v2  ;;  %v960_v2 = vrot.slane %v9124_v39, 5 }
 0x17a   : > { %v9218_v5 = vadd.f32 %v6872_v54, %v6760_v35 }
 0x17b   : > { %v6761_v20 = vpop.f32.mrb[40].mxu0  ;;  %v962_v9 = vrot.slane %v960_v2, 4  ;;  %v961_v23 = vsel %vm8359_vm4, %v6304_v25, %v960_v2 }
 0x17c   : > { %v6873_v15 = vpop.f32.mrb[40].mxu1  ;;  %v6762_v30 = vpop.f32.mrb[41].mxu0 }
 0x17d   : > { %v6874_v4 = vpop.f32.mrb[41].mxu1  ;;  %v6763_v21 = vadd.f32 %v6762_v30, %v6761_v20  ;;  %v6764_v57 = vpop.f32.mrb[42].mxu0  ;;  %v964_v54 = vsel %vm8359_vm4, %v962_v9, %v963_v6 }
 0x17e   : > { %v6875_v26 = vadd.f32 %v6874_v4, %v6873_v15  ;;  %v6876_v14 = vpop.f32.mrb[42].mxu1  ;;  %v6765_v60 = vpop.f32.mrb[43].mxu0 }
 0x17f   : > { %v6877_v59 = vpop.f32.mrb[43].mxu1  ;;  %v6766_v18 = vadd.f32 %v6765_v60, %v6764_v57  ;;  %v7876_v57 = vld [vmem:[#allocation3 + $0x58] sm:$0xff]  }
 0x180   : > { %v6878_v3 = vadd.f32 %v6877_v59, %v6876_v14  ;;  %v9221_v49 = vadd.f32 %v6875_v26, %v6763_v21  ;;  %7666 = vmatmul.mubr.bf16.gmra.mrb[148].mxu0 %v8990_v50  ;;  %v6358_v26 = vcombine.low %v961_v23, %v964_v54  ;;  %7163 = vmatprep.subr.bf16.mxu1 %v7876_v57 }
 0x181   : > { %7669 = vmatprep.mubr.bf16.mxu0 %v9018_v11 }
 0x182   : > { %v9224_v38 = vadd.f32 %v6878_v3, %v6766_v18  ;;  %v7877_v18 = vld [vmem:[#allocation3 + $0x18] sm:$0xff]  }
 0x183   : > { %v6767_v37 = vpop.f32.mrb[44].mxu0  ;;  %7164 = vmatpush3.bf16.msra.mxu1 %v7877_v18 }
 0x184   : > { %v6879_v17 = vpop.f32.mrb[44].mxu1  ;;  %v6768_v29 = vpop.f32.mrb[45].mxu0 }
 0x185   : > { %v6880_v61 = vpop.f32.mrb[45].mxu1  ;;  %v6769_v7 = vadd.f32 %v6768_v29, %v6767_v37  ;;  %v6770_v50 = vpop.f32.mrb[46].mxu0 }
 0x186   : > { %v6881_v1 = vadd.f32 %v6880_v61, %v6879_v17  ;;  %v6882_v22 = vpop.f32.mrb[46].mxu1  ;;  %v6771_v11 = vpop.f32.mrb[47].mxu0 }
 0x187   : > { %v6883_v32 = vpop.f32.mrb[47].mxu1  ;;  %v6772_v39 = vadd.f32 %v6771_v11, %v6770_v50 }
 0x188   : > { %v6884_v45 = vadd.f32 %v6883_v32, %v6882_v22  ;;  %v9230_v52 = vadd.f32 %v6881_v1, %v6769_v7  ;;  %7670 = vmatmul.mubr.bf16.gmra.mrb[152].mxu0 %v9039_v28 }
 0x189   : > { %7673 = vmatprep.mubr.bf16.mxu0 %v9175_v41 }
 0x18a   : > { %v9233_v47 = vadd.f32 %v6884_v45, %v6772_v39 }
 0x18b   : > { %v6773_v35 = vpop.f32.mrb[48].mxu0 }
 0x18c   : > { %v6885_v24 = vpop.f32.mrb[48].mxu1  ;;  %v6774_v4 = vpop.f32.mrb[49].mxu0 }
 0x18d   : > { %v6886_v56 = vpop.f32.mrb[49].mxu1  ;;  %v6775_v14 = vadd.f32 %v6774_v4, %v6773_v35  ;;  %v6776_v28 = vpop.f32.mrb[50].mxu0 }
 0x18e   : > { %v6887_v10 = vadd.f32 %v6886_v56, %v6885_v24  ;;  %v6888_v15 = vpop.f32.mrb[50].mxu1  ;;  %v6777_v59 = vpop.f32.mrb[51].mxu0 }
 0x18f   : > { %v6889_v20 = vpop.f32.mrb[51].mxu1  ;;  %v6778_v41 = vadd.f32 %v6777_v59, %v6776_v28  ;;  %v7879_v28 = vld [vmem:[#allocation3 + $0x20] sm:$0xff]  }
 0x190   : > { %v6890_v30 = vadd.f32 %v6889_v20, %v6888_v15  ;;  %v9240_v21 = vadd.f32 %v6887_v10, %v6775_v14  ;;  %7674 = vmatmul.mubr.bf16.gmra.mrb[156].mxu0 %v6358_v26  ;;  %v7878_v20 = vld [vmem:[#allocation3 + $0x60] sm:$0xff]  }
 0x191   : > { %7165 = vmatprep.subr.bf16.mxu1 %v7878_v20 }
 0x192   : > { %v9242_v3 = vadd.f32 %v6890_v30, %v6778_v41  ;;  %7166 = vmatpush3.bf16.msra.mxu1 %v7879_v28 }
 0x193   : > { %v6779_v17 = vpop.f32.mrb[52].mxu0 }
 0x194   : > { %v6891_v60 = vpop.f32.mrb[52].mxu1  ;;  %v6780_v61 = vpop.f32.mrb[53].mxu0 }
 0x195   : > { %v6892_v31 = vpop.f32.mrb[53].mxu1  ;;  %v6781_v1 = vadd.f32 %v6780_v61, %v6779_v17  ;;  %v6782_v22 = vpop.f32.mrb[54].mxu0 }
 0x196   : > { %v6893_v2 = vadd.f32 %v6892_v31, %v6891_v60  ;;  %v6894_v53 = vpop.f32.mrb[54].mxu1  ;;  %v6783_v32 = vpop.f32.mrb[55].mxu0 }
 0x197   : > { %v6895_v37 = vpop.f32.mrb[55].mxu1  ;;  %v6784_v7 = vadd.f32 %v6783_v32, %v6782_v22 }
 0x198   : > { %v6896_v29 = vadd.f32 %v6895_v37, %v6894_v53  ;;  %v9244_v25 = vadd.f32 %v6893_v2, %v6781_v1 }
 0x19a   : > { %v9246_v50 = vadd.f32 %v6896_v29, %v6784_v7 }
 0x19b   : > { %v6785_v6 = vpop.f32.mrb[56].mxu0 }
 0x19c   : > { %v6897_v45 = vpop.f32.mrb[56].mxu1  ;;  %v6786_v24 = vpop.f32.mrb[57].mxu0 }
 0x19d   : > { %v6898_v9 = vpop.f32.mrb[57].mxu1  ;;  %v6787_v54 = vadd.f32 %v6786_v24, %v6785_v6  ;;  %v6788_v56 = vpop.f32.mrb[58].mxu0 }
 0x19e   : > { %v6899_v11 = vadd.f32 %v6898_v9, %v6897_v45  ;;  %v6900_v39 = vpop.f32.mrb[58].mxu1  ;;  %v6789_v10 = vpop.f32.mrb[59].mxu0 }
 0x19f   : > { %v6901_v23 = vpop.f32.mrb[59].mxu1  ;;  %v6790_v4 = vadd.f32 %v6789_v10, %v6788_v56 }
 0x1a0   : > { %v6902_v35 = vadd.f32 %v6901_v23, %v6900_v39  ;;  %v9248_v15 = vadd.f32 %v6899_v11, %v6787_v54 }
 0x1a2   : > { %v9250_v26 = vadd.f32 %v6902_v35, %v6790_v4 }
 0x1a3   : > { %v6791_v59 = vpop.f32.mrb[60].mxu0 }
 0x1a4   : > { %v6903_v14 = vpop.f32.mrb[60].mxu1  ;;  %v6792_v60 = vpop.f32.mrb[61].mxu0 }
 0x1a5   : > { %v6904_v30 = vpop.f32.mrb[61].mxu1  ;;  %v6793_v31 = vadd.f32 %v6792_v60, %v6791_v59  ;;  %v6794_v17 = vpop.f32.mrb[62].mxu0 }
 0x1a6   : > { %v6905_v41 = vadd.f32 %v6904_v30, %v6903_v14  ;;  %v6906_v57 = vpop.f32.mrb[62].mxu1  ;;  %v6795_v53 = vpop.f32.mrb[63].mxu0 }
 0x1a7   : > { %v6907_v18 = vpop.f32.mrb[63].mxu1  ;;  %v6796_v37 = vadd.f32 %v6795_v53, %v6794_v17 }
 0x1a8   : > { %v6908_v2 = vadd.f32 %v6907_v18, %v6906_v57  ;;  %v9252_v61 = vadd.f32 %v6905_v41, %v6793_v31 }
 0x1aa   : > { %v9254_v1 = vadd.f32 %v6908_v2, %v6796_v37 }
 0x1ab   : > { %v6925_v32 = vpop.f32.mrb[64].mxu0 }
 0x1ac   : > { %v7037_v22 = vpop.f32.mrb[64].mxu1  ;;  %v6926_v9 = vpop.f32.mrb[65].mxu0 }
 0x1ad   : > { %v7038_v29 = vpop.f32.mrb[65].mxu1  ;;  %v6927_v11 = vadd.f32 %v6926_v9, %v6925_v32  ;;  %v6928_v39 = vpop.f32.mrb[66].mxu0 }
 0x1ae   : > { %v7039_v7 = vadd.f32 %v7038_v29, %v7037_v22  ;;  %v7040_v45 = vpop.f32.mrb[66].mxu1  ;;  %v6929_v23 = vpop.f32.mrb[67].mxu0 }
 0x1af   : > { %v7041_v6 = vpop.f32.mrb[67].mxu1  ;;  %v2114_v54 = vadd.f32 %v6927_v11, %v9130_v36  ;;  %v6930_v56 = vadd.f32 %v6929_v23, %v6928_v39 }
 0x1b0   : > { %v7042_v24 = vadd.f32 %v7041_v6, %v7040_v45 }
 0x1b1   : > { %v2117_v35 = vadd.f32 %v6930_v56, %v9138_v12  ;;  %v9258_v4 = vadd.f32 %v7039_v7, %v2114_v54 }
 0x1b3   : > { %v6931_v14 = vpop.f32.mrb[68].mxu0  ;;  %v9260_v59 = vadd.f32 %v7042_v24, %v2117_v35 }
 0x1b4   : > { %v7043_v10 = vpop.f32.mrb[68].mxu1  ;;  %v6932_v41 = vpop.f32.mrb[69].mxu0 }
 0x1b5   : > { %v7044_v20 = vpop.f32.mrb[69].mxu1  ;;  %v6933_v60 = vadd.f32 %v6932_v41, %v6931_v14  ;;  %v6934_v18 = vpop.f32.mrb[70].mxu0 }
 0x1b6   : > { %v7045_v28 = vadd.f32 %v7044_v20, %v7043_v10  ;;  %v7046_v30 = vpop.f32.mrb[70].mxu1  ;;  %v6935_v17 = vpop.f32.mrb[71].mxu0 }
 0x1b7   : > { %v7047_v57 = vpop.f32.mrb[71].mxu1  ;;  %v2122_v36 = vadd.f32 %v6933_v60, %v9148_v51  ;;  %v6936_v2 = vadd.f32 %v6935_v17, %v6934_v18  ;;  %v7882_v17 = vld [vmem:[#allocation3 + $0xc0] sm:$0xff]  }
 0x1b8   : > { %v7048_v31 = vadd.f32 %v7047_v57, %v7046_v30  ;;  %7269 = vmatprep.subr.bf16.mxu0 %v7882_v17 }
 0x1b9   : > { %v2125_v12 = vadd.f32 %v6936_v2, %v9155_v55  ;;  %v9264_v37 = vadd.f32 %v7045_v28, %v2122_v36 }
 0x1bb   : > { %v6937_v29 = vpop.f32.mrb[72].mxu0  ;;  %v9266_v6 = vadd.f32 %v7048_v31, %v2125_v12 }
 0x1bc   : > { %v7049_v53 = vpop.f32.mrb[72].mxu1  ;;  %v6938_v45 = vpop.f32.mrb[73].mxu0 }
 0x1bd   : > { %v7050_v22 = vpop.f32.mrb[73].mxu1  ;;  %v6939_v11 = vadd.f32 %v6938_v45, %v6937_v29  ;;  %v6940_v39 = vpop.f32.mrb[74].mxu0  ;;  %v7884_v29 = vld [vmem:[#allocation3 + $0xc8] sm:$0xff]  }
 0x1be   : > { %v7051_v32 = vadd.f32 %v7050_v22, %v7049_v53  ;;  %v7052_v7 = vpop.f32.mrb[74].mxu1  ;;  %v6941_v23 = vpop.f32.mrb[75].mxu0 }
 0x1bf   : > { %v7053_v9 = vpop.f32.mrb[75].mxu1  ;;  %v2130_v51 = vadd.f32 %v6939_v11, %v9161_v27  ;;  %v6942_v54 = vadd.f32 %v6941_v23, %v6940_v39  ;;  %v7883_v27 = vld [vmem:[#allocation3 + $0x80] sm:$0xff]  }
 0x1c0   : > { %v7054_v24 = vadd.f32 %v7053_v9, %v7052_v7  ;;  %7270 = vmatpush3.bf16.msra.mxu0 %v7883_v27  ;;  %v7886_v7 = vld [vmem:[#allocation3 + $0x88] sm:$0xff]  }
 0x1c1   : > { %v2133_v55 = vadd.f32 %v6942_v54, %v9169_v40  ;;  %v9270_v35 = vadd.f32 %v7051_v32, %v2130_v51  ;;  %7271 = vmatprep.subr.bf16.mxu0 %v7884_v29 }
 0x1c3   : > { %v6943_v20 = vpop.f32.mrb[76].mxu0  ;;  %v9272_v30 = vadd.f32 %v7054_v24, %v2133_v55 }
 0x1c4   : > { %v7055_v56 = vpop.f32.mrb[76].mxu1  ;;  %v6944_v41 = vpop.f32.mrb[77].mxu0  ;;  %7272 = vmatpush3.bf16.msra.mxu0 %v7886_v7 }
 0x1c5   : > { %v7056_v10 = vpop.f32.mrb[77].mxu1  ;;  %v6945_v60 = vadd.f32 %v6944_v41, %v6943_v20  ;;  %v6946_v18 = vpop.f32.mrb[78].mxu0 }
 0x1c6   : > { %v7057_v14 = vadd.f32 %v7056_v10, %v7055_v56  ;;  %v7058_v28 = vpop.f32.mrb[78].mxu1  ;;  %v6947_v36 = vpop.f32.mrb[79].mxu0 }
 0x1c7   : > { %v7059_v57 = vpop.f32.mrb[79].mxu1  ;;  %v2138_v2 = vadd.f32 %v6945_v60, %v9178_v16  ;;  %v6948_v40 = vadd.f32 %v6947_v36, %v6946_v18  ;;  %v7880_v16 = vld [vmem:[#allocation3 + $0x68] sm:$0xff]   ;;  %v7889_v18 = vld [vmem:[#allocation3 + $0x90] sm:$0xff]  }
 0x1c8   : > { %v7060_v31 = vadd.f32 %v7059_v57, %v7058_v28  ;;  %7167 = vmatprep.subr.bf16.mxu1 %v7880_v16  ;;  %v7888_v57 = vld [vmem:[#allocation3 + $0xd0] sm:$0xff]  }
 0x1c9   : > { %v2141_v12 = vadd.f32 %v6948_v40, %v9182_v46  ;;  %v9276_v22 = vadd.f32 %v7057_v14, %v2138_v2  ;;  %v7881_v46 = vld [vmem:[#allocation3 + $0x28] sm:$0xff]   ;;  %7273 = vmatprep.subr.bf16.mxu0 %v7888_v57  ;;  %v7892_v57 = vld [vmem:[#allocation3 + $0xe0] sm:$0xff]  }
 0x1ca   : > { %7168 = vmatpush3.bf16.msra.mxu1 %v7881_v46  ;;  %7274 = vmatpush3.bf16.msra.mxu0 %v7889_v18 }
 0x1cb   : > { %v6949_v45 = vpop.f32.mrb[80].mxu0  ;;  %v9278_v39 = vadd.f32 %v7060_v31, %v2141_v12 }
 0x1cc   : > { %v7061_v53 = vpop.f32.mrb[80].mxu1  ;;  %v6950_v24 = vpop.f32.mrb[81].mxu0 }
 0x1cd   : > { %v7062_v32 = vpop.f32.mrb[81].mxu1  ;;  %v6951_v51 = vadd.f32 %v6950_v24, %v6949_v45  ;;  %v6952_v54 = vpop.f32.mrb[82].mxu0  ;;  %v7890_v24 = vld [vmem:[#allocation3 + $0xd8] sm:$0xff]  }
 0x1ce   : > { %v7063_v9 = vadd.f32 %v7062_v32, %v7061_v53  ;;  %v7064_v11 = vpop.f32.mrb[82].mxu1  ;;  %v6953_v56 = vpop.f32.mrb[83].mxu0  ;;  %7275 = vmatprep.subr.bf16.mxu0 %v7890_v24 }
 0x1cf   : > { %v7065_v23 = vpop.f32.mrb[83].mxu1  ;;  %v2146_v10 = vadd.f32 %v6951_v51, %v9186_v8  ;;  %v6954_v20 = vadd.f32 %v6953_v56, %v6952_v54  ;;  %v7891_v56 = vld [vmem:[#allocation3 + $0x98] sm:$0xff]  }
 0x1d0   : > { %v7066_v55 = vadd.f32 %v7065_v23, %v7064_v11  ;;  %7276 = vmatpush3.bf16.msra.mxu0 %v7891_v56 }
 0x1d1   : > { %v2149_v14 = vadd.f32 %v6954_v20, %v9189_v63  ;;  %v9282_v41 = vadd.f32 %v7063_v9, %v2146_v10  ;;  %7277 = vmatprep.subr.bf16.mxu0 %v7892_v57 }
 0x1d3   : > { %v6955_v31 = vpop.f32.mrb[84].mxu0  ;;  %v9284_v27 = vadd.f32 %v7066_v55, %v2149_v14 }
 0x1d4   : > { %v7067_v28 = vpop.f32.mrb[84].mxu1  ;;  %v6956_v2 = vpop.f32.mrb[85].mxu0 }
 0x1d5   : > { %v7068_v60 = vpop.f32.mrb[85].mxu1  ;;  %v6957_v8 = vadd.f32 %v6956_v2, %v6955_v31  ;;  %v6958_v12 = vpop.f32.mrb[86].mxu0  ;;  %v7885_v2 = vld [vmem:[#allocation3 + $0x70] sm:$0xff]  }
 0x1d6   : > { %v7069_v17 = vadd.f32 %v7068_v60, %v7067_v28  ;;  %v7070_v36 = vpop.f32.mrb[86].mxu1  ;;  %v6959_v29 = vpop.f32.mrb[87].mxu0  ;;  %v7893_v60 = vld [vmem:[#allocation3 + $0xa0] sm:$0xff]   ;;  %7169 = vmatprep.subr.bf16.mxu1 %v7885_v2 }
 0x1d7   : > { %v7071_v40 = vpop.f32.mrb[87].mxu1  ;;  %v2154_v63 = vadd.f32 %v6957_v8, %v9191_v43  ;;  %v6960_v32 = vadd.f32 %v6959_v29, %v6958_v12  ;;  %7278 = vmatpush3.bf16.msra.mxu0 %v7893_v60 }
 0x1d8   : > { %v7072_v53 = vadd.f32 %v7071_v40, %v7070_v36 }
 0x1d9   : > { %v2157_v7 = vadd.f32 %v6960_v32, %v9195_v13  ;;  %v9288_v9 = vadd.f32 %v7069_v17, %v2154_v63 }
 0x1db   : > { %v6961_v23 = vpop.f32.mrb[88].mxu0  ;;  %v9290_v54 = vadd.f32 %v7072_v53, %v2157_v7 }
 0x1dc   : > { %v7073_v45 = vpop.f32.mrb[88].mxu1  ;;  %v6962_v55 = vpop.f32.mrb[89].mxu0 }
 0x1dd   : > { %v7074_v11 = vpop.f32.mrb[89].mxu1  ;;  %v6963_v10 = vadd.f32 %v6962_v55, %v6961_v23  ;;  %v6964_v20 = vpop.f32.mrb[90].mxu0  ;;  %v7887_v23 = vld [vmem:[#allocation3 + $0x30] sm:$0xff]  }
 0x1de   : > { %v7075_v16 = vadd.f32 %v7074_v11, %v7073_v45  ;;  %v7076_v51 = vpop.f32.mrb[90].mxu1  ;;  %v6965_v14 = vpop.f32.mrb[91].mxu0  ;;  %v7894_v45 = vld [vmem:[#allocation3 + $0xe8] sm:$0xff]   ;;  %7170 = vmatpush3.bf16.msra.mxu1 %v7887_v23 }
 0x1df   : > { %v7077_v46 = vpop.f32.mrb[91].mxu1  ;;  %v2162_v13 = vadd.f32 %v6963_v10, %v9197_v44  ;;  %v6966_v28 = vadd.f32 %v6965_v14, %v6964_v20  ;;  %7279 = vmatprep.subr.bf16.mxu0 %v7894_v45 }
 0x1e0   : > { %v7078_v43 = vadd.f32 %v7077_v46, %v7076_v51 }
 0x1e1   : > { %v2165_v18 = vadd.f32 %v6966_v28, %v9201_v34  ;;  %v9294_v17 = vadd.f32 %v7075_v16, %v2162_v13  ;;  %v7896_v28 = vld [vmem:[#allocation3 + $0xa8] sm:$0xff]  }
 0x1e2   : > { %7280 = vmatpush3.bf16.msra.mxu0 %v7896_v28 }
 0x1e3   : > { %v6967_v40 = vpop.f32.mrb[92].mxu0  ;;  %v9296_v53 = vadd.f32 %v7078_v43, %v2165_v18 }
 0x1e4   : > { %v7079_v31 = vpop.f32.mrb[92].mxu1  ;;  %v6968_v29 = vpop.f32.mrb[93].mxu0 }
 0x1e5   : > { %v7080_v36 = vpop.f32.mrb[93].mxu1  ;;  %v6969_v44 = vadd.f32 %v6968_v29, %v6967_v40  ;;  %v6970_v32 = vpop.f32.mrb[94].mxu0 }
 0x1e6   : > { %v7081_v8 = vadd.f32 %v7080_v36, %v7079_v31  ;;  %v7082_v12 = vpop.f32.mrb[94].mxu1  ;;  %v6971_v34 = vpop.f32.mrb[95].mxu0 }
 0x1e7   : > { %v7083_v63 = vpop.f32.mrb[95].mxu1  ;;  %v2170_v11 = vadd.f32 %v6969_v44, %v9203_v33  ;;  %v6972_v24 = vadd.f32 %v6971_v34, %v6970_v32  ;;  %v7898_v32 = vld [vmem:[#allocation3 + $0xf0] sm:$0xff]  }
 0x1e8   : > { %v7084_v7 = vadd.f32 %v7083_v63, %v7082_v12  ;;  %v7899_v34 = vld [vmem:[#allocation3 + $0xb0] sm:$0xff]   ;;  %7281 = vmatprep.subr.bf16.mxu0 %v7898_v32 }
 0x1e9   : > { %v2173_v16 = vadd.f32 %v6972_v24, %v9207_v0  ;;  %v9300_v55 = vadd.f32 %v7081_v8, %v2170_v11  ;;  %7282 = vmatpush3.bf16.msra.mxu0 %v7899_v34 }
 0x1eb   : > { %v6973_v56 = vpop.f32.mrb[96].mxu0  ;;  %v9302_v43 = vadd.f32 %v7084_v7, %v2173_v16 }
 0x1ec   : > { %v7085_v51 = vpop.f32.mrb[96].mxu1  ;;  %v6974_v14 = vpop.f32.mrb[97].mxu0 }
 0x1ed   : > { %v7086_v46 = vpop.f32.mrb[97].mxu1  ;;  %v6975_v57 = vadd.f32 %v6974_v14, %v6973_v56  ;;  %v6976_v33 = vpop.f32.mrb[98].mxu0 }
 0x1ee   : > { %v7087_v10 = vadd.f32 %v7086_v46, %v7085_v51  ;;  %v7088_v20 = vpop.f32.mrb[98].mxu1  ;;  %v6977_v18 = vpop.f32.mrb[99].mxu0  ;;  %v7900_v51 = vld [vmem:[#allocation3 + $0xf8] sm:$0xff]  }
 0x1ef   : > { %v7089_v13 = vpop.f32.mrb[99].mxu1  ;;  %v2178_v0 = vadd.f32 %v6975_v57, %v9209_v42  ;;  %v6978_v31 = vadd.f32 %v6977_v18, %v6976_v33  ;;  %v7895_v46 = vld [vmem:[#allocation3 + $0x78] sm:$0xff]   ;;  %7283 = vmatprep.subr.bf16.mxu0 %v7900_v51 }
 0x1f0   : > { %v7090_v60 = vadd.f32 %v7089_v13, %v7088_v20  ;;  %7171 = vmatprep.subr.bf16.mxu1 %v7895_v46 }
 0x1f1   : > { %v2181_v36 = vadd.f32 %v6978_v31, %v9212_v19  ;;  %v9306_v40 = vadd.f32 %v7087_v10, %v2178_v0 }
 0x1f3   : > { %v6979_v12 = vpop.f32.mrb[100].mxu0  ;;  %v9308_v44 = vadd.f32 %v7090_v60, %v2181_v36  ;;  %v7897_v36 = vld [vmem:[#allocation3 + $0x38] sm:$0xff]  }
 0x1f4   : > { %v7091_v2 = vpop.f32.mrb[100].mxu1  ;;  %v6980_v7 = vpop.f32.mrb[101].mxu0  ;;  %7172 = vmatpush3.bf16.msra.mxu1 %v7897_v36 }
 0x1f5   : > { %v7092_v8 = vpop.f32.mrb[101].mxu1  ;;  %v6981_v11 = vadd.f32 %v6980_v7, %v6979_v12  ;;  %v6982_v24 = vpop.f32.mrb[102].mxu0 }
 0x1f6   : > { %v7093_v29 = vadd.f32 %v7092_v8, %v7091_v2  ;;  %v7094_v63 = vpop.f32.mrb[102].mxu1  ;;  %v6983_v42 = vpop.f32.mrb[103].mxu0 }
 0x1f7   : > { %v7095_v45 = vpop.f32.mrb[103].mxu1  ;;  %v2186_v19 = vadd.f32 %v6981_v11, %v9215_v62  ;;  %v6984_v16 = vadd.f32 %v6983_v42, %v6982_v24 }
 0x1f8   : > { %v7096_v23 = vadd.f32 %v7095_v45, %v7094_v63 }
 0x1f9   : > { %v2189_v56 = vadd.f32 %v6984_v16, %v9218_v5  ;;  %v9312_v20 = vadd.f32 %v7093_v29, %v2186_v19 }
 0x1fb   : > { %v6985_v13 = vpop.f32.mrb[104].mxu0  ;;  %v9314_v33 = vadd.f32 %v7096_v23, %v2189_v56  ;;  %v7902_v56 = vld [vmem:[#allocation3 + $0xb8] sm:$0xff]  }
 0x1fc   : > { %v7097_v10 = vpop.f32.mrb[104].mxu1  ;;  %v6986_v60 = vpop.f32.mrb[105].mxu0  ;;  %7284 = vmatpush3.bf16.msra.mxu0 %v7902_v56 }
 0x1fd   : > { %v7098_v14 = vpop.f32.mrb[105].mxu1  ;;  %v6987_v0 = vadd.f32 %v6986_v60, %v6985_v13  ;;  %v6988_v62 = vpop.f32.mrb[106].mxu0 }
 0x1fe   : > { %v7099_v28 = vadd.f32 %v7098_v14, %v7097_v10  ;;  %v7100_v57 = vpop.f32.mrb[106].mxu1  ;;  %v6989_v2 = vpop.f32.mrb[107].mxu0 }
 0x1ff   : > { %v7101_v18 = vpop.f32.mrb[107].mxu1  ;;  %v2194_v5 = vadd.f32 %v6987_v0, %v9221_v49  ;;  %v6990_v8 = vadd.f32 %v6989_v2, %v6988_v62 }
 0x200   : > { %v7102_v31 = vadd.f32 %v7101_v18, %v7100_v57 }
 0x201   : > { %v2197_v12 = vadd.f32 %v6990_v8, %v9224_v38  ;;  %v9318_v63 = vadd.f32 %v7099_v28, %v2194_v5 }
 0x203   : > { %v6991_v7 = vpop.f32.mrb[108].mxu0  ;;  %v9320_v11 = vadd.f32 %v7102_v31, %v2197_v12 }
 0x204   : > { %v7103_v29 = vpop.f32.mrb[108].mxu1  ;;  %v6992_v24 = vpop.f32.mrb[109].mxu0 }
 0x205   : > { %v7104_v32 = vpop.f32.mrb[109].mxu1  ;;  %v6993_v42 = vadd.f32 %v6992_v24, %v6991_v7  ;;  %v6994_v19 = vpop.f32.mrb[110].mxu0 }
 0x206   : > { %v7105_v45 = vadd.f32 %v7104_v32, %v7103_v29  ;;  %v7106_v34 = vpop.f32.mrb[110].mxu1  ;;  %v6995_v51 = vpop.f32.mrb[111].mxu0 }
 0x207   : > { %v7107_v23 = vpop.f32.mrb[111].mxu1  ;;  %v2202_v49 = vadd.f32 %v6993_v42, %v9230_v52  ;;  %v6996_v46 = vadd.f32 %v6995_v51, %v6994_v19 }
 0x208   : > { %v7108_v16 = vadd.f32 %v7107_v23, %v7106_v34 }
 0x209   : > { %v2205_v38 = vadd.f32 %v6996_v46, %v9233_v47  ;;  %v9324_v14 = vadd.f32 %v7105_v45, %v2202_v49 }
 0x20b   : > { %v6997_v28 = vpop.f32.mrb[112].mxu0  ;;  %v9326_v18 = vadd.f32 %v7108_v16, %v2205_v38 }
 0x20c   : > { %v7109_v10 = vpop.f32.mrb[112].mxu1  ;;  %v6998_v0 = vpop.f32.mrb[113].mxu0 }
 0x20d   : > { %v7110_v13 = vpop.f32.mrb[113].mxu1  ;;  %v6999_v31 = vadd.f32 %v6998_v0, %v6997_v28  ;;  %v7000_v36 = vpop.f32.mrb[114].mxu0 }
 0x20e   : > { %v7111_v57 = vadd.f32 %v7110_v13, %v7109_v10  ;;  %v7112_v60 = vpop.f32.mrb[114].mxu1  ;;  %v7001_v52 = vpop.f32.mrb[115].mxu0 }
 0x20f   : > { %v7113_v62 = vpop.f32.mrb[115].mxu1  ;;  %v2210_v5 = vadd.f32 %v6999_v31, %v9240_v21  ;;  %v7002_v8 = vadd.f32 %v7001_v52, %v7000_v36 }
 0x210   : > { %v7114_v2 = vadd.f32 %v7113_v62, %v7112_v60 }
 0x211   : > { %v2213_v47 = vadd.f32 %v7002_v8, %v9242_v3  ;;  %v9330_v29 = vadd.f32 %v7111_v57, %v2210_v5 }
 0x213   : > { %v7003_v7 = vpop.f32.mrb[116].mxu0  ;;  %v9332_v24 = vadd.f32 %v7114_v2, %v2213_v47 }
 0x214   : > { %v7115_v12 = vpop.f32.mrb[116].mxu1  ;;  %v7004_v23 = vpop.f32.mrb[117].mxu0 }
 0x215   : > { %v7116_v32 = vpop.f32.mrb[117].mxu1  ;;  %v7005_v19 = vadd.f32 %v7004_v23, %v7003_v7  ;;  %v7006_v16 = vpop.f32.mrb[118].mxu0 }
 0x216   : > { %v7117_v45 = vadd.f32 %v7116_v32, %v7115_v12  ;;  %v7118_v34 = vpop.f32.mrb[118].mxu1  ;;  %v7007_v49 = vpop.f32.mrb[119].mxu0 }
 0x217   : > { %v7119_v42 = vpop.f32.mrb[119].mxu1  ;;  %v2218_v21 = vadd.f32 %v7005_v19, %v9244_v25  ;;  %v7008_v46 = vadd.f32 %v7007_v49, %v7006_v16 }
 0x218   : > { %v7120_v51 = vadd.f32 %v7119_v42, %v7118_v34 }
 0x219   : > { %v2221_v3 = vadd.f32 %v7008_v46, %v9246_v50  ;;  %v9336_v38 = vadd.f32 %v7117_v45, %v2218_v21 }
 0x21b   : > { %v7009_v13 = vpop.f32.mrb[120].mxu0  ;;  %v9338_v60 = vadd.f32 %v7120_v51, %v2221_v3 }
 0x21c   : > { %v7121_v56 = vpop.f32.mrb[120].mxu1  ;;  %v7010_v0 = vpop.f32.mrb[121].mxu0 }
 0x21d   : > { %v7122_v10 = vpop.f32.mrb[121].mxu1  ;;  %v7011_v31 = vadd.f32 %v7010_v0, %v7009_v13  ;;  %v7012_v36 = vpop.f32.mrb[122].mxu0 }
 0x21e   : > { %v7123_v28 = vadd.f32 %v7122_v10, %v7121_v56  ;;  %v7124_v57 = vpop.f32.mrb[122].mxu1  ;;  %v7013_v52 = vpop.f32.mrb[123].mxu0  ;;  %v9353_v56 = vld [vmem:[%s10918_s2] ss:$0 sm:$0xff] }
 0x21f   : > { %v7125_v62 = vpop.f32.mrb[123].mxu1  ;;  %v2226_v25 = vadd.f32 %v7011_v31, %v9248_v15  ;;  %v7014_v5 = vadd.f32 %v7013_v52, %v7012_v36 }
 0x220   : > { %v7126_v2 = vadd.f32 %v7125_v62, %v7124_v57 }
 0x221   : > { %v2229_v50 = vadd.f32 %v7014_v5, %v9250_v26  ;;  %v9342_v47 = vadd.f32 %v7123_v28, %v2226_v25 }
 0x223   : > { %v7015_v32 = vpop.f32.mrb[124].mxu0  ;;  %v9344_v34 = vadd.f32 %v7126_v2, %v2229_v50 }
 0x224   : > { %v7127_v8 = vpop.f32.mrb[124].mxu1  ;;  %v7016_v23 = vpop.f32.mrb[125].mxu0 }
 0x225   : > { %v7128_v12 = vpop.f32.mrb[125].mxu1  ;;  %v7017_v19 = vadd.f32 %v7016_v23, %v7015_v32  ;;  %v7018_v16 = vpop.f32.mrb[126].mxu0 }
 0x226   : > { %v7129_v7 = vadd.f32 %v7128_v12, %v7127_v8  ;;  %v7130_v45 = vpop.f32.mrb[126].mxu1  ;;  %v7019_v49 = vpop.f32.mrb[127].mxu0 }
 0x227   : > { %v7131_v42 = vpop.f32.mrb[127].mxu1  ;;  %v2234_v15 = vadd.f32 %v7017_v19, %v9252_v61  ;;  %v7020_v21 = vadd.f32 %v7019_v49, %v7018_v16  ;;  %v9361_v61 = vld [vmem:[%s10919_s3] ss:$0 sm:$0xff] }
 0x228   : > { %v7132_v51 = vadd.f32 %v7131_v42, %v7130_v45 }
 0x229   : > { %v2237_v26 = vadd.f32 %v7020_v21, %v9254_v1  ;;  %v9348_v46 = vadd.f32 %v7129_v7, %v2234_v15 }
 0x22b   : > { %v7647_v3 = vpop.f32.mrb[128].mxu0  ;;  %v9355_v10 = vadd.f32 %v7132_v51, %v2237_v26  ;;  %v7905_v51 = vld [vmem:[#allocation3 + $0x140] sm:$0xff]  }
 0x22c   : > { %v2444_v13 = vadd.f32 %v7647_v3, %v9264_v37  ;;  %v2435_v28 = vpop.f32.mrb[129].mxu0  ;;  %7381 = vmatprep.subr.bf16.mxu1 %v7905_v51 }
 0x22d   : > { %v2436_v1 = vadd.f32 %v2435_v28, %v9258_v4  ;;  %v7648_v57 = vpop.f32.mrb[130].mxu0 }
 0x22e   : > { %v2571_v0 = vmul.f32 %v9353_v56, %v2444_v13  ;;  %v2447_v62 = vadd.f32 %v7648_v57, %v9266_v6  ;;  %v2438_v31 = vpop.f32.mrb[131].mxu0  ;;  %v3168_v57 = vld [vmem:[#allocation2 + $0x18] sm:$0xf] }
 0x22f   : > { %v2569_v36 = vmul.f32 %v9353_v56, %v2436_v1  ;;  %v2439_v2 = vadd.f32 %v2438_v31, %v9260_v59 }
 0x230   : > { %v2610_v37 = vadd.f32 %v9361_v61, %v2571_v0  ;;  %v2572_v52 = vmul.f32 %v9353_v56, %v2447_v62  ;;  %v3273_v0 = vld [vmem:[#allocation2] sm:$0xf] }
 0x231   : > { %v2608_v25 = vadd.f32 %v9361_v61, %v2569_v36  ;;  %v2570_v4 = vmul.f32 %v9353_v56, %v2439_v2 }
 0x232   : > { %vm2642_vm9 = vcmp.ge.f32.partialorder %v2610_v37, 0.0  ;;  %v2674_v5 = vmul.f32 0.2, %v2610_v37  ;;  %v2611_v6 = vadd.f32 %v9361_v61, %v2572_v52  ;;  %v3159_v52 = vld [vmem:[#allocation2 + $0xc] sm:$0xf] }
 0x233   : > { %vm2640_vm11 = vcmp.ge.f32.partialorder %v2608_v25, 0.0  ;;  %v2672_v50 = vmul.f32 0.2, %v2608_v25  ;;  %v2609_v59 = vadd.f32 %v9361_v61, %v2570_v4  ;;  %v7651_v8 = vpop.f32.mrb[132].mxu0 }
 0x234   : > { %v2706_v12 = vsel %vm2642_vm9, %v2610_v37, %v2674_v5  ;;  %vm2643_vm13 = vcmp.ge.f32.partialorder %v2611_v6, 0.0  ;;  %v2675_v32 = vmul.f32 0.2, %v2611_v6  ;;  %v2460_v7 = vadd.f32 %v7651_v8, %v9276_v22  ;;  %v2451_v45 = vpop.f32.mrb[133].mxu0 }
 0x235   : > { %v6654_v23 = vpack.c.bf16 %v2706_v12, %v2706_v12  ;;  %v2704_v42 = vsel %vm2640_vm11, %v2608_v25, %v2672_v50  ;;  %vm2641_vm14 = vcmp.ge.f32.partialorder %v2609_v59, 0.0  ;;  %v2673_v19 = vmul.f32 0.2, %v2609_v59  ;;  %v9375_v16 = vpop.f32.mrb[134].mxu0  ;;  %v3172_v50 = vld [vmem:[#allocation2 + $0x20] sm:$0x1] }
 0x236   : > { %v6652_v49 = vpack.c.bf16 %v2704_v42, %v2704_v42  ;;  %v2707_v15 = vsel %vm2643_vm13, %v2611_v6, %v2675_v32  ;;  %v2575_v21 = vmul.f32 %v9353_v56, %v2460_v7  ;;  %v2452_v26 = vadd.f32 %v2451_v45, %v9270_v35  ;;  %v9379_v3 = vpop.f32.mrb[135].mxu0 }
 0x237   : > { %v2853_v13 = vshrl.u32 %v6654_v23, 16  ;;  %v2856_v28 = vshll.u32 %v6654_v23, 16  ;;  %v6655_v1 = vpack.c.bf16 %v2707_v15, %v2707_v15  ;;  %v2705_v22 = vsel %vm2641_vm14, %v2609_v59, %v2673_v19  ;;  %v3277_v15 = vld [vmem:[#allocation2 + $0x8] sm:$0x1] }
 0x238   : > { %v2836_v62 = vshrl.u32 %v6652_v49, 16  ;;  %v2839_v31 = vshll.u32 %v6652_v49, 16  ;;  %v6653_v36 = vpack.c.bf16 %v2705_v22, %v2705_v22  ;;  %v2614_v2 = vadd.f32 %v9361_v61, %v2575_v21 }
 0x239   : > { %v2855_v37 = vrot.slane %v2853_v13, 7  ;;  %v2861_v25 = vshrl.u32 %v6655_v1, 16  ;;  %v2864_v4 = vshll.u32 %v6655_v1, 16  ;;  %v2573_v35 = vmul.f32 %v9353_v56, %v2452_v26 }
 0x23a   : > { %v2838_v6 = vrot.slane %v2836_v62, 7  ;;  %v2844_v59 = vshrl.u32 %v6653_v36, 16  ;;  %v2847_v8 = vshll.u32 %v6653_v36, 16  ;;  %vm2646_vm0 = vcmp.ge.f32.partialorder %v2614_v2, 0.0 }
 0x23b   : > { %v2858_v12 = vor.u32 %v2856_v28, %v2855_v37  ;;  %v2859_v32 = vrot.slane %v2855_v37, 4  ;;  %v2863_v45 = vrot.slane %v2861_v25, 7  ;;  %v2678_v23 = vmul.f32 0.2, %v2614_v2  ;;  %v7655_v42 = vpop.f32.mrb[136].mxu0 }
 0x23c   : > { %v2841_v19 = vor.u32 %v2839_v31, %v2838_v6  ;;  %v2842_v51 = vrot.slane %v2838_v6, 4  ;;  %v2846_v21 = vrot.slane %v2844_v59, 7  ;;  %v2612_v26 = vadd.f32 %v9361_v61, %v2573_v35  ;;  %v2467_v13 = vpop.f32.mrb[137].mxu0  ;;  %v3165_v31 = vld [vmem:[#allocation2 + $0x14] sm:$0x1] }
 0x23d   : > { %v3169_v28 = vsel %vm9385_vm15, %v2858_v12, %v3168_v57  ;;  %v3274_v1 = vsel %vm9385_vm15, %v2858_v12, %v3273_v0  ;;  %v2866_v22 = vor.u32 %v2864_v4, %v2863_v45  ;;  %v2868_v62 = vrot.slane %v2863_v45, 4  ;;  %v7656_v36 = vpop.f32.mrb[138].mxu0 }
 0x23e   : > { %3170 = vst [vmem:[#allocation2 + $0x18] sm:$0xf] %v3169_v28  ;;  %3275 = vst [vmem:[#allocation2] sm:$0xf] %v3274_v1  ;;  %v3160_v37 = vsel %vm9385_vm15, %v2841_v19, %v3159_v52  ;;  %v2849_v25 = vor.u32 %v2847_v8, %v2846_v21  ;;  %v2851_v6 = vrot.slane %v2846_v21, 4  ;;  %v2710_v35 = vsel %vm2646_vm0, %v2614_v2, %v2678_v23  ;;  %v2470_v59 = vpop.f32.mrb[139].mxu0 }
 0x23f   : > { %3161 = vst [vmem:[#allocation2 + $0xc] sm:$0xf] %v3160_v37  ;;  %v2867_v57 = vsel %vm9397_vm2, %v2859_v32, %v2866_v22  ;;  %v3173_v0 = vsel %vm9391_vm1, %v2868_v62, %v3172_v50  ;;  %v3278_v4 = vsel %vm9391_vm1, %v2868_v62, %v3277_v15  ;;  %v6658_v12 = vpack.c.bf16 %v2710_v35, %v2710_v35  ;;  %v3182_v37 = vld [vmem:[#allocation2 + $0x30] sm:$0xf] }
 0x240   : > { %3171 = vst [vmem:[#allocation2 + $0x1c] sm:$0xf] %v2867_v57  ;;  %3174 = vst [vmem:[#allocation2 + $0x20] sm:$0x1] %v3173_v0  ;;  %v2850_v52 = vsel %vm9397_vm2, %v2842_v51, %v2849_v25  ;;  %v3166_v2 = vsel %vm9391_vm1, %v2851_v6, %v3165_v31  ;;  %vm2644_vm3 = vcmp.ge.f32.partialorder %v2612_v26, 0.0  ;;  %v2463_v45 = vadd.f32 %v9375_v16, %v9278_v39 }
 0x241   : > { %3276 = vst [vmem:[#allocation2 + $0x4] sm:$0xf] %v2867_v57  ;;  %3279 = vst [vmem:[#allocation2 + $0x8] sm:$0x1] %v3278_v4  ;;  %v2676_v8 = vmul.f32 0.2, %v2612_v26  ;;  %v2455_v23 = vadd.f32 %v9379_v3, %v9272_v30  ;;  %v2476_v15 = vadd.f32 %v7655_v42, %v9288_v9  ;;  %v2468_v51 = vadd.f32 %v2467_v13, %v9282_v41 }
 0x242   : > { %3162 = vst [vmem:[#allocation2 + $0x10] sm:$0xf] %v2850_v52  ;;  %3167 = vst [vmem:[#allocation2 + $0x14] sm:$0x1] %v3166_v2  ;;  %v2887_v32 = vshrl.u32 %v6658_v12, 16  ;;  %v2890_v50 = vshll.u32 %v6658_v12, 16  ;;  %v2479_v21 = vadd.f32 %v7656_v36, %v9290_v54  ;;  %v2576_v22 = vmul.f32 %v9353_v56, %v2463_v45 }
 0x243   : > { %v2708_v19 = vsel %vm2644_vm3, %v2612_v26, %v2676_v8  ;;  %v2574_v62 = vmul.f32 %v9353_v56, %v2455_v23  ;;  %v7659_v31 = vpop.f32.mrb[140].mxu0  ;;  %v2579_v39 = vmul.f32 %v9353_v56, %v2476_v15  ;;  %v2577_v30 = vmul.f32 %v9353_v56, %v2468_v51 }
 0x244   : > { %v9426_v28 = vrot.slane %v2887_v32, 7  ;;  %v6656_v1 = vpack.c.bf16 %v2708_v19, %v2708_v19  ;;  %v2580_v16 = vmul.f32 %v9353_v56, %v2479_v21  ;;  %v2471_v9 = vadd.f32 %v2470_v59, %v9284_v27  ;;  %v9434_v41 = vpop.f32.mrb[141].mxu0 }
 0x245   : > { %v3288_v54 = vld [vmem:[#allocation2] sm:$0x2]  ;;  %v3290_v3 = vld [vmem:[#allocation2 + $0x18] sm:$0x2]  ;;  %v3378_v42 = vld [vmem:[#allocation2] sm:$0x1]  ;;  %v2615_v13 = vadd.f32 %v9361_v61, %v2576_v22  ;;  %v2613_v36 = vadd.f32 %v9361_v61, %v2574_v62  ;;  %v9440_v25 = vadd.f32 %v7659_v31, %v9300_v55  ;;  %v2618_v27 = vadd.f32 %v9361_v61, %v2579_v39 }
 0x246   : > { %v2892_v26 = vor.u32 %v2890_v50, %v9426_v28  ;;  %v6465_v6 = vrot.slane %v3288_v54, 9  ;;  %v6467_v35 = vrot.slane %v3290_v3, 9  ;;  %v3384_v57 = vld [vmem:[#allocation2 + $0x18] sm:$0x1]  ;;  %v3289_v0 = vld [vmem:[#allocation2 + $0xc] sm:$0x2]  ;;  %v9444_v59 = vadd.f32 %v9361_v61, %v2577_v30 }
 0x247   : > { %v6466_v12 = vrot.slane %v3289_v0, 9  ;;  %v3381_v52 = vld [vmem:[#allocation2 + $0xc] sm:$0x1]  ;;  %v2893_v55 = vrot.slane %v9426_v28, 4  ;;  %v9456_v32 = vadd.f32 %v9361_v61, %v2580_v16  ;;  %v3434_v23 = vld [vmem:[#allocation2 + $0x1c] sm:$0x8]  ;;  %v2578_v30 = vmul.f32 %v9353_v56, %v2471_v9 }
 0x248   : > { %v3432_v2 = vld [vmem:[#allocation2 + $0x4] sm:$0x8]  ;;  %v3183_v8 = vsel %vm9385_vm15, %v2892_v26, %v3182_v37  ;;  %v3379_v50 = vsel %vm9391_vm1, %v6465_v6, %v3378_v42  ;;  %v3385_v45 = vsel %vm9391_vm1, %v6467_v35, %v3384_v57  ;;  %v3523_v15 = vld [vmem:[#allocation2 + $0x8] sm:$0x1]  ;;  %v2870_v51 = vshrl.u32 %v6656_v1, 16  ;;  %v9469_v26 = vpop.f32.mrb[142].mxu0 }
 0x249   : > { %v6483_v19 = vrot.slane %v3432_v2, 11  ;;  %3184 = vst [vmem:[#allocation2 + $0x30] sm:$0xf] %v3183_v8  ;;  %3380 = vst [vmem:[#allocation2] sm:$0x1] %v3379_v50  ;;  %v3382_v21 = vsel %vm9391_vm1, %v6466_v12, %v3381_v52  ;;  %v6485_v22 = vrot.slane %v3434_v23, 11 }
 0x24a   : > { %3386 = vst [vmem:[#allocation2 + $0x18] sm:$0x1] %v3385_v45  ;;  %v3529_v62 = vld [vmem:[#allocation2 + $0x20] sm:$0x1]  ;;  %v3433_v31 = vld [vmem:[#allocation2 + $0x10] sm:$0x8] }
 0x24b   : > { %v2873_v37 = vshll.u32 %v6656_v1, 16  ;;  %v3175_v39 = vld [vmem:[#allocation2 + $0x24] sm:$0xf]  ;;  %3383 = vst [vmem:[#allocation2 + $0xc] sm:$0x1] %v3382_v21  ;;  %v3524_v16 = vsel %vm9448_vm6, %v6483_v19, %v3523_v15  ;;  %v6484_v54 = vrot.slane %v3433_v31, 11  ;;  %v3530_v6 = vsel %vm9448_vm6, %v6485_v22, %v3529_v62 }
 0x24c   : > { %v3526_v3 = vld [vmem:[#allocation2 + $0x14] sm:$0x1]  ;;  %v9467_v42 = vrot.slane %v2870_v51, 7  ;;  %vm2647_vm7 = vcmp.ge.f32.partialorder %v2615_v13, 0.0  ;;  %3525 = vst [vmem:[#allocation2 + $0x8] sm:$0x1] %v3524_v16 }
 0x24d   : > { %v2679_v35 = vmul.f32 0.2, %v2615_v13  ;;  %vm2645_vm8 = vcmp.ge.f32.partialorder %v2613_v36, 0.0  ;;  %v2677_v1 = vmul.f32 0.2, %v2613_v36  ;;  %v9473_v57 = vpop.f32.mrb[143].mxu0  ;;  %v3527_v9 = vsel %vm9448_vm6, %v6484_v54, %v3526_v3 }
 0x24e   : > { %3531 = vst [vmem:[#allocation2 + $0x20] sm:$0x1] %v3530_v6  ;;  %v2875_v0 = vor.u32 %v2873_v37, %v9467_v42  ;;  %v2876_v12 = vrot.slane %v9467_v42, 4  ;;  %vm2650_vm9 = vcmp.ge.f32.partialorder %v2618_v27, 0.0  ;;  %v9479_v52 = vpop.f32.mrb[144].mxu0  ;;  %vm2648_vm10 = vcmp.ge.f32.partialorder %v9444_v59, 0.0 }
 0x24f   : > { %3528 = vst [vmem:[#allocation2 + $0x14] sm:$0x1] %v3527_v9  ;;  %v2711_v2 = vsel %vm2647_vm7, %v2615_v13, %v2679_v35  ;;  %v2709_v8 = vsel %vm2645_vm8, %v2613_v36, %v2677_v1  ;;  %v2682_v50 = vmul.f32 0.2, %v2618_v27  ;;  %v9482_v45 = vpop.f32.mrb[145].mxu0  ;;  %vm2651_vm11 = vcmp.ge.f32.partialorder %v9456_v32, 0.0 }
 0x250   : > { %v3176_v23 = vsel %vm9385_vm15, %v2875_v0, %v3175_v39  ;;  %v6659_v19 = vpack.c.bf16 %v2711_v2, %v2711_v2  ;;  %v6657_v15 = vpack.c.bf16 %v2709_v8, %v2709_v8  ;;  %v2680_v51 = vmul.f32 0.2, %v9444_v59  ;;  %v9487_v21 = vpop.f32.mrb[146].mxu0  ;;  %v3292_v22 = vld [vmem:[#allocation2 + $0x30] sm:$0x2] }
 0x251   : > { %3177 = vst [vmem:[#allocation2 + $0x24] sm:$0xf] %v3176_v23  ;;  %v2714_v62 = vsel %vm2650_vm9, %v2618_v27, %v2682_v50  ;;  %v9491_v13 = vadd.f32 %v9361_v61, %v2578_v30  ;;  %v2583_v36 = vmul.f32 %v9353_v56, %v9440_v25  ;;  %v9495_v31 = vpop.f32.mrb[147].mxu0  ;;  %v6469_v37 = vrot.slane %v3292_v22, 9  ;;  %v3390_v3 = vld [vmem:[#allocation2 + $0x30] sm:$0x1] }
 0x252   : > { %v2895_v39 = vshrl.u32 %v6659_v19, 16  ;;  %v2898_v16 = vshll.u32 %v6659_v19, 16  ;;  %v2878_v54 = vshrl.u32 %v6657_v15, 16  ;;  %v2881_v42 = vshll.u32 %v6657_v15, 16  ;;  %v3186_v25 = vld [vmem:[#allocation2 + $0x38] sm:$0x1] }
 0x253   : > { %v6662_v6 = vpack.c.bf16 %v2714_v62, %v2714_v62  ;;  %v2712_v27 = vsel %vm2648_vm10, %v9444_v59, %v2680_v51  ;;  %v2683_v35 = vmul.f32 0.2, %v9456_v32  ;;  %v3391_v30 = vsel %vm9391_vm1, %v6469_v37, %v3390_v3  ;;  %v3179_v2 = vld [vmem:[#allocation2 + $0x2c] sm:$0x1]  ;;  %v9507_v59 = vpop.f32.mrb[148].mxu0 }
 0x254   : > { %v2897_v1 = vrot.slane %v2895_v39, 7  ;;  %v2880_v9 = vrot.slane %v2878_v54, 7  ;;  %v6660_v0 = vpack.c.bf16 %v2712_v27, %v2712_v27  ;;  %3392 = vst [vmem:[#allocation2 + $0x30] sm:$0x1] %v3391_v30  ;;  %vm2649_vm12 = vcmp.ge.f32.partialorder %v9491_v13, 0.0  ;;  %v9509_v62 = vpop.f32.mrb[149].mxu0 }
 0x255   : > { %v2921_v8 = vshrl.u32 %v6662_v6, 16  ;;  %v2924_v50 = vshll.u32 %v6662_v6, 16  ;;  %v2715_v23 = vsel %vm2651_vm11, %v9456_v32, %v2683_v35  ;;  %v9511_v27 = vpop.f32.mrb[150].mxu0  ;;  %v3196_v30 = vld [vmem:[#allocation2 + $0x48] sm:$0xf] }
 0x256   : > { %v2900_v19 = vor.u32 %v2898_v16, %v2897_v1  ;;  %v2902_v15 = vrot.slane %v2897_v1, 4  ;;  %v2883_v51 = vor.u32 %v2881_v42, %v2880_v9  ;;  %v2885_v22 = vrot.slane %v2880_v9, 4  ;;  %v9523_v1 = vpop.f32.mrb[151].mxu0 }
 0x257   : > { %v2923_v37 = vrot.slane %v2921_v8, 7  ;;  %v2904_v39 = vshrl.u32 %v6660_v0, 16  ;;  %v2907_v54 = vshll.u32 %v6660_v0, 16  ;;  %v6663_v3 = vpack.c.bf16 %v2715_v23, %v2715_v23  ;;  %v3189_v8 = vld [vmem:[#allocation2 + $0x3c] sm:$0xf] }
 0x258   : > { %v3291_v6 = vld [vmem:[#allocation2 + $0x24] sm:$0x2]  ;;  %v2901_v32 = vsel %vm9397_vm2, %v2893_v55, %v2900_v19  ;;  %v3187_v16 = vsel %vm9391_vm1, %v2902_v15, %v3186_v25  ;;  %v2884_v42 = vsel %vm9397_vm2, %v2876_v12, %v2883_v51  ;;  %v3180_v35 = vsel %vm9391_vm1, %v2885_v22, %v3179_v2  ;;  %v3387_v25 = vld [vmem:[#allocation2 + $0x24] sm:$0x1] }
 0x259   : > { %v6468_v9 = vrot.slane %v3291_v6, 9  ;;  %3185 = vst [vmem:[#allocation2 + $0x34] sm:$0xf] %v2901_v32  ;;  %3188 = vst [vmem:[#allocation2 + $0x38] sm:$0x1] %v3187_v16  ;;  %v2926_v28 = vor.u32 %v2924_v50, %v2923_v37  ;;  %v2927_v0 = vrot.slane %v2923_v37, 4  ;;  %v2622_v2 = vadd.f32 %v9361_v61, %v2583_v36 }
 0x25a   : > { %3178 = vst [vmem:[#allocation2 + $0x28] sm:$0xf] %v2884_v42  ;;  %3181 = vst [vmem:[#allocation2 + $0x2c] sm:$0x1] %v3180_v35  ;;  %v9525_v55 = vrot.slane %v2904_v39, 7  ;;  %v2929_v23 = vshrl.u32 %v6663_v3, 16  ;;  %v2484_v16 = vadd.f32 %v9434_v41, %v9294_v17 }
 0x25b   : > { %v2932_v19 = vshll.u32 %v6663_v3, 16  ;;  %v2681_v12 = vmul.f32 0.2, %v9491_v13  ;;  %v3388_v15 = vsel %vm9391_vm1, %v6468_v9, %v3387_v25  ;;  %v3197_v51 = vsel %vm9385_vm15, %v2926_v28, %v3196_v30  ;;  %v3200_v6 = vld [vmem:[#allocation2 + $0x50] sm:$0x1]  ;;  %v9544_v42 = vpop.f32.mrb[152].mxu0 }
 0x25c   : > { %v2909_v22 = vor.u32 %v2907_v54, %v9525_v55  ;;  %v2910_v50 = vrot.slane %v9525_v55, 4  ;;  %3389 = vst [vmem:[#allocation2 + $0x24] sm:$0x1] %v3388_v15  ;;  %3198 = vst [vmem:[#allocation2 + $0x48] sm:$0xf] %v3197_v51  ;;  %v2931_v37 = vrot.slane %v2929_v23, 7  ;;  %v2495_v54 = vadd.f32 %v9469_v26, %v9302_v43 }
 0x25d   : > { %v2713_v39 = vsel %vm2649_vm12, %v9491_v13, %v2681_v12  ;;  %vm2654_vm13 = vcmp.ge.f32.partialorder %v2622_v2, 0.0  ;;  %v2686_v3 = vmul.f32 0.2, %v2622_v2  ;;  %v2487_v13 = vadd.f32 %v9473_v57, %v9296_v53  ;;  %v9548_v28 = vpop.f32.mrb[153].mxu0  ;;  %v3193_v51 = vld [vmem:[#allocation2 + $0x44] sm:$0x1] }
 0x25e   : > { %v3190_v36 = vsel %vm9385_vm15, %v2909_v22, %v3189_v8  ;;  %v6661_v32 = vpack.c.bf16 %v2713_v39, %v2713_v39  ;;  %v2934_v35 = vor.u32 %v2932_v19, %v2931_v37  ;;  %v2936_v30 = vrot.slane %v2931_v37, 4  ;;  %v9551_v17 = vpop.f32.mrb[154].mxu0 }
 0x25f   : > { %3191 = vst [vmem:[#allocation2 + $0x3c] sm:$0xf] %v3190_v36  ;;  %v2718_v9 = vsel %vm2654_vm13, %v2622_v2, %v2686_v3  ;;  %v2581_v23 = vmul.f32 %v9353_v56, %v2484_v16  ;;  %v2584_v12 = vmul.f32 %v9353_v56, %v2495_v54  ;;  %v2582_v53 = vmul.f32 %v9353_v56, %v2487_v13  ;;  %v3210_v13 = vld [vmem:[#allocation2 + $0x60] sm:$0xf] }
 0x260   : > { %v2912_v55 = vshrl.u32 %v6661_v32, 16  ;;  %v2915_v8 = vshll.u32 %v6661_v32, 16  ;;  %v6666_v25 = vpack.c.bf16 %v2718_v9, %v2718_v9  ;;  %v3436_v41 = vld [vmem:[#allocation2 + $0x34] sm:$0x8]  ;;  %v2935_v26 = vsel %vm9397_vm2, %v2927_v0, %v2934_v35  ;;  %v3535_v37 = vld [vmem:[#allocation2 + $0x38] sm:$0x1] }
 0x261   : > { %v3435_v43 = vld [vmem:[#allocation2 + $0x28] sm:$0x8]  ;;  %v3201_v19 = vsel %vm9391_vm1, %v2936_v30, %v3200_v6  ;;  %v6487_v57 = vrot.slane %v3436_v41, 11  ;;  %3199 = vst [vmem:[#allocation2 + $0x4c] sm:$0xf] %v2935_v26  ;;  %v2620_v36 = vadd.f32 %v9361_v61, %v2581_v23  ;;  %v2623_v0 = vadd.f32 %v9361_v61, %v2584_v12  ;;  %v9562_v32 = vpop.f32.mrb[155].mxu0 }
 0x262   : > { %v6486_v2 = vrot.slane %v3435_v43, 11  ;;  %3202 = vst [vmem:[#allocation2 + $0x50] sm:$0x1] %v3201_v19  ;;  %v2914_v15 = vrot.slane %v2912_v55, 7  ;;  %v2955_v22 = vshrl.u32 %v6666_v25, 16  ;;  %v2958_v3 = vshll.u32 %v6666_v25, 16 }
 0x263   : > { %v3532_v39 = vld [vmem:[#allocation2 + $0x2c] sm:$0x1]  ;;  %v2621_v6 = vadd.f32 %v9361_v61, %v2582_v53  ;;  %v3536_v16 = vsel %vm9448_vm6, %v6487_v57, %v3535_v37  ;;  %v3294_v35 = vld [vmem:[#allocation2 + $0x48] sm:$0x2]  ;;  %vm2652_vm14 = vcmp.ge.f32.partialorder %v2620_v36, 0.0  ;;  %vm2655_vm0 = vcmp.ge.f32.partialorder %v2623_v0, 0.0 }
 0x264   : > { %v3533_v54 = vsel %vm9448_vm6, %v6486_v2, %v3532_v39  ;;  %v2917_v30 = vor.u32 %v2915_v8, %v2914_v15  ;;  %v2919_v9 = vrot.slane %v2914_v15, 4  ;;  %3537 = vst [vmem:[#allocation2 + $0x38] sm:$0x1] %v3536_v16  ;;  %v6471_v55 = vrot.slane %v3294_v35, 9  ;;  %v3396_v41 = vld [vmem:[#allocation2 + $0x48] sm:$0x1] }
 0x265   : > { %3534 = vst [vmem:[#allocation2 + $0x2c] sm:$0x1] %v3533_v54  ;;  %v9568_v25 = vrot.slane %v2955_v22, 7  ;;  %v2684_v23 = vmul.f32 0.2, %v2620_v36  ;;  %vm2653_vm3 = vcmp.ge.f32.partialorder %v2621_v6, 0.0  ;;  %v2508_v37 = vadd.f32 %v9479_v52, %v9312_v20 }
 0x266   : > { %v3293_v43 = vld [vmem:[#allocation2 + $0x3c] sm:$0x2]  ;;  %v2918_v26 = vsel %vm9397_vm2, %v2910_v50, %v2917_v30  ;;  %v3194_v19 = vsel %vm9391_vm1, %v2919_v9, %v3193_v51  ;;  %v3397_v8 = vsel %vm9391_vm1, %v6471_v55, %v3396_v41  ;;  %v3393_v53 = vld [vmem:[#allocation2 + $0x3c] sm:$0x1]  ;;  %v9578_v15 = vpop.f32.mrb[156].mxu0  ;;  %v2500_v30 = vadd.f32 %v9482_v45, %v9306_v40 }
 0x267   : > { %v6470_v12 = vrot.slane %v3293_v43, 9  ;;  %3192 = vst [vmem:[#allocation2 + $0x40] sm:$0xf] %v2918_v26  ;;  %3195 = vst [vmem:[#allocation2 + $0x44] sm:$0x1] %v3194_v19  ;;  %v2960_v57 = vor.u32 %v2958_v3, %v9568_v25  ;;  %v2961_v2 = vrot.slane %v9568_v25, 4  ;;  %v2716_v50 = vsel %vm2652_vm14, %v2620_v36, %v2684_v23 }
 0x268   : > { %3398 = vst [vmem:[#allocation2 + $0x48] sm:$0x1] %v3397_v8  ;;  %v2687_v22 = vmul.f32 0.2, %v2623_v0  ;;  %v2685_v51 = vmul.f32 0.2, %v2621_v6  ;;  %v6664_v35 = vpack.c.bf16 %v2716_v50, %v2716_v50  ;;  %v2587_v55 = vmul.f32 %v9353_v56, %v2508_v37 }
 0x269   : > { %v9583_v39 = vpop.f32.mrb[157].mxu0  ;;  %v3394_v16 = vsel %vm9391_vm1, %v6470_v12, %v3393_v53  ;;  %v3438_v54 = vld [vmem:[#allocation2 + $0x4c] sm:$0x8]  ;;  %v3211_v3 = vsel %vm9385_vm15, %v2960_v57, %v3210_v13  ;;  %v3541_v41 = vld [vmem:[#allocation2 + $0x50] sm:$0x1]  ;;  %v2585_v8 = vmul.f32 %v9353_v56, %v2500_v30 }
 0x26a   : > { %v9591_v9 = vpop.f32.mrb[158].mxu0  ;;  %3395 = vst [vmem:[#allocation2 + $0x3c] sm:$0x1] %v3394_v16  ;;  %v6489_v36 = vrot.slane %v3438_v54, 11  ;;  %3212 = vst [vmem:[#allocation2 + $0x60] sm:$0xf] %v3211_v3  ;;  %v2719_v20 = vsel %vm2655_vm0, %v2623_v0, %v2687_v22  ;;  %v2717_v52 = vsel %vm2653_vm3, %v2621_v6, %v2685_v51  ;;  %v2626_v45 = vadd.f32 %v9361_v61, %v2587_v55 }
 0x26b   : > { %v9596_v23 = vpop.f32.mrb[159].mxu0  ;;  %v2938_v43 = vshrl.u32 %v6664_v35, 16  ;;  %v2941_v13 = vshll.u32 %v6664_v35, 16  ;;  %v6667_v26 = vpack.c.bf16 %v2719_v20, %v2719_v20  ;;  %v6665_v19 = vpack.c.bf16 %v2717_v52, %v2717_v52  ;;  %v3203_v12 = vld [vmem:[#allocation2 + $0x54] sm:$0xf] }
 0x26c   : > { %v3542_v40 = vsel %vm9448_vm6, %v6489_v36, %v3541_v41  ;;  %v2511_v0 = vadd.f32 %v9487_v21, %v9314_v33  ;;  %v3214_v51 = vld [vmem:[#allocation2 + $0x68] sm:$0x1]  ;;  %vm2658_vm7 = vcmp.ge.f32.partialorder %v2626_v45, 0.0  ;;  %v2624_v16 = vadd.f32 %v9361_v61, %v2585_v8  ;;  %v9943_v49 = vld [vmem:[#allocation2 + $0x34] sm:$0xf] }
 0x26d   : > { %3543 = vst [vmem:[#allocation2 + $0x50] sm:$0x1] %v3542_v40  ;;  %v2940_v6 = vrot.slane %v2938_v43, 7  ;;  %v2963_v53 = vshrl.u32 %v6667_v26, 16  ;;  %v2966_v57 = vshll.u32 %v6667_v26, 16  ;;  %v2946_v50 = vshrl.u32 %v6665_v19, 16 }
 0x26e   : > { %v3437_v22 = vld [vmem:[#allocation2 + $0x40] sm:$0x8]  ;;  %v2949_v37 = vshll.u32 %v6665_v19, 16  ;;  %v2588_v54 = vmul.f32 %v9353_v56, %v2511_v0  ;;  %v3538_v35 = vld [vmem:[#allocation2 + $0x44] sm:$0x1]  ;;  %vm2656_vm8 = vcmp.ge.f32.partialorder %v2624_v16, 0.0 }
 0x26f   : > { %v6488_v3 = vrot.slane %v3437_v22, 11  ;;  %v2943_v30 = vor.u32 %v2941_v13, %v2940_v6  ;;  %v2944_v36 = vrot.slane %v2940_v6, 4  ;;  %v2965_v20 = vrot.slane %v2963_v53, 7  ;;  %v3207_v40 = vld [vmem:[#allocation2 + $0x5c] sm:$0x1] }
 0x270   : > { %v2948_v33 = vrot.slane %v2946_v50, 7  ;;  %v2690_v21 = vmul.f32 0.2, %v2626_v45  ;;  %v2688_v52 = vmul.f32 0.2, %v2624_v16 }
 0x271   : > { %v3539_v55 = vsel %vm9448_vm6, %v6488_v3, %v3538_v35  ;;  %v3296_v41 = vld [vmem:[#allocation2 + $0x60] sm:$0x2]  ;;  %v3204_v43 = vsel %vm9385_vm15, %v2943_v30, %v3203_v12  ;;  %v2968_v26 = vor.u32 %v2966_v57, %v2965_v20  ;;  %v2970_v19 = vrot.slane %v2965_v20, 4  ;;  %v3402_v53 = vld [vmem:[#allocation2 + $0x60] sm:$0x1] }
 0x272   : > { %3540 = vst [vmem:[#allocation2 + $0x44] sm:$0x1] %v3539_v55  ;;  %v6473_v8 = vrot.slane %v3296_v41, 9  ;;  %3205 = vst [vmem:[#allocation2 + $0x54] sm:$0xf] %v3204_v43  ;;  %v2951_v13 = vor.u32 %v2949_v37, %v2948_v33  ;;  %v2953_v0 = vrot.slane %v2948_v33, 4  ;;  %v2722_v6 = vsel %vm2658_vm7, %v2626_v45, %v2690_v21 }
 0x273   : > { %v2969_v50 = vsel %vm9397_vm2, %v2961_v2, %v2968_v26  ;;  %v3215_v22 = vsel %vm9391_vm1, %v2970_v19, %v3214_v51  ;;  %v6670_v12 = vpack.c.bf16 %v2722_v6, %v2722_v6  ;;  %v2720_v57 = vsel %vm2656_vm8, %v2624_v16, %v2688_v52  ;;  %v9634_v55 = vld [vmem:[#allocation2 + $0xc] sm:$0xf] }
 0x274   : > { %v3403_v3 = vsel %vm9391_vm1, %v6473_v8, %v3402_v53  ;;  %3213 = vst [vmem:[#allocation2 + $0x64] sm:$0xf] %v2969_v50  ;;  %3216 = vst [vmem:[#allocation2 + $0x68] sm:$0x1] %v3215_v22  ;;  %v2952_v45 = vsel %vm9397_vm2, %v2944_v36, %v2951_v13  ;;  %v3208_v25 = vsel %vm9391_vm1, %v2953_v0, %v3207_v40  ;;  %v3656_v13 = vshrl.u32 %v9634_v55, 16  ;;  %v7921_v0 = vld [vmem:[#allocation3 + $0x1c0] sm:$0xff]  }
 0x275   : > { %v6668_v37 = vpack.c.bf16 %v2720_v57, %v2720_v57  ;;  %3404 = vst [vmem:[#allocation2 + $0x60] sm:$0x1] %v3403_v3  ;;  %3206 = vst [vmem:[#allocation2 + $0x58] sm:$0xf] %v2952_v45  ;;  %v2989_v2 = vshrl.u32 %v6670_v12, 16  ;;  %v2627_v51 = vadd.f32 %v9361_v61, %v2588_v54  ;;  %v2503_v16 = vadd.f32 %v9495_v31, %v9308_v44 }
 0x276   : > { %3209 = vst [vmem:[#allocation2 + $0x5c] sm:$0x1] %v3208_v25  ;;  %v2992_v35 = vshll.u32 %v6670_v12, 16  ;;  %v2524_v20 = vadd.f32 %v9507_v59, %v9324_v14  ;;  %v2516_v36 = vadd.f32 %v9509_v62, %v9318_v63  ;;  %v3224_v54 = vld [vmem:[#allocation2 + $0x78] sm:$0xf]  ;;  %7493 = vmatprep.subr.bf16.mxu0 %v7921_v0 }
 0x277   : > { %v2972_v30 = vshrl.u32 %v6668_v37, 16  ;;  %v9631_v33 = vrot.slane %v2989_v2, 7  ;;  %vm2659_vm9 = vcmp.ge.f32.partialorder %v2627_v51, 0.0  ;;  %v2691_v21 = vmul.f32 0.2, %v2627_v51 }
 0x278   : > { %v2586_v52 = vmul.f32 %v9353_v56, %v2503_v16  ;;  %v2975_v44 = vshll.u32 %v6668_v37, 16  ;;  %v2591_v31 = vmul.f32 %v9353_v56, %v2524_v20  ;;  %v2589_v43 = vmul.f32 %v9353_v56, %v2516_v36  ;;  %v3217_v63 = vld [vmem:[#allocation2 + $0x6c] sm:$0xf] }
 0x279   : > { %v9636_v41 = vrot.slane %v2972_v30, 7  ;;  %v3295_v14 = vld [vmem:[#allocation2 + $0x54] sm:$0x2]  ;;  %v2994_v59 = vor.u32 %v2992_v35, %v9631_v33  ;;  %v2723_v62 = vsel %vm2659_vm9, %v2627_v51, %v2691_v21  ;;  %v3399_v6 = vld [vmem:[#allocation2 + $0x54] sm:$0x1] }
 0x27a   : > { %v2625_v26 = vadd.f32 %v9361_v61, %v2586_v52  ;;  %v6472_v19 = vrot.slane %v3295_v14, 9  ;;  %v6671_v8 = vpack.c.bf16 %v2723_v62, %v2723_v62  ;;  %v2630_v22 = vadd.f32 %v9361_v61, %v2591_v31 }
 0x27b   : > { %v2977_v40 = vor.u32 %v2975_v44, %v9636_v41  ;;  %v3440_v53 = vld [vmem:[#allocation2 + $0x64] sm:$0x8]  ;;  %v3225_v50 = vsel %vm9385_vm15, %v2994_v59, %v3224_v54  ;;  %v2628_v12 = vadd.f32 %v9361_v61, %v2589_v43  ;;  %v3547_v45 = vld [vmem:[#allocation2 + $0x68] sm:$0x1]  ;;  %v2995_v54 = vrot.slane %v9631_v33, 4 }
 0x27c   : > { %vm2657_vm10 = vcmp.ge.f32.partialorder %v2625_v26, 0.0  ;;  %v3400_v57 = vsel %vm9391_vm1, %v6472_v19, %v3399_v6  ;;  %v6491_v3 = vrot.slane %v3440_v53, 11  ;;  %v3439_v25 = vld [vmem:[#allocation2 + $0x58] sm:$0x8]  ;;  %3226 = vst [vmem:[#allocation2 + $0x78] sm:$0xf] %v3225_v50 }
 0x27d   : > { %v3218_v37 = vsel %vm9385_vm15, %v2977_v40, %v3217_v63  ;;  %v2997_v2 = vshrl.u32 %v6671_v8, 16  ;;  %3401 = vst [vmem:[#allocation2 + $0x54] sm:$0x1] %v3400_v57  ;;  %v6490_v51 = vrot.slane %v3439_v25, 11  ;;  %v3000_v16 = vshll.u32 %v6671_v8, 16 }
 0x27e   : > { %3219 = vst [vmem:[#allocation2 + $0x6c] sm:$0xf] %v3218_v37  ;;  %v2689_v35 = vmul.f32 0.2, %v2625_v26  ;;  %vm2662_vm11 = vcmp.ge.f32.partialorder %v2630_v22, 0.0  ;;  %v3548_v30 = vsel %vm9448_vm6, %v6491_v3, %v3547_v45  ;;  %vm2660_vm12 = vcmp.ge.f32.partialorder %v2628_v12, 0.0 }
 0x27f   : > { %v3544_v20 = vld [vmem:[#allocation2 + $0x5c] sm:$0x1]  ;;  %v2999_v36 = vrot.slane %v2997_v2, 7  ;;  %v2694_v21 = vmul.f32 0.2, %v2630_v22  ;;  %v2978_v40 = vrot.slane %v9636_v41, 4  ;;  %v2527_v45 = vadd.f32 %v9511_v27, %v9326_v18 }
 0x280   : > { %3549 = vst [vmem:[#allocation2 + $0x68] sm:$0x1] %v3548_v30  ;;  %v3545_v52 = vsel %vm9448_vm6, %v6490_v51, %v3544_v20  ;;  %v3228_v44 = vld [vmem:[#allocation2 + $0x80] sm:$0x1]  ;;  %v2721_v31 = vsel %vm2657_vm10, %v2625_v26, %v2689_v35  ;;  %v2692_v43 = vmul.f32 0.2, %v2628_v12  ;;  %v2519_v35 = vadd.f32 %v9523_v1, %v9320_v11 }
 0x281   : > { %3546 = vst [vmem:[#allocation2 + $0x5c] sm:$0x1] %v3545_v52  ;;  %v3002_v14 = vor.u32 %v3000_v16, %v2999_v36  ;;  %v3004_v59 = vrot.slane %v2999_v36, 4  ;;  %v6669_v63 = vpack.c.bf16 %v2721_v31, %v2721_v31  ;;  %v2726_v62 = vsel %vm2662_vm11, %v2630_v22, %v2694_v21  ;;  %v9659_v19 = vld [vmem:[#allocation2 + $0x10] sm:$0xf] }
 0x282   : > { %v6674_v8 = vpack.c.bf16 %v2726_v62, %v2726_v62  ;;  %v2724_v0 = vsel %vm2660_vm12, %v2628_v12, %v2692_v43  ;;  %v9664_v6 = vcombine.low %v9634_v55, %v9659_v19  ;;  %v3659_v50 = vshll.u32 %v9634_v55, 16  ;;  %v3221_v57 = vld [vmem:[#allocation2 + $0x74] sm:$0x1]  ;;  %v3238_v16 = vld [vmem:[#allocation2 + $0x90] sm:$0xf] }
 0x283   : > { %v3003_v33 = vsel %vm9397_vm2, %v2995_v54, %v3002_v14  ;;  %v3229_v26 = vsel %vm9391_vm1, %v3004_v59, %v3228_v44  ;;  %v2980_v53 = vshrl.u32 %v6669_v63, 16  ;;  %v3298_v22 = vld [vmem:[#allocation2 + $0x78] sm:$0x2]  ;;  %v6672_v3 = vpack.c.bf16 %v2724_v0, %v2724_v0  ;;  %v3408_v30 = vld [vmem:[#allocation2 + $0x78] sm:$0x1] }
 0x284   : > { %3227 = vst [vmem:[#allocation2 + $0x7c] sm:$0xf] %v3003_v33  ;;  %3230 = vst [vmem:[#allocation2 + $0x80] sm:$0x1] %v3229_v26  ;;  %v3023_v41 = vshrl.u32 %v6674_v8, 16  ;;  %v3669_v12 = vshrl.u32 %v9659_v19, 16  ;;  %5228 = vmatprep.mubr.bf16.mxu0 %v9664_v6  ;;  %v2592_v27 = vmul.f32 %v9353_v56, %v2527_v45  ;;  %v2590_v26 = vmul.f32 %v9353_v56, %v2519_v35 }
 0x285   : > { %v6475_v25 = vrot.slane %v3298_v22, 9  ;;  %v3297_v37 = vld [vmem:[#allocation2 + $0x6c] sm:$0x2]  ;;  %v2982_v2 = vrot.slane %v2980_v53, 7  ;;  %v2983_v51 = vshll.u32 %v6669_v63, 16  ;;  %v3026_v21 = vshll.u32 %v6674_v8, 16 }
 0x286   : > { %v6474_v20 = vrot.slane %v3297_v37, 9  ;;  %v9677_v36 = vrot.slane %v3023_v41, 7  ;;  %v3006_v52 = vshrl.u32 %v6672_v3, 16  ;;  %v3405_v44 = vld [vmem:[#allocation2 + $0x6c] sm:$0x1]  ;;  %v3009_v59 = vshll.u32 %v6672_v3, 16 }
 0x287   : > { %v3409_v54 = vsel %vm9391_vm1, %v6475_v25, %v3408_v30  ;;  %v2985_v31 = vor.u32 %v2983_v51, %v2982_v2  ;;  %v2987_v18 = vrot.slane %v2982_v2, 4  ;;  %v9682_v43 = vld [vmem:[#allocation2] sm:$0xf]  ;;  %v9689_v63 = vld [vmem:[#allocation2 + $0x4] sm:$0xf]  ;;  %v2631_v33 = vadd.f32 %v9361_v61, %v2592_v27 }
 0x288   : > { %3410 = vst [vmem:[#allocation2 + $0x78] sm:$0x1] %v3409_v54  ;;  %v3406_v11 = vsel %vm9391_vm1, %v6474_v20, %v3405_v44  ;;  %v3028_v1 = vor.u32 %v3026_v21, %v9677_v36  ;;  %v9687_v14 = vrot.slane %v3006_v52, 7  ;;  %v3231_v0 = vld [vmem:[#allocation2 + $0x84] sm:$0xf]  ;;  %v3029_v22 = vrot.slane %v9677_v36, 4 }
 0x289   : > { %3407 = vst [vmem:[#allocation2 + $0x6c] sm:$0x1] %v3406_v11  ;;  %v2986_v62 = vsel %vm9397_vm2, %v2978_v40, %v2985_v31  ;;  %v3222_v8 = vsel %vm9391_vm1, %v2987_v18, %v3221_v57  ;;  %v9697_v53 = vld [vmem:[#allocation2 + $0x8] sm:$0x1]  ;;  %v6501_v40 = vrot.slane %v9682_v43, 9  ;;  %vm2663_vm13 = vcmp.ge.f32.partialorder %v2631_v33, 0.0 }
 0x28a   : > { %3220 = vst [vmem:[#allocation2 + $0x70] sm:$0xf] %v2986_v62  ;;  %3223 = vst [vmem:[#allocation2 + $0x74] sm:$0x1] %v3222_v8  ;;  %v3239_v41 = vsel %vm9385_vm15, %v3028_v1, %v3238_v16  ;;  %v3011_v3 = vor.u32 %v3009_v59, %v9687_v14  ;;  %v9704_v45 = vld [vmem:[#allocation2 + $0x18] sm:$0xf]  ;;  %v2540_v37 = vadd.f32 %v9544_v42, %v9336_v38 }
 0x28b   : > { %v3442_v57 = vld [vmem:[#allocation2 + $0x7c] sm:$0x8]  ;;  %3240 = vst [vmem:[#allocation2 + $0x90] sm:$0xf] %v3239_v41  ;;  %v9709_v56 = vld [vmem:[%s10919_s3] ss:$0 sm:$0xff] }
 0x28c   : > { %v2629_v61 = vadd.f32 %v9709_v56, %v2590_v26  ;;  %v4065_v25 = vrot.slane %v9689_v63, 5  ;;  %v6493_v2 = vrot.slane %v3442_v57, 11  ;;  %v3232_v51 = vsel %vm9385_vm15, %v3011_v3, %v3231_v0  ;;  %v9718_v30 = vld [vmem:[#allocation2 + $0x1c] sm:$0xf]  ;;  %v3553_v20 = vld [vmem:[#allocation2 + $0x80] sm:$0x1] }
 0x28d   : > { %v2695_v16 = vmul.f32 0.2, %v2631_v33  ;;  %v4068_v35 = vrot.slane %v9697_v53, 5  ;;  %3233 = vst [vmem:[#allocation2 + $0x84] sm:$0xf] %v3232_v51  ;;  %v9722_v54 = vcombine.low %v9704_v45, %v9718_v30  ;;  %v3012_v42 = vrot.slane %v9687_v14, 4 }
 0x28e   : > { %vm2661_vm14 = vcmp.ge.f32.partialorder %v2629_v61, 0.0  ;;  %v2693_v21 = vmul.f32 0.2, %v2629_v61  ;;  %v4067_v52 = vrot.slane %v4065_v25, 4  ;;  %v3554_v38 = vsel %vm9448_vm6, %v6493_v2, %v3553_v20  ;;  %v7922_v59 = vld [vmem:[#allocation3 + $0x180] sm:$0xff]   ;;  %v7927_v41 = vld [vmem:[#allocation3 + $0x1c8] sm:$0xff]  }
 0x28f   : > { %v2727_v44 = vsel %vm2663_vm13, %v2631_v33, %v2695_v16  ;;  %v4066_v31 = vsel %vm8359_vm4, %v6501_v40, %v4065_v25  ;;  %3555 = vst [vmem:[#allocation2 + $0x80] sm:$0x1] %v3554_v38  ;;  %v3680_v1 = vshrl.u32 %v9704_v45, 16  ;;  %v9736_v0 = vld [vmem:[%s10918_s2] ss:$0 sm:$0xff]  ;;  %v2532_v26 = vadd.f32 %v9548_v28, %v9330_v29 }
 0x290   : > { %v6675_v18 = vpack.c.bf16 %v2727_v44, %v2727_v44  ;;  %v2725_v27 = vsel %vm2661_vm14, %v2629_v61, %v2693_v21  ;;  %v4069_v11 = vsel %vm8359_vm4, %v4067_v52, %v4068_v35  ;;  %v2595_v33 = vmul.f32 %v9736_v0, %v2540_v37  ;;  %v3242_v16 = vld [vmem:[#allocation2 + $0x98] sm:$0x1]  ;;  %v7928_v21 = vld [vmem:[#allocation3 + $0x188] sm:$0xff]  }
 0x291   : > { %v6673_v62 = vpack.c.bf16 %v2725_v27, %v2725_v27  ;;  %v6551_v8 = vcombine.low %v4066_v31, %v4069_v11  ;;  %v3441_v3 = vld [vmem:[#allocation2 + $0x70] sm:$0x8]  ;;  %v3683_v61 = vshll.u32 %v9704_v45, 16  ;;  %v2543_v25 = vadd.f32 %v9551_v17, %v9338_v60  ;;  %v3550_v29 = vld [vmem:[#allocation2 + $0x74] sm:$0x1] }
 0x292   : > { %v3031_v40 = vshrl.u32 %v6675_v18, 16  ;;  %v3034_v57 = vshll.u32 %v6675_v18, 16  ;;  %v6492_v2 = vrot.slane %v3441_v3, 11  ;;  %v3300_v51 = vld [vmem:[#allocation2 + $0x90] sm:$0x2]  ;;  %v2634_v20 = vadd.f32 %v9709_v56, %v2595_v33 }
 0x293   : > { %v3014_v35 = vshrl.u32 %v6673_v62, 16  ;;  %5229 = vmatmul.mubr.bf16.vlgmr.msra.gmra.mrb[160].mxu0 %v6551_v8  ;;  %v2593_v37 = vmul.f32 %v9736_v0, %v2532_v26  ;;  %v6477_v28 = vrot.slane %v3300_v51, 9  ;;  %v3017_v38 = vshll.u32 %v6673_v62, 16  ;;  %v3414_v17 = vld [vmem:[#allocation2 + $0x90] sm:$0x1] }
 0x294   : > { %v3033_v52 = vrot.slane %v3031_v40, 7  ;;  %5236 = vmatprep.mubr.bf16.mxu0 %v9722_v54  ;;  %v3632_v44 = vshrl.u32 %v9682_v43, 16  ;;  %7494 = vmatpush3.bf16.msra.mxu0 %v7922_v59  ;;  %v3551_v60 = vsel %vm9448_vm6, %v6492_v2, %v3550_v29  ;;  %v3299_v31 = vld [vmem:[#allocation2 + $0x84] sm:$0x2]  ;;  %vm2666_vm0 = vcmp.ge.f32.partialorder %v2634_v20, 0.0 }
 0x295   : > { %v3016_v18 = vrot.slane %v3014_v35, 7  ;;  %v2632_v27 = vadd.f32 %v9709_v56, %v2593_v37  ;;  %7495 = vmatprep.subr.bf16.mxu0 %v7927_v41  ;;  %3552 = vst [vmem:[#allocation2 + $0x74] sm:$0x1] %v3551_v60  ;;  %v3415_v11 = vsel %vm9391_vm1, %v6477_v28, %v3414_v17  ;;  %v6476_v62 = vrot.slane %v3299_v31, 9  ;;  %v3235_v26 = vld [vmem:[#allocation2 + $0x8c] sm:$0x1] }
 0x296   : > { %v3036_v8 = vor.u32 %v3034_v57, %v3033_v52  ;;  %v3038_v33 = vrot.slane %v3033_v52, 4  ;;  %3416 = vst [vmem:[#allocation2 + $0x90] sm:$0x1] %v3415_v11  ;;  %v3411_v59 = vld [vmem:[#allocation2 + $0x84] sm:$0x1]  ;;  %v3634_v28 = vrot.slane %v3632_v44, 4  ;;  %v6519_v60 = vcombine.low %v9682_v43, %v9689_v63 }
 0x297   : > { %v3019_v3 = vor.u32 %v3017_v38, %v3016_v18  ;;  %v3021_v40 = vrot.slane %v3016_v18, 4  ;;  %v2698_v2 = vmul.f32 0.2, %v2634_v20  ;;  %vm2664_vm3 = vcmp.ge.f32.partialorder %v2632_v27, 0.0  ;;  %v7933_v18 = vld [vmem:[#allocation3 + $0x1d0] sm:$0xff]  }
 0x298   : > { %v3412_v51 = vsel %vm9391_vm1, %v6476_v62, %v3411_v59  ;;  %v3037_v41 = vsel %vm9397_vm2, %v3029_v22, %v3036_v8  ;;  %v3243_v35 = vsel %vm9391_vm1, %v3038_v33, %v3242_v16  ;;  %v2696_v57 = vmul.f32 0.2, %v2632_v27  ;;  %7496 = vmatpush3.bf16.msra.mxu0 %v7928_v21  ;;  %v7934_v11 = vld [vmem:[#allocation3 + $0x190] sm:$0xff]  }
 0x299   : > { %3413 = vst [vmem:[#allocation2 + $0x84] sm:$0x1] %v3412_v51  ;;  %3241 = vst [vmem:[#allocation2 + $0x94] sm:$0xf] %v3037_v41  ;;  %v3020_v37 = vsel %vm9397_vm2, %v3012_v42, %v3019_v3  ;;  %v3236_v29 = vsel %vm9391_vm1, %v3021_v40, %v3235_v26  ;;  %v2730_v36 = vsel %vm2666_vm0, %v2634_v20, %v2698_v2  ;;  %v3635_v21 = vshll.u32 %v9682_v43, 16 }
 0x29a   : > { %3244 = vst [vmem:[#allocation2 + $0x98] sm:$0x1] %v3243_v35  ;;  %3234 = vst [vmem:[#allocation2 + $0x88] sm:$0xf] %v3020_v37  ;;  %v6678_v22 = vpack.c.bf16 %v2730_v36, %v2730_v36  ;;  %v2728_v16 = vsel %vm2664_vm3, %v2632_v27, %v2696_v57  ;;  %v3641_v52 = vshll.u32 %v9689_v63, 16  ;;  %v3645_v14 = vshrl.u32 %v9689_v63, 16  ;;  %7497 = vmatprep.subr.bf16.mxu0 %v7933_v18 }
 0x29b   : > { %3237 = vst [vmem:[#allocation2 + $0x8c] sm:$0x1] %v3236_v29  ;;  %v6676_v38 = vpack.c.bf16 %v2728_v16, %v2728_v16  ;;  %v2596_v42 = vmul.f32 %v9736_v0, %v2543_v25  ;;  %v3637_v20 = vrot.slane %v3635_v21, 5  ;;  %v3651_v31 = vshll.u32 %v9697_v53, 16  ;;  %v3252_v40 = vld [vmem:[#allocation2 + $0xa8] sm:$0xf] }
 0x29c   : > { %v3057_v17 = vshrl.u32 %v6678_v22, 16  ;;  %v3643_v44 = vrot.slane %v3641_v52, 5  ;;  %v3060_v27 = vshll.u32 %v6678_v22, 16  ;;  %v3647_v33 = vrot.slane %v3645_v14, 4  ;;  %7498 = vmatpush3.bf16.msra.mxu0 %v7934_v11  ;;  %v3245_v37 = vld [vmem:[#allocation2 + $0x9c] sm:$0xf] }
 0x29d   : > { %v3040_v62 = vshrl.u32 %v6676_v38, 16  ;;  %v3043_v8 = vshll.u32 %v6676_v38, 16  ;;  %v3638_v59 = vor.u32 %v3637_v20, %v3634_v28  ;;  %v2635_v3 = vadd.f32 %v9709_v56, %v2596_v42  ;;  %v9795_v42 = vld [vmem:[#allocation2 + $0x14] sm:$0x1] }
 0x29e   : > { %v9776_v26 = vrot.slane %v3057_v17, 7  ;;  %v2535_v25 = vadd.f32 %v9562_v32, %v9332_v24  ;;  %v3648_v51 = vor.u32 %v3647_v33, %v3643_v44  ;;  %v3658_v53 = vrot.slane %v3656_v13, 4 }
 0x29f   : > { %v9781_v2 = vrot.slane %v3040_v62, 7  ;;  %v3661_v41 = vrot.slane %v3659_v50, 5  ;;  %v3639_v29 = vrot.slane %v3638_v59, 4  ;;  %v3653_v36 = vrot.slane %v3651_v31, 5 }
 0x2a0   : > { %v3444_v35 = vld [vmem:[#allocation2 + $0x94] sm:$0x8]  ;;  %v3062_v57 = vor.u32 %v3060_v27, %v9776_v26  ;;  %v2594_v24 = vmul.f32 %v9736_v0, %v2535_v25  ;;  %v3063_v22 = vrot.slane %v9776_v26, 4  ;;  %v3649_v14 = vrot.slane %v3648_v51, 4  ;;  %v7906_v51 = vld [vmem:[#allocation3 + $0x100] sm:$0xff]  }
 0x2a1   : > { %v6495_v32 = vrot.slane %v3444_v35, 11  ;;  %v3443_v28 = vld [vmem:[#allocation2 + $0x88] sm:$0x8]  ;;  %v3045_v16 = vor.u32 %v3043_v8, %v9781_v2  ;;  %v3662_v21 = vor.u32 %v3661_v41, %v3658_v53  ;;  %v3559_v13 = vld [vmem:[#allocation2 + $0x98] sm:$0x1]  ;;  %v3644_v38 = vsel %vm8373_vm5, %v3639_v29, %v3643_v44  ;;  %v7938_v8 = vld [vmem:[#allocation3 + $0x1d8] sm:$0xff]  }
 0x2a2   : > { %v6494_v52 = vrot.slane %v3443_v28, 11  ;;  %v3253_v50 = vsel %vm9385_vm15, %v3062_v57, %v3252_v40  ;;  %v3556_v20 = vld [vmem:[#allocation2 + $0x8c] sm:$0x1]  ;;  %vm2667_vm7 = vcmp.ge.f32.partialorder %v2635_v3, 0.0  ;;  %v2699_v18 = vmul.f32 0.2, %v2635_v3  ;;  %7499 = vmatprep.subr.bf16.mxu0 %v7938_v8 }
 0x2a3   : > { %v3560_v17 = vsel %vm9448_vm6, %v6495_v32, %v3559_v13  ;;  %3254 = vst [vmem:[#allocation2 + $0xa8] sm:$0xf] %v3253_v50  ;;  %v3246_v31 = vsel %vm9385_vm15, %v3045_v16, %v3245_v37  ;;  %v3654_v44 = vsel %vm8373_vm5, %v3649_v14, %v3653_v36  ;;  %v2633_v27 = vadd.f32 %v9709_v56, %v2594_v24  ;;  %v7939_v53 = vld [vmem:[#allocation3 + $0x198] sm:$0xff]   ;;  %v7909_v37 = vld [vmem:[#allocation3 + $0x148] sm:$0xff]  }
 0x2a4   : > { %3561 = vst [vmem:[#allocation2 + $0x98] sm:$0x1] %v3560_v17  ;;  %v3557_v11 = vsel %vm9448_vm6, %v6494_v52, %v3556_v20  ;;  %3247 = vst [vmem:[#allocation2 + $0x9c] sm:$0xf] %v3246_v31  ;;  %v9806_v62 = vrot.slane %v3662_v21, 4  ;;  %v6535_v33 = vcombine.low %v3644_v38, %v3654_v44  ;;  %v2731_v59 = vsel %vm2667_vm7, %v2635_v3, %v2699_v18 }
 0x2a5   : > { %3558 = vst [vmem:[#allocation2 + $0x8c] sm:$0x1] %v3557_v11  ;;  %v3665_v25 = vshll.u32 %v9659_v19, 16  ;;  %v3671_v40 = vrot.slane %v3669_v12, 4  ;;  %v6679_v41 = vpack.c.bf16 %v2731_v59, %v2731_v59  ;;  %vm2665_vm8 = vcmp.ge.f32.partialorder %v2633_v27, 0.0  ;;  %7500 = vmatpush3.bf16.msra.mxu0 %v7939_v53 }
 0x2a6   : > { %v2697_v35 = vmul.f32 0.2, %v2633_v27  ;;  %v3675_v57 = vshll.u32 %v9795_v42, 16  ;;  %v3046_v29 = vrot.slane %v9781_v2, 4  ;;  %5067 = vmatprep.mubr.bf16.mxu1 %v6535_v33  ;;  %v6502_v3 = vrot.slane %v9634_v55, 9 }
 0x2a7   : > { %v3667_v36 = vrot.slane %v3665_v25, 5  ;;  %v4072_v24 = vrot.slane %v9659_v19, 5  ;;  %v3065_v32 = vshrl.u32 %v6679_v41, 16  ;;  %v3068_v12 = vshll.u32 %v6679_v41, 16  ;;  %5068 = vmatmul.mubr.bf16.vlgmr.msra.gmra.mrb[128].mxu1 %v6519_v60  ;;  %v3256_v21 = vld [vmem:[#allocation2 + $0xb0] sm:$0x1] }
 0x2a8   : > { %v2729_v28 = vsel %vm2665_vm8, %v2633_v27, %v2697_v35  ;;  %v4075_v16 = vrot.slane %v9795_v42, 5  ;;  %v3677_v55 = vrot.slane %v3675_v57, 5  ;;  %7382 = vmatpush3.bf16.msra.mxu1 %v7906_v51  ;;  %v7910_v19 = vld [vmem:[#allocation3 + $0x108] sm:$0xff]   ;;  %v2556_v63 = vadd.f32 %v9578_v15, %v9348_v46  ;;  %v7913_v60 = vld [vmem:[#allocation3 + $0x150] sm:$0xff]   ;;  %v7940_v25 = vld [vmem:[#allocation3 + $0x1e0] sm:$0xff]  }
 0x2a9   : > { %v6677_v13 = vpack.c.bf16 %v2729_v28, %v2729_v28  ;;  %v3668_v52 = vsel %vm8373_vm5, %v9806_v62, %v3667_v36  ;;  %v3672_v50 = vor.u32 %v3671_v40, %v3667_v36  ;;  %v3067_v14 = vrot.slane %v3065_v32, 7  ;;  %7383 = vmatprep.subr.bf16.mxu1 %v7909_v37  ;;  %v9826_v18 = vld [vmem:[#allocation2 + $0x24] sm:$0xf]  ;;  %v9846_v35 = vld [vmem:[#allocation2 + $0x28] sm:$0xf]  ;;  %7501 = vmatprep.subr.bf16.mxu0 %v7940_v25 }
 0x2aa   : > { %v3302_v38 = vld [vmem:[#allocation2 + $0xa8] sm:$0x2]  ;;  %v4073_v17 = vsel %vm8359_vm4, %v6502_v3, %v4072_v24  ;;  %v4074_v43 = vrot.slane %v4072_v24, 4  ;;  %v2548_v11 = vadd.f32 %v9583_v39, %v9342_v47  ;;  %v2559_v44 = vadd.f32 %v9591_v9, %v9355_v10  ;;  %v3420_v27 = vld [vmem:[#allocation2 + $0xa8] sm:$0x1]  ;;  %v7917_v3 = vld [vmem:[#allocation3 + $0x158] sm:$0xff]  }
 0x2ab   : > { %v6479_v42 = vrot.slane %v3302_v38, 9  ;;  %v3301_v20 = vld [vmem:[#allocation2 + $0x9c] sm:$0x2]  ;;  %v3048_v31 = vshrl.u32 %v6677_v13, 16  ;;  %v3070_v8 = vor.u32 %v3068_v12, %v3067_v14  ;;  %v3072_v33 = vrot.slane %v3067_v14, 4  ;;  %v7914_v57 = vld [vmem:[#allocation3 + $0x110] sm:$0xff]  }
 0x2ac   : > { %v6478_v62 = vrot.slane %v3301_v20, 9  ;;  %v3051_v59 = vshll.u32 %v6677_v13, 16  ;;  %v3417_v15 = vld [vmem:[#allocation2 + $0x9c] sm:$0x1]  ;;  %v3673_v51 = vrot.slane %v3672_v50, 4  ;;  %v4076_v53 = vsel %vm8359_vm4, %v4074_v43, %v4075_v16  ;;  %7384 = vmatpush3.bf16.msra.mxu1 %v7910_v19  ;;  %v7918_v14 = vld [vmem:[#allocation3 + $0x118] sm:$0xff]  }
 0x2ad   : > { %v3421_v46 = vsel %vm9391_vm1, %v6479_v42, %v3420_v27  ;;  %v3050_v40 = vrot.slane %v3048_v31, 7  ;;  %v3071_v10 = vsel %vm9397_vm2, %v3063_v22, %v3070_v8  ;;  %v3257_v39 = vsel %vm9391_vm1, %v3072_v33, %v3256_v21  ;;  %v3249_v9 = vld [vmem:[#allocation2 + $0xa4] sm:$0x1]  ;;  %7385 = vmatprep.subr.bf16.mxu1 %v7913_v60  ;;  %v7942_v16 = vld [vmem:[#allocation3 + $0x1a0] sm:$0xff]   ;;  %v7947_v20 = vld [vmem:[#allocation3 + $0x1f0] sm:$0xff]  }
 0x2ae   : > { %3422 = vst [vmem:[#allocation2 + $0xa8] sm:$0x1] %v3421_v46  ;;  %v3418_v47 = vsel %vm9391_vm1, %v6478_v62, %v3417_v15  ;;  %v9844_v41 = vcombine.low %v4073_v17, %v4076_v53  ;;  %3255 = vst [vmem:[#allocation2 + $0xac] sm:$0xf] %v3071_v10  ;;  %v3678_v26 = vsel %vm8373_vm5, %v3673_v51, %v3677_v55  ;;  %v3693_v24 = vshrl.u32 %v9718_v30, 16  ;;  %v7943_v55 = vld [vmem:[#allocation3 + $0x1e8] sm:$0xff]  }
 0x2af   : > { %3419 = vst [vmem:[#allocation2 + $0x9c] sm:$0x1] %v3418_v47  ;;  %3258 = vst [vmem:[#allocation2 + $0xb0] sm:$0x1] %v3257_v39  ;;  %v3053_v37 = vor.u32 %v3051_v59, %v3050_v40  ;;  %v3055_v36 = vrot.slane %v3050_v40, 4  ;;  %v9852_v22 = vcombine.low %v9826_v18, %v9846_v35  ;;  %v9855_v32 = vcombine.low %v3668_v52, %v3678_v26  ;;  %v7924_v33 = vld [vmem:[#allocation3 + $0x120] sm:$0xff]  }
 0x2b0   : > { %5237 = vmatmul.mubr.bf16.gmra.mrb[164].mxu0 %v9844_v41  ;;  %v3704_v12 = vshrl.u32 %v9826_v18, 16  ;;  %v2599_v28 = vmul.f32 %v9736_v0, %v2556_v63  ;;  %v2597_v52 = vmul.f32 %v9736_v0, %v2548_v11  ;;  %v2600_v50 = vmul.f32 %v9736_v0, %v2559_v44  ;;  %7386 = vmatpush3.bf16.msra.mxu1 %v7914_v57  ;;  %v7929_v15 = vld [vmem:[#allocation3 + $0x168] sm:$0xff]   ;;  %v7949_v26 = vld [vmem:[#allocation3 + $0x1f8] sm:$0xff]  }
 0x2b1   : > { %v3054_v21 = vsel %vm9397_vm2, %v3046_v29, %v3053_v37  ;;  %v3250_v13 = vsel %vm9391_vm1, %v3055_v36, %v3249_v9  ;;  %5244 = vmatprep.mubr.bf16.mxu0 %v9852_v22  ;;  %5075 = vmatprep.mubr.bf16.mxu1 %v9855_v32  ;;  %v2551_v2 = vadd.f32 %v9596_v23, %v9344_v34  ;;  %v3682_v29 = vrot.slane %v3680_v1, 4  ;;  %v7923_v34 = vld [vmem:[#allocation3 + $0x160] sm:$0xff]   ;;  %v9886_v10 = vld [vmem:[#allocation2 + $0x20] sm:$0x1] }
 0x2b2   : > { %3248 = vst [vmem:[#allocation2 + $0xa0] sm:$0xf] %v3054_v21  ;;  %3251 = vst [vmem:[#allocation2 + $0xa4] sm:$0x1] %v3250_v13  ;;  %v2638_v19 = vadd.f32 %v9709_v56, %v2599_v28  ;;  %v3685_v38 = vrot.slane %v3683_v61, 5  ;;  %v3707_v17 = vshll.u32 %v9826_v18, 16  ;;  %v2636_v43 = vadd.f32 %v9709_v56, %v2597_v52  ;;  %5076 = vmatmul.mubr.bf16.gmra.mrb[132].mxu1 %v9664_v6 }
 0x2b3   : > { %v2639_v63 = vadd.f32 %v9709_v56, %v2600_v50  ;;  %v3689_v60 = vshll.u32 %v9718_v30, 16  ;;  %7387 = vmatprep.subr.bf16.mxu1 %v7917_v3  ;;  %v2598_v1 = vmul.f32 %v9736_v0, %v2551_v2  ;;  %7502 = vmatpush3.bf16.msra.mxu0 %v7942_v16  ;;  %v7945_v61 = vld [vmem:[#allocation3 + $0x1a8] sm:$0xff]   ;;  %v3695_v8 = vrot.slane %v3693_v24, 4 }
 0x2b4   : > { %vm2670_vm9 = vcmp.ge.f32.partialorder %v2638_v19, 0.0  ;;  %v2702_v23 = vmul.f32 0.2, %v2638_v19  ;;  %v3686_v42 = vor.u32 %v3685_v38, %v3682_v29  ;;  %vm2668_vm10 = vcmp.ge.f32.partialorder %v2636_v43, 0.0  ;;  %7503 = vmatprep.subr.bf16.mxu0 %v7943_v55  ;;  %7388 = vmatpush3.bf16.msra.mxu1 %v7918_v14  ;;  %v3266_v24 = vld [vmem:[#allocation2 + $0xc0] sm:$0xf] }
 0x2b5   : > { %v2700_v31 = vmul.f32 0.2, %v2636_v43  ;;  %vm2671_vm11 = vcmp.ge.f32.partialorder %v2639_v63, 0.0  ;;  %v2703_v11 = vmul.f32 0.2, %v2639_v63  ;;  %v2637_v6 = vadd.f32 %v9709_v56, %v2598_v1  ;;  %7389 = vmatprep.subr.bf16.mxu1 %v7923_v34  ;;  %v7948_v56 = vld [vmem:[#allocation3 + $0x1b0] sm:$0xff]  }
 0x2b6   : > { %v3446_v44 = vld [vmem:[#allocation2 + $0xac] sm:$0x8]  ;;  %v2734_v27 = vsel %vm2670_vm9, %v2638_v19, %v2702_v23  ;;  %v9884_v62 = vrot.slane %v3689_v60, 5  ;;  %v3565_v40 = vld [vmem:[#allocation2 + $0xb0] sm:$0x1]  ;;  %v9890_v36 = vrot.slane %v3686_v42, 4 }
 0x2b7   : > { %v6497_v59 = vrot.slane %v3446_v44, 11  ;;  %v6682_v0 = vpack.c.bf16 %v2734_v27, %v2734_v27  ;;  %v2732_v25 = vsel %vm2668_vm10, %v2636_v43, %v2700_v31  ;;  %v2735_v46 = vsel %vm2671_vm11, %v2639_v63, %v2703_v11  ;;  %7504 = vmatpush3.bf16.msra.mxu0 %v7945_v61  ;;  %v7930_v13 = vld [vmem:[#allocation3 + $0x128] sm:$0xff]   ;;  %v7935_v29 = vld [vmem:[#allocation3 + $0x170] sm:$0xff]   ;;  %v3259_v43 = vld [vmem:[#allocation2 + $0xb4] sm:$0xf] }
 0x2b8   : > { %v6680_v51 = vpack.c.bf16 %v2732_v25, %v2732_v25  ;;  %v6683_v53 = vpack.c.bf16 %v2735_v46, %v2735_v46  ;;  %vm2669_vm12 = vcmp.ge.f32.partialorder %v2637_v6, 0.0  ;;  %v2701_v47 = vmul.f32 0.2, %v2637_v6  ;;  %7505 = vmatprep.subr.bf16.mxu0 %v7947_v20  ;;  %7390 = vmatpush3.bf16.msra.mxu1 %v7924_v33  ;;  %v7950_v34 = vld [vmem:[#allocation3 + $0x1b8] sm:$0xff]   ;;  %v3281_v42 = vld [vmem:[#allocation2 + $0xcc] sm:$0xf] }
 0x2b9   : > { %v3566_v39 = vsel %vm9448_vm6, %v6497_v59, %v3565_v40  ;;  %v3445_v9 = vld [vmem:[#allocation2 + $0xa0] sm:$0x8]  ;;  %v3091_v57 = vshrl.u32 %v6682_v0, 16  ;;  %v3094_v37 = vshll.u32 %v6682_v0, 16  ;;  %v3562_v52 = vld [vmem:[#allocation2 + $0xa4] sm:$0x1]  ;;  %v3696_v2 = vor.u32 %v3695_v8, %v9884_v62  ;;  %7391 = vmatprep.subr.bf16.mxu1 %v7929_v15 }
 0x2ba   : > { %3567 = vst [vmem:[#allocation2 + $0xb0] sm:$0x1] %v3566_v39  ;;  %v6496_v3 = vrot.slane %v3445_v9, 11  ;;  %v3074_v28 = vshrl.u32 %v6680_v51, 16  ;;  %v3077_v16 = vshll.u32 %v6680_v51, 16  ;;  %v3099_v21 = vshrl.u32 %v6683_v53, 16 }
 0x2bb   : > { %v3093_v50 = vrot.slane %v3091_v57, 7  ;;  %v3102_v55 = vshll.u32 %v6683_v53, 16  ;;  %v2733_v19 = vsel %vm2669_vm12, %v2637_v6, %v2701_v47  ;;  %7506 = vmatpush3.bf16.msra.mxu0 %v7948_v56  ;;  %v3270_v61 = vld [vmem:[#allocation2 + $0xc8] sm:$0x1]  ;;  %v3692_v20 = vsel %vm8373_vm5, %v9890_v36, %v9884_v62  ;;  %v7944_v46 = vld [vmem:[#allocation3 + $0x178] sm:$0xff]  }
 0x2bc   : > { %v3563_v38 = vsel %vm9448_vm6, %v6496_v3, %v3562_v52  ;;  %v3076_v14 = vrot.slane %v3074_v28, 7  ;;  %v3101_v63 = vrot.slane %v3099_v21, 7  ;;  %v6681_v60 = vpack.c.bf16 %v2733_v19, %v2733_v19  ;;  %7507 = vmatprep.subr.bf16.mxu0 %v7949_v26  ;;  %7392 = vmatpush3.bf16.msra.mxu1 %v7930_v13  ;;  %v7936_v8 = vld [vmem:[#allocation3 + $0x130] sm:$0xff]   ;;  %v3263_v47 = vld [vmem:[#allocation2 + $0xbc] sm:$0x1]  ;;  %v7946_v26 = vld [vmem:[#allocation3 + $0x138] sm:$0xff]  }
 0x2bd   : > { %3564 = vst [vmem:[#allocation2 + $0xa4] sm:$0x1] %v3563_v38  ;;  %v3096_v23 = vor.u32 %v3094_v37, %v3093_v50  ;;  %v3097_v1 = vrot.slane %v3093_v50, 4  ;;  %v3699_v31 = vshll.u32 %v9886_v10, 16  ;;  %v3697_v6 = vrot.slane %v3696_v2, 4  ;;  %7393 = vmatprep.subr.bf16.mxu1 %v7935_v29  ;;  %v9921_v13 = vld [vmem:[#allocation3 + $0x200] sm:$0xff]  }
 0x2be   : > { %v3079_v11 = vor.u32 %v3077_v16, %v3076_v14  ;;  %v3104_v44 = vor.u32 %v3102_v55, %v3101_v63  ;;  %v3106_v27 = vrot.slane %v3101_v63, 4  ;;  %v3082_v59 = vshrl.u32 %v6681_v60, 16  ;;  %v3285_v57 = vld [vmem:[#allocation2 + $0xd4] sm:$0x1]  ;;  %v9919_v21 = vld [vmem:[#allocation2 + $0x30] sm:$0xf] }
 0x2bf   : > { %v3267_v33 = vsel %vm9385_vm15, %v3096_v23, %v3266_v24  ;;  %v3085_v0 = vshll.u32 %v6681_v60, 16  ;;  %v3701_v25 = vrot.slane %v3699_v31, 5  ;;  %7508 = vmatpush3.bf16.msra.mxu0 %v7950_v34  ;;  %v6503_v39 = vrot.slane %v9704_v45, 9  ;;  %v9939_v2 = vld [vmem:[#allocation2 + $0x2c] sm:$0x1] }
 0x2c0   : > { %3268 = vst [vmem:[#allocation2 + $0xc0] sm:$0xf] %v3267_v33  ;;  %v3260_v62 = vsel %vm9385_vm15, %v3079_v11, %v3259_v43  ;;  %v3282_v15 = vsel %vm9385_vm15, %v3079_v11, %v3281_v42  ;;  %v3105_v40 = vsel %vm9397_vm2, %v3097_v1, %v3104_v44  ;;  %v3271_v51 = vsel %vm9391_vm1, %v3106_v27, %v3270_v61  ;;  %v9952_v23 = vld [vmem:[#allocation2 + $0x3c] sm:$0xf] }
 0x2c1   : > { %3261 = vst [vmem:[#allocation2 + $0xb4] sm:$0xf] %v3260_v62  ;;  %3283 = vst [vmem:[#allocation2 + $0xcc] sm:$0xf] %v3282_v15  ;;  %v3084_v53 = vrot.slane %v3082_v59, 7  ;;  %v3702_v56 = vsel %vm8373_vm5, %v3697_v6, %v3701_v25  ;;  %v4079_v5 = vrot.slane %v9718_v30, 5  ;;  %7394 = vmatpush3.bf16.msra.mxu1 %v7936_v8  ;;  %v9950_v60 = vcombine.low %v9919_v21, %v9943_v49 }
 0x2c2   : > { %3269 = vst [vmem:[#allocation2 + $0xc4] sm:$0xf] %v3105_v40  ;;  %3272 = vst [vmem:[#allocation2 + $0xc8] sm:$0x1] %v3271_v51  ;;  %v3717_v9 = vshrl.u32 %v9846_v35, 16  ;;  %v9916_v37 = vcombine.low %v3692_v20, %v3702_v56  ;;  %v4082_v36 = vrot.slane %v9886_v10, 5  ;;  %7395 = vmatprep.subr.bf16.mxu1 %v7944_v46 }
 0x2c3   : > { %v3080_v3 = vrot.slane %v3076_v14, 4  ;;  %v3087_v24 = vor.u32 %v3085_v0, %v3084_v53  ;;  %v3089_v28 = vrot.slane %v3084_v53, 4  ;;  %v4081_v16 = vrot.slane %v4079_v5, 4  ;;  %v9967_v51 = vld [vmem:[#allocation2 + $0x40] sm:$0xf] }
 0x2c4   : > { %5083 = vmatprep.mubr.bf16.mxu1 %v9916_v37  ;;  %v4080_v45 = vsel %vm8359_vm4, %v6503_v39, %v4079_v5  ;;  %v3706_v30 = vrot.slane %v3704_v12, 4  ;;  %v3709_v10 = vrot.slane %v3707_v17, 5  ;;  %v3728_v17 = vshrl.u32 %v9919_v21, 16 }
 0x2c5   : > { %v3088_v52 = vsel %vm9397_vm2, %v3080_v3, %v3087_v24  ;;  %v3264_v50 = vsel %vm9391_vm1, %v3089_v28, %v3263_v47  ;;  %v3286_v55 = vsel %vm9391_vm1, %v3089_v28, %v3285_v57  ;;  %v4083_v19 = vsel %vm8359_vm4, %v4081_v16, %v4082_v36  ;;  %5084 = vmatmul.mubr.bf16.gmra.mrb[136].mxu1 %v9722_v54 }
 0x2c6   : > { %3262 = vst [vmem:[#allocation2 + $0xb8] sm:$0xf] %v3088_v52  ;;  %3265 = vst [vmem:[#allocation2 + $0xbc] sm:$0x1] %v3264_v50  ;;  %v9941_v12 = vcombine.low %v4080_v45, %v4083_v19  ;;  %v3710_v29 = vor.u32 %v3709_v10, %v3706_v30  ;;  %v3713_v38 = vshll.u32 %v9846_v35, 16  ;;  %7396 = vmatpush3.bf16.msra.mxu1 %v7946_v26  ;;  %v3731_v63 = vshll.u32 %v9919_v21, 16 }
 0x2c7   : > { %3284 = vst [vmem:[#allocation2 + $0xd0] sm:$0xf] %v3088_v52  ;;  %3287 = vst [vmem:[#allocation2 + $0xd4] sm:$0x1] %v3286_v55  ;;  %v3304_v14 = vld [vmem:[#allocation2 + $0xc0] sm:$0x2]  ;;  %7677 = vmatprep.subr.bf16.mxu1 %v9921_v13  ;;  %v9972_v39 = vcombine.low %v9952_v23, %v9967_v51 }
 0x2c8   : > { %v3426_v43 = vld [vmem:[#allocation2 + $0xc0] sm:$0x1]  ;;  %v3719_v34 = vrot.slane %v3717_v9, 4  ;;  %v6481_v1 = vrot.slane %v3304_v14, 9  ;;  %v3303_v42 = vld [vmem:[#allocation2 + $0xb4] sm:$0x2]  ;;  %5245 = vmatmul.mubr.bf16.gmra.mrb[168].mxu0 %v9941_v12 }
 0x2c9   : > { %v3305_v61 = vld [vmem:[#allocation2 + $0xcc] sm:$0x2]  ;;  %v3723_v20 = vshll.u32 %v9939_v2, 16  ;;  %v6480_v31 = vrot.slane %v3303_v42, 9  ;;  %v3423_v44 = vld [vmem:[#allocation2 + $0xb4] sm:$0x1]  ;;  %5252 = vmatprep.mubr.bf16.mxu0 %v9950_v60 }
 0x2ca   : > { %v6482_v11 = vrot.slane %v3305_v61, 9  ;;  %v3711_v27 = vrot.slane %v3710_v29, 4  ;;  %v6504_v6 = vrot.slane %v9826_v18, 9  ;;  %v3427_v8 = vsel %vm9391_vm1, %v6481_v1, %v3426_v43  ;;  %v3429_v33 = vld [vmem:[#allocation2 + $0xcc] sm:$0x1] }
 0x2cb   : > { %v3448_v59 = vld [vmem:[#allocation2 + $0xc4] sm:$0x8]  ;;  %v3741_v0 = vshrl.u32 %v9943_v49, 16  ;;  %v3715_v25 = vrot.slane %v3713_v38, 5  ;;  %3428 = vst [vmem:[#allocation2 + $0xc0] sm:$0x1] %v3427_v8  ;;  %v3424_v46 = vsel %vm9391_vm1, %v6480_v31, %v3423_v44 }
 0x2cc   : > { %v3430_v62 = vsel %vm9391_vm1, %v6482_v11, %v3429_v33  ;;  %v6499_v15 = vrot.slane %v3448_v59, 11  ;;  %v4086_v40 = vrot.slane %v9846_v35, 5  ;;  %3425 = vst [vmem:[#allocation2 + $0xb4] sm:$0x1] %v3424_v46  ;;  %v3571_v18 = vld [vmem:[#allocation2 + $0xc8] sm:$0x1] }
 0x2cd   : > { %3431 = vst [vmem:[#allocation2 + $0xcc] sm:$0x1] %v3430_v62  ;;  %v3720_v53 = vor.u32 %v3719_v34, %v3715_v25  ;;  %v3725_v47 = vrot.slane %v3723_v20, 5  ;;  %v4089_v56 = vrot.slane %v9939_v2, 5  ;;  %v3447_v5 = vld [vmem:[#allocation2 + $0xb8] sm:$0x8]  ;;  %v3716_v35 = vsel %vm8373_vm5, %v3711_v27, %v3715_v25 }
 0x2ce   : > { %v3572_v7 = vsel %vm9448_vm6, %v6499_v15, %v3571_v18  ;;  %v3449_v9 = vld [vmem:[#allocation2 + $0xd0] sm:$0x8]  ;;  %v4087_v57 = vsel %vm8359_vm4, %v6504_v6, %v4086_v40  ;;  %v3752_v36 = vshrl.u32 %v9952_v23, 16  ;;  %v3591_v26 = vld [vmem:[#allocation2 + $0x38] sm:$0x1]  ;;  %v6498_v3 = vrot.slane %v3447_v5, 11 }
 0x2cf   : > { %3573 = vst [vmem:[#allocation2 + $0xc8] sm:$0x1] %v3572_v7  ;;  %v6500_v24 = vrot.slane %v3449_v9, 11  ;;  %v3568_v28 = vld [vmem:[#allocation2 + $0xbc] sm:$0x1]  ;;  %v3721_v16 = vrot.slane %v3720_v53, 4 }
 0x2d0   : > { %v4088_v45 = vrot.slane %v4086_v40, 4  ;;  %v3574_v30 = vld [vmem:[#allocation2 + $0xd4] sm:$0x1]  ;;  %v3755_v10 = vshll.u32 %v9952_v23, 16  ;;  %v3765_v52 = vshrl.u32 %v9967_v51, 16  ;;  %v3730_v50 = vrot.slane %v3728_v17, 4 }
 0x2d1   : > { %v3733_v55 = vrot.slane %v3731_v63, 5  ;;  %v3569_v19 = vsel %vm9448_vm6, %v6498_v3, %v3568_v28  ;;  %v3575_v2 = vsel %vm9448_vm6, %v6500_v24, %v3574_v30  ;;  %v3726_v29 = vsel %vm8373_vm5, %v3721_v16, %v3725_v47  ;;  %v9996_v34 = vld [vmem:[#allocation2 + $0x48] sm:$0xf]  ;;  %v3594_v6 = vld [vmem:[#allocation2 + $0x44] sm:$0x1] }
 0x2d2   : > { %v4090_v38 = vsel %vm8359_vm4, %v4088_v45, %v4089_v56  ;;  %3570 = vst [vmem:[#allocation2 + $0xbc] sm:$0x1] %v3569_v19  ;;  %3576 = vst [vmem:[#allocation2 + $0xd4] sm:$0x1] %v3575_v2  ;;  %v9991_v14 = vcombine.low %v3716_v35, %v3726_v29  ;;  %v3737_v63 = vshll.u32 %v9943_v49, 16  ;;  %v3743_v1 = vrot.slane %v3741_v0, 4 }
 0x2d3   : > { %v9993_v43 = vcombine.low %v4087_v57, %v4090_v38  ;;  %v3734_v17 = vor.u32 %v3733_v55, %v3730_v50  ;;  %v3747_v4 = vshll.u32 %v3591_v26, 16  ;;  %v6505_v42 = vrot.slane %v9919_v21, 9  ;;  %v10027_v16 = vld [vmem:[#allocation2 + $0x54] sm:$0xf]  ;;  %v3597_v45 = vld [vmem:[#allocation2 + $0x50] sm:$0x1] }
 0x2d4   : > { %v4093_v61 = vrot.slane %v9943_v49, 5  ;;  %5091 = vmatprep.mubr.bf16.mxu1 %v9991_v14  ;;  %v3739_v31 = vrot.slane %v3737_v63, 5  ;;  %v4096_v11 = vrot.slane %v3591_v26, 5  ;;  %v3776_v27 = vshrl.u32 %v9996_v34, 16  ;;  %v10007_v49 = vld [vmem:[#allocation2 + $0x4c] sm:$0xf] }
 0x2d5   : > { %5253 = vmatmul.mubr.bf16.gmra.mrb[172].mxu0 %v9993_v43  ;;  %v3735_v20 = vrot.slane %v3734_v17, 4  ;;  %5092 = vmatmul.mubr.bf16.gmra.mrb[140].mxu1 %v9852_v22  ;;  %v3749_v33 = vrot.slane %v3747_v4, 5  ;;  %v3754_v59 = vrot.slane %v3752_v36, 4  ;;  %v3757_v25 = vrot.slane %v3755_v10, 5  ;;  %v10035_v19 = vld [vmem:[#allocation2 + $0x58] sm:$0xf] }
 0x2d6   : > { %5260 = vmatprep.mubr.bf16.mxu0 %v9972_v39  ;;  %v4095_v44 = vrot.slane %v4093_v61, 4  ;;  %v3744_v8 = vor.u32 %v3743_v1, %v3739_v31  ;;  %v4094_v21 = vsel %vm8359_vm4, %v6505_v42, %v4093_v61  ;;  %v3761_v46 = vshll.u32 %v9967_v51, 16 }
 0x2d7   : > { %v3767_v62 = vrot.slane %v3765_v52, 4  ;;  %v3740_v15 = vsel %vm8373_vm5, %v3735_v20, %v3739_v31  ;;  %v3779_v18 = vshll.u32 %v9996_v34, 16  ;;  %v3771_v53 = vshll.u32 %v3594_v6, 16 }
 0x2d8   : > { %v4097_v0 = vsel %vm8359_vm4, %v4095_v44, %v4096_v11  ;;  %v3745_v40 = vrot.slane %v3744_v8, 4  ;;  %v3789_v47 = vshrl.u32 %v10007_v49, 16  ;;  %v3758_v56 = vor.u32 %v3757_v25, %v3754_v59  ;;  %v3600_v59 = vld [vmem:[#allocation2 + $0x5c] sm:$0x1] }
 0x2d9   : > { %v3763_v7 = vrot.slane %v3761_v46, 5  ;;  %v4100_v5 = vrot.slane %v9967_v51, 5  ;;  %v10019_v35 = vcombine.low %v4094_v21, %v4097_v0  ;;  %v10023_v57 = vcombine.low %v9996_v34, %v10007_v49  ;;  %v10056_v21 = vld [vmem:[#allocation2 + $0x60] sm:$0xf] }
 0x2da   : > { %v3750_v9 = vsel %vm8373_vm5, %v3745_v40, %v3749_v33  ;;  %v4103_v36 = vrot.slane %v3594_v6, 5  ;;  %v3759_v3 = vrot.slane %v3758_v56, 4  ;;  %v3773_v28 = vrot.slane %v3771_v53, 5  ;;  %v10063_v40 = vld [vmem:[#allocation2 + $0x64] sm:$0xf] }
 0x2db   : > { %v10025_v26 = vcombine.low %v3740_v15, %v3750_v9  ;;  %v3768_v24 = vor.u32 %v3767_v62, %v3763_v7  ;;  %v6506_v51 = vrot.slane %v9952_v23, 9  ;;  %v4102_v30 = vrot.slane %v4100_v5, 4 }
 0x2dc   : > { %v3778_v10 = vrot.slane %v3776_v27, 4  ;;  %v3781_v52 = vrot.slane %v3779_v18, 5  ;;  %v3764_v50 = vsel %vm8373_vm5, %v3759_v3, %v3763_v7  ;;  %v3785_v2 = vshll.u32 %v10007_v49, 16 }
 0x2dd   : > { %5261 = vmatmul.mubr.bf16.gmra.mrb[176].mxu0 %v10019_v35  ;;  %5099 = vmatprep.mubr.bf16.mxu1 %v10025_v26  ;;  %v3769_v55 = vrot.slane %v3768_v24, 4  ;;  %v3791_v29 = vrot.slane %v3789_v47, 4  ;;  %v3800_v23 = vshrl.u32 %v10027_v16, 16  ;;  %v3803_v38 = vshll.u32 %v10027_v16, 16 }
 0x2de   : > { %5268 = vmatprep.mubr.bf16.mxu0 %v10023_v57  ;;  %5100 = vmatmul.mubr.bf16.gmra.mrb[144].mxu1 %v9950_v60  ;;  %v3782_v17 = vor.u32 %v3781_v52, %v3778_v10  ;;  %v3795_v63 = vshll.u32 %v3597_v45, 16  ;;  %v4104_v4 = vsel %vm8359_vm4, %v4102_v30, %v4103_v36  ;;  %v3787_v42 = vrot.slane %v3785_v2, 5 }
 0x2df   : > { %v3774_v1 = vsel %vm8373_vm5, %v3769_v55, %v3773_v28  ;;  %v4107_v61 = vrot.slane %v10007_v49, 5  ;;  %v3813_v31 = vshrl.u32 %v10035_v19, 16  ;;  %v10051_v11 = vcombine.low %v10027_v16, %v10035_v19 }
 0x2e0   : > { %v10046_v20 = vcombine.low %v3764_v50, %v3774_v1  ;;  %v3783_v44 = vrot.slane %v3782_v17, 4  ;;  %v4101_v27 = vsel %vm8359_vm4, %v6506_v51, %v4100_v5  ;;  %v3792_v6 = vor.u32 %v3791_v29, %v3787_v42 }
 0x2e1   : > { %v3797_v8 = vrot.slane %v3795_v63, 5  ;;  %v6507_v33 = vrot.slane %v9996_v34, 9  ;;  %v10059_v49 = vcombine.low %v4101_v27, %v4104_v4  ;;  %v4109_v0 = vrot.slane %v4107_v61, 4  ;;  %v3603_v63 = vld [vmem:[#allocation2 + $0x68] sm:$0x1] }
 0x2e2   : > { %5107 = vmatprep.mubr.bf16.mxu1 %v10046_v20  ;;  %v4110_v25 = vrot.slane %v3597_v45, 5  ;;  %v3802_v46 = vrot.slane %v3800_v23, 4  ;;  %v3788_v62 = vsel %vm8373_vm5, %v3783_v44, %v3787_v42  ;;  %v3793_v15 = vrot.slane %v3792_v6, 4  ;;  %v10078_v45 = vld [vmem:[#allocation2 + $0x6c] sm:$0xf] }
 0x2e3   : > { %v3805_v18 = vrot.slane %v3803_v38, 5  ;;  %v3809_v53 = vshll.u32 %v10035_v19, 16  ;;  %v3824_v34 = vshrl.u32 %v10056_v21, 16  ;;  %v3827_v47 = vshll.u32 %v10056_v21, 16  ;;  %v10095_v27 = vld [vmem:[#allocation2 + $0x70] sm:$0xf] }
 0x2e4   : > { %v3815_v56 = vrot.slane %v3813_v31, 4  ;;  %v3819_v7 = vshll.u32 %v3600_v59, 16  ;;  %v3798_v5 = vsel %vm8373_vm5, %v3793_v15, %v3797_v8  ;;  %v4111_v24 = vsel %vm8359_vm4, %v4109_v0, %v4110_v25  ;;  %v10108_v15 = vld [vmem:[#allocation2 + $0x78] sm:$0xf] }
 0x2e5   : > { %5269 = vmatmul.mubr.bf16.gmra.mrb[180].mxu0 %v10059_v49  ;;  %v3806_v9 = vor.u32 %v3805_v18, %v3802_v46  ;;  %v3811_v36 = vrot.slane %v3809_v53, 5  ;;  %v10073_v3 = vcombine.low %v3788_v62, %v3798_v5  ;;  %v3837_v28 = vshrl.u32 %v10063_v40, 16 }
 0x2e6   : > { %5276 = vmatprep.mubr.bf16.mxu0 %v10051_v11  ;;  %5108 = vmatmul.mubr.bf16.gmra.mrb[148].mxu1 %v9972_v39  ;;  %v10082_v51 = vcombine.low %v10056_v21, %v10063_v40  ;;  %v4114_v52 = vrot.slane %v10035_v19, 5  ;;  %v4108_v50 = vsel %vm8359_vm4, %v6507_v33, %v4107_v61  ;;  %v3821_v55 = vrot.slane %v3819_v7, 5 }
 0x2e7   : > { %v3807_v30 = vrot.slane %v3806_v9, 4  ;;  %v3816_v10 = vor.u32 %v3815_v56, %v3811_v36  ;;  %5115 = vmatprep.mubr.bf16.mxu1 %v10073_v3  ;;  %v3826_v2 = vrot.slane %v3824_v34, 4  ;;  %v3829_v29 = vrot.slane %v3827_v47, 5 }
 0x2e8   : > { %11007 = vst [vmem:[#allocation10_spill] sm:$0xff] %v10082_v51  ;;  %v10088_v23 = vcombine.low %v4108_v50, %v4111_v24  ;;  %v4117_v38 = vrot.slane %v3600_v59, 5  ;;  %v3848_v17 = vshrl.u32 %v10078_v45, 16  ;;  %v3833_v1 = vshll.u32 %v10063_v40, 16  ;;  %v10120_v50 = vld [vmem:[#allocation2 + $0x7c] sm:$0xf] }
 0x2e9   : > { %v3812_v4 = vsel %vm8373_vm5, %v3807_v30, %v3811_v36  ;;  %v3817_v19 = vrot.slane %v3816_v10, 4  ;;  %v3830_v42 = vor.u32 %v3829_v29, %v3826_v2  ;;  %v3839_v31 = vrot.slane %v3837_v28, 4  ;;  %v3606_v28 = vld [vmem:[#allocation2 + $0x74] sm:$0x1] }
 0x2ea   : > { %v6508_v44 = vrot.slane %v10027_v16, 9  ;;  %v4116_v61 = vrot.slane %v4114_v52, 4  ;;  %v3851_v6 = vshll.u32 %v10078_v45, 16  ;;  %v3835_v8 = vrot.slane %v3833_v1, 5 }
 0x2eb   : > { %v3822_v33 = vsel %vm8373_vm5, %v3817_v19, %v3821_v55  ;;  %v3843_v59 = vshll.u32 %v3603_v63, 16  ;;  %v3831_v16 = vrot.slane %v3830_v42, 4  ;;  %v3861_v46 = vshrl.u32 %v10095_v27, 16 }
 0x2ec   : > { %v10102_v0 = vcombine.low %v3812_v4, %v3822_v33  ;;  %v4118_v25 = vsel %vm8359_vm4, %v4116_v61, %v4117_v38  ;;  %v3840_v62 = vor.u32 %v3839_v31, %v3835_v8  ;;  %v3850_v18 = vrot.slane %v3848_v17, 4  ;;  %v10138_v31 = vld [vmem:[#allocation2 + $0x84] sm:$0xf] }
 0x2ed   : > { %5277 = vmatmul.mubr.bf16.gmra.mrb[184].mxu0 %v10088_v23  ;;  %v4115_v53 = vsel %vm8359_vm4, %v6508_v44, %v4114_v52  ;;  %v4121_v34 = vrot.slane %v10063_v40, 5  ;;  %v3853_v47 = vrot.slane %v3851_v6, 5  ;;  %v3857_v56 = vshll.u32 %v10095_v27, 16 }
 0x2ee   : > { %5284 = vmatprep.mubr.bf16.mxu0 %v10082_v51  ;;  %5116 = vmatmul.mubr.bf16.gmra.mrb[152].mxu1 %v10023_v57  ;;  %v10115_v7 = vcombine.low %v4115_v53, %v4118_v25  ;;  %v3845_v5 = vrot.slane %v3843_v59, 5  ;;  %v3836_v9 = vsel %vm8373_vm5, %v3831_v16, %v3835_v8  ;;  %v4124_v36 = vrot.slane %v3603_v63, 5  ;;  %v3609_v53 = vld [vmem:[#allocation2 + $0x80] sm:$0x1] }
 0x2ef   : > { %5123 = vmatprep.mubr.bf16.mxu1 %v10102_v0  ;;  %v3872_v24 = vshrl.u32 %v10108_v15, 16  ;;  %v3854_v30 = vor.u32 %v3853_v47, %v3850_v18  ;;  %v3841_v10 = vrot.slane %v3840_v62, 4  ;;  %v3875_v52 = vshll.u32 %v10108_v15, 16 }
 0x2f0   : > { %v3859_v40 = vrot.slane %v3857_v56, 5  ;;  %v3863_v55 = vrot.slane %v3861_v46, 4  ;;  %v10125_v2 = vcombine.low %v10078_v45, %v10095_v27  ;;  %v6509_v29 = vrot.slane %v10056_v21, 9  ;;  %v10151_v56 = vld [vmem:[#allocation2 + $0x88] sm:$0xf] }
 0x2f1   : > { %v4123_v38 = vrot.slane %v4121_v34, 4  ;;  %v3846_v17 = vsel %vm8373_vm5, %v3841_v10, %v3845_v5  ;;  %v3867_v63 = vshll.u32 %v3606_v28, 16  ;;  %v3885_v19 = vshrl.u32 %v10120_v50, 16 }
 0x2f2   : > { %11008 = vst [vmem:[#allocation9_spill] sm:$0xff] %v10125_v2  ;;  %v10132_v1 = vcombine.low %v3836_v9, %v3846_v17  ;;  %v3855_v42 = vrot.slane %v3854_v30, 4  ;;  %v3864_v21 = vor.u32 %v3863_v55, %v3859_v40  ;;  %v3874_v44 = vrot.slane %v3872_v24, 4 }
 0x2f3   : > { %v4125_v4 = vsel %vm8359_vm4, %v4123_v38, %v4124_v36  ;;  %v3877_v61 = vrot.slane %v3875_v52, 5  ;;  %v3881_v6 = vshll.u32 %v10120_v50, 16  ;;  %v4122_v8 = vsel %vm8359_vm4, %v6509_v29, %v4121_v34  ;;  %v10169_v38 = vld [vmem:[#allocation2 + $0x90] sm:$0xf] }
 0x2f4   : > { %v4128_v33 = vrot.slane %v10095_v27, 5  ;;  %v10145_v59 = vcombine.low %v4122_v8, %v4125_v4  ;;  %v3869_v25 = vrot.slane %v3867_v63, 5  ;;  %v3860_v16 = vsel %vm8373_vm5, %v3855_v42, %v3859_v40 }
 0x2f5   : > { %5285 = vmatmul.mubr.bf16.gmra.mrb[188].mxu0 %v10115_v7  ;;  %v4131_v46 = vrot.slane %v3606_v28, 5  ;;  %v3896_v62 = vshrl.u32 %v10138_v31, 16  ;;  %v3899_v18 = vshll.u32 %v10138_v31, 16  ;;  %v3865_v47 = vrot.slane %v3864_v21, 4 }
 0x2f6   : > { %5292 = vmatprep.mubr.bf16.mxu0 %v10125_v2  ;;  %5124 = vmatmul.mubr.bf16.gmra.mrb[156].mxu1 %v10051_v11  ;;  %11009 = vst [vmem:[#allocation14_spill] sm:$0xff] %v10145_v59  ;;  %v3878_v5 = vor.u32 %v3877_v61, %v3874_v44  ;;  %v3883_v9 = vrot.slane %v3881_v6, 5  ;;  %v3887_v34 = vrot.slane %v3885_v19, 4  ;;  %v10155_v27 = vcombine.low %v10108_v15, %v10120_v50  ;;  %v3612_v44 = vld [vmem:[#allocation2 + $0x8c] sm:$0x1] }
 0x2f7   : > { %5131 = vmatprep.mubr.bf16.mxu1 %v10132_v1  ;;  %v6510_v36 = vrot.slane %v10078_v45, 9  ;;  %v4130_v24 = vrot.slane %v4128_v33, 4  ;;  %v3870_v28 = vsel %vm8373_vm5, %v3865_v47, %v3869_v25  ;;  %v3891_v30 = vshll.u32 %v3609_v53, 16  ;;  %v10185_v47 = vld [vmem:[#allocation2 + $0x94] sm:$0xf] }
 0x2f8   : > { %11010 = vst [vmem:[#allocation12_spill] sm:$0xff] %v10155_v27  ;;  %v10162_v10 = vcombine.low %v3860_v16, %v3870_v28  ;;  %v3909_v40 = vshrl.u32 %v10151_v56, 16  ;;  %v3905_v55 = vshll.u32 %v10151_v56, 16  ;;  %v3879_v45 = vrot.slane %v3878_v5, 4  ;;  %v10195_v28 = vld [vmem:[#allocation2 + $0x9c] sm:$0xf] }
 0x2f9   : > { %v4132_v52 = vsel %vm8359_vm4, %v4130_v24, %v4131_v46  ;;  %v3888_v29 = vor.u32 %v3887_v34, %v3883_v9  ;;  %v3898_v17 = vrot.slane %v3896_v62, 4  ;;  %v3901_v63 = vrot.slane %v3899_v18, 5 }
 0x2fa   : > { %11011 = vst [vmem:[#allocation11_spill] sm:$0xff] %v10162_v10  ;;  %v4129_v4 = vsel %vm8359_vm4, %v6510_v36, %v4128_v33  ;;  %v3893_v42 = vrot.slane %v3891_v30, 5  ;;  %v4135_v21 = vrot.slane %v10120_v50, 5  ;;  %v3920_v61 = vshrl.u32 %v10169_v38, 16 }
 0x2fb   : > { %v10174_v19 = vcombine.low %v4129_v4, %v4132_v52  ;;  %v3923_v6 = vshll.u32 %v10169_v38, 16  ;;  %v3907_v8 = vrot.slane %v3905_v55, 5  ;;  %v3911_v25 = vrot.slane %v3909_v40, 4 }
 0x2fc   : > { %v3884_v16 = vsel %vm8373_vm5, %v3879_v45, %v3883_v9  ;;  %v3889_v46 = vrot.slane %v3888_v29, 4  ;;  %v4138_v62 = vrot.slane %v3609_v53, 5  ;;  %v3902_v18 = vor.u32 %v3901_v63, %v3898_v17 }
 0x2fd   : > { %5293 = vmatmul.mubr.bf16.gmra.mrb[192].mxu0 %v10145_v59  ;;  %11012 = vst [vmem:[#allocation16_spill] sm:$0xff] %v10174_v19  ;;  %v10183_v33 = vcombine.low %v10138_v31, %v10151_v56  ;;  %v3915_v50 = vshll.u32 %v3612_v44, 16  ;;  %v6511_v34 = vrot.slane %v10108_v15, 9  ;;  %v4137_v36 = vrot.slane %v4135_v21, 4 }
 0x2fe   : > { %5300 = vmatprep.mubr.bf16.mxu0 %v10155_v27  ;;  %5132 = vmatmul.mubr.bf16.gmra.mrb[160].mxu1 %v10082_v51  ;;  %v3894_v5 = vsel %vm8373_vm5, %v3889_v46, %v3893_v42  ;;  %v4142_v9 = vrot.slane %v10151_v56, 5  ;;  %v3912_v24 = vor.u32 %v3911_v25, %v3907_v8  ;;  %v3922_v30 = vrot.slane %v3920_v61, 4  ;;  %v3615_v42 = vld [vmem:[#allocation2 + $0x98] sm:$0x1] }
 0x2ff   : > { %5139 = vmatprep.mubr.bf16.mxu1 %v10162_v10  ;;  %11013 = vst [vmem:[#allocation15_spill] sm:$0xff] %v10183_v33  ;;  %v10193_v53 = vcombine.low %v3884_v16, %v3894_v5  ;;  %v3925_v52 = vrot.slane %v3923_v6, 5  ;;  %v4139_v40 = vsel %vm8359_vm4, %v4137_v36, %v4138_v62  ;;  %v3933_v55 = vshrl.u32 %v10185_v47, 16 }
 0x300   : > { %v3903_v15 = vrot.slane %v3902_v18, 4  ;;  %v3929_v45 = vshll.u32 %v10185_v47, 16  ;;  %v3917_v56 = vrot.slane %v3915_v50, 5  ;;  %v4145_v29 = vrot.slane %v3612_v44, 5  ;;  %v10212_v18 = vld [vmem:[#allocation2 + $0xa0] sm:$0xf] }
 0x301   : > { %11014 = vst [vmem:[#allocation13_spill] sm:$0xff] %v10193_v53  ;;  %v4136_v17 = vsel %vm8359_vm4, %v6511_v34, %v4135_v21  ;;  %v3944_v63 = vshrl.u32 %v10195_v28, 16  ;;  %v3947_v4 = vshll.u32 %v10195_v28, 16  ;;  %v3913_v6 = vrot.slane %v3912_v24, 4  ;;  %v10225_v24 = vld [vmem:[#allocation2 + $0xa8] sm:$0xf] }
 0x302   : > { %v10207_v61 = vcombine.low %v4136_v17, %v4139_v40  ;;  %v4144_v25 = vrot.slane %v4142_v9, 4  ;;  %v3926_v16 = vor.u32 %v3925_v52, %v3922_v30  ;;  %v3908_v46 = vsel %vm8373_vm5, %v3903_v15, %v3907_v8 }
 0x303   : > { %v6512_v62 = vrot.slane %v10138_v31, 9  ;;  %v3931_v44 = vrot.slane %v3929_v45, 5  ;;  %v3935_v50 = vrot.slane %v3933_v55, 4  ;;  %v10216_v21 = vcombine.low %v10169_v38, %v10185_v47 }
 0x304   : > { %11015 = vst [vmem:[#allocation18_spill] sm:$0xff] %v10207_v61  ;;  %v3918_v5 = vsel %vm8373_vm5, %v3913_v6, %v3917_v56  ;;  %v4146_v34 = vsel %vm8359_vm4, %v4144_v25, %v4145_v29  ;;  %v3939_v36 = vshll.u32 %v3615_v42, 16  ;;  %v6513_v8 = vrot.slane %v10169_v38, 9  ;;  %v10235_v29 = vld [vmem:[#allocation2 + $0xac] sm:$0xf] }
 0x305   : > { %5301 = vmatmul.mubr.bf16.gmra.mrb[196].mxu0 %v10174_v19  ;;  %v4149_v31 = vrot.slane %v10185_v47, 5  ;;  %v3946_v30 = vrot.slane %v3944_v63, 4  ;;  %v3949_v52 = vrot.slane %v3947_v4, 5  ;;  %v10228_v40 = vcombine.low %v3908_v46, %v3918_v5  ;;  %v3618_v25 = vld [vmem:[#allocation2 + $0xa4] sm:$0x1] }
 0x306   : > { %5308 = vmatprep.mubr.bf16.mxu0 %v10183_v33  ;;  %5140 = vmatmul.mubr.bf16.gmra.mrb[164].mxu1 %v10125_v2  ;;  %v3957_v55 = vshrl.u32 %v10212_v18, 16  ;;  %v3927_v15 = vrot.slane %v3926_v16, 4  ;;  %v3953_v45 = vshll.u32 %v10212_v18, 16  ;;  %v4143_v38 = vsel %vm8359_vm4, %v6512_v62, %v4142_v9  ;;  %v10248_v62 = vld [vmem:[#allocation2 + $0xc0] sm:$0xf] }
 0x307   : > { %5147 = vmatprep.mubr.bf16.mxu1 %v10193_v53  ;;  %11016 = vst [vmem:[#allocation17_spill] sm:$0xff] %v10228_v40  ;;  %v3936_v56 = vor.u32 %v3935_v50, %v3931_v44  ;;  %v4152_v47 = vrot.slane %v3615_v42, 5  ;;  %v10238_v17 = vcombine.low %v4143_v38, %v4146_v34  ;;  %v10242_v63 = vcombine.low %v10195_v28, %v10212_v18  ;;  %v10256_v19 = vld [vmem:[#allocation2 + $0xc4] sm:$0xf]  ;;  %v10281_v53 = vld [vmem:[#allocation2 + $0xb8] sm:$0xf] }
 0x308   : > { %v3968_v4 = vshrl.u32 %v10225_v24, 16  ;;  %v3971_v6 = vshll.u32 %v10225_v24, 16  ;;  %v3941_v16 = vrot.slane %v3939_v36, 5  ;;  %v4150_v9 = vsel %vm8359_vm4, %v6513_v8, %v4149_v31 }
 0x309   : > { %11017 = vst [vmem:[#allocation19_spill] sm:$0xff] %v10238_v17  ;;  %v4151_v42 = vrot.slane %v4149_v31, 4  ;;  %v3950_v46 = vor.u32 %v3949_v52, %v3946_v30  ;;  %v3932_v50 = vsel %vm8373_vm5, %v3927_v15, %v3931_v44  ;;  %v3981_v5 = vshrl.u32 %v10235_v29, 16  ;;  %v10266_v15 = vld [vmem:[#allocation2 + $0xb4] sm:$0xf] }
 0x30a   : > { %v3955_v34 = vrot.slane %v3953_v45, 5  ;;  %v3959_v38 = vrot.slane %v3957_v55, 4  ;;  %v4156_v36 = vrot.slane %v10212_v18, 5  ;;  %v10260_v8 = vcombine.low %v10225_v24, %v10235_v29 }
 0x30b   : > { %v3970_v31 = vrot.slane %v3968_v4, 4  ;;  %v3973_v30 = vrot.slane %v3971_v6, 5  ;;  %v4176_v44 = vshrl.u32 %v10248_v62, 16  ;;  %v3951_v55 = vrot.slane %v3950_v46, 4 }
 0x30c   : > { %v3977_v18 = vshll.u32 %v10235_v29, 16  ;;  %v4179_v45 = vshll.u32 %v10248_v62, 16  ;;  %v3960_v4 = vor.u32 %v3959_v38, %v3955_v34  ;;  %v4189_v6 = vshrl.u32 %v10256_v19, 16 }
 0x30d   : > { %5309 = vmatmul.mubr.bf16.gmra.mrb[200].mxu0 %v10207_v61  ;;  %v3937_v61 = vrot.slane %v3936_v56, 4  ;;  %v4159_v46 = vrot.slane %v3618_v25, 5  ;;  %v4178_v38 = vrot.slane %v4176_v44, 4  ;;  %v4185_v59 = vshll.u32 %v10256_v19, 16 }
 0x30e   : > { %5316 = vmatprep.mubr.bf16.mxu0 %v10216_v21  ;;  %5148 = vmatmul.mubr.bf16.gmra.mrb[168].mxu1 %v10155_v27  ;;  %v3963_v27 = vshll.u32 %v3618_v25, 16  ;;  %v4181_v25 = vrot.slane %v4179_v45, 5  ;;  %v3961_v2 = vrot.slane %v3960_v4, 4  ;;  %v10299_v45 = vld [vmem:[#allocation2 + $0xcc] sm:$0xf] }
 0x30f   : > { %5155 = vmatprep.mubr.bf16.mxu1 %v10228_v40  ;;  %v4153_v40 = vsel %vm8359_vm4, %v4151_v42, %v4152_v47  ;;  %v3942_v52 = vsel %vm8373_vm5, %v3937_v61, %v3941_v16  ;;  %v6514_v61 = vrot.slane %v10195_v28, 9  ;;  %v4158_v16 = vrot.slane %v4156_v36, 4  ;;  %11020 = vst [vmem:[#allocation22_spill] sm:$0xff] %v10299_v45 }
 0x310   : > { %v10271_v56 = vcombine.low %v3932_v50, %v3942_v52  ;;  %v10273_v47 = vcombine.low %v4150_v9, %v4153_v40  ;;  %v3965_v42 = vrot.slane %v3963_v27, 5  ;;  %v3992_v50 = vshrl.u32 %v10266_v15, 16  ;;  %v10287_v27 = vld [vmem:[#allocation2 + $0xb0] sm:$0x1] }
 0x311   : > { %v3995_v40 = vshll.u32 %v10266_v15, 16  ;;  %v3974_v9 = vor.u32 %v3973_v30, %v3970_v31  ;;  %v3956_v52 = vsel %vm8373_vm5, %v3951_v55, %v3955_v34  ;;  %v3979_v28 = vrot.slane %v3977_v18, 5 }
 0x312   : > { %11018 = vst [vmem:[#allocation20_spill] sm:$0xff] %v10271_v56  ;;  %11019 = vst [vmem:[#allocation21_spill] sm:$0xff] %v10273_v47  ;;  %v4157_v51 = vsel %vm8359_vm4, %v6514_v61, %v4156_v36  ;;  %v4160_v31 = vsel %vm8359_vm4, %v4158_v16, %v4159_v46  ;;  %v4005_v30 = vshrl.u32 %v10281_v53, 16  ;;  %v4182_v34 = vor.u32 %v4181_v25, %v4178_v38  ;;  %v10304_v16 = vld [vmem:[#allocation2 + $0xd0] sm:$0xf] }
 0x313   : > { %v3966_v44 = vsel %vm8373_vm5, %v3961_v2, %v3965_v42  ;;  %v3987_v55 = vshll.u32 %v10287_v27, 16  ;;  %v4187_v18 = vrot.slane %v4185_v59, 5  ;;  %v3997_v46 = vrot.slane %v3995_v40, 5  ;;  %v10308_v38 = vld [vmem:[#allocation2 + $0xd4] sm:$0x1] }
 0x314   : > { %v10302_v4 = vcombine.low %v3956_v52, %v3966_v44  ;;  %v4183_v61 = vrot.slane %v4182_v34, 4  ;;  %v4001_v2 = vshll.u32 %v10281_v53, 16  ;;  %v10311_v59 = vcombine.low %v4157_v51, %v4160_v31  ;;  %v3624_v44 = vld [vmem:[#allocation2 + $0xbc] sm:$0x1] }
 0x315   : > { %5317 = vmatmul.mubr.bf16.gmra.mrb[204].mxu0 %v10238_v17  ;;  %v10278_v17 = vld [vmem:[#allocation2 + $0xc8] sm:$0x1]  ;;  %v4163_v52 = vrot.slane %v10235_v29, 5  ;;  %v4238_v25 = vrot.slane %v10304_v16, 5  ;;  %v4007_v51 = vrot.slane %v4005_v30, 4  ;;  %v4241_v31 = vrot.slane %v10308_v38, 5 }
 0x316   : > { %5324 = vmatprep.mubr.bf16.mxu0 %v10242_v63  ;;  %5156 = vmatmul.mubr.bf16.gmra.mrb[172].mxu1 %v10183_v33  ;;  %v3983_v33 = vrot.slane %v3981_v5, 4  ;;  %v4195_v10 = vshll.u32 %v10278_v17, 16  ;;  %v3975_v5 = vrot.slane %v3974_v9, 4  ;;  %v6517_v29 = vrot.slane %v10248_v62, 9 }
 0x317   : > { %5163 = vmatprep.mubr.bf16.mxu1 %v10271_v56  ;;  %v4191_v56 = vrot.slane %v4189_v6, 4  ;;  %v3994_v6 = vrot.slane %v3992_v50, 4  ;;  %v6518_v50 = vrot.slane %v10299_v45, 9  ;;  %v4207_v30 = vrot.slane %v10278_v17, 5 }
 0x318   : > { %v3984_v36 = vor.u32 %v3983_v33, %v3979_v28  ;;  %v4197_v9 = vrot.slane %v4195_v10, 5  ;;  %v4188_v33 = vsel %vm8373_vm5, %v4183_v61, %v4187_v18  ;;  %v3980_v40 = vsel %vm8373_vm5, %v3975_v5, %v3979_v28 }
 0x319   : > { %v4192_v42 = vor.u32 %v4191_v56, %v4187_v18  ;;  %v3989_v56 = vrot.slane %v3987_v55, 5  ;;  %v4003_v18 = vrot.slane %v4001_v2, 5  ;;  %v10327_v45 = vsel %vm8359_vm4, %v6518_v50, %v4238_v25 }
 0x31a   : > { %v3985_v34 = vrot.slane %v3984_v36, 4  ;;  %v4240_v5 = vrot.slane %v4238_v25, 4  ;;  %v4204_v55 = vrot.slane %v10256_v19, 5  ;;  %v10335_v36 = vcombine.low %v10266_v15, %v10281_v53 }
 0x31b   : > { %v4193_v10 = vrot.slane %v4192_v42, 4  ;;  %v4165_v50 = vrot.slane %v4163_v52, 4  ;;  %v4008_v25 = vor.u32 %v4007_v51, %v4003_v18 }
 0x31c   : > { %v3990_v2 = vsel %vm8373_vm5, %v3985_v34, %v3989_v56  ;;  %v10343_v42 = vsel %vm8359_vm4, %v4240_v5, %v4241_v31  ;;  %v4206_v17 = vrot.slane %v4204_v55, 4 }
 0x31d   : > { %5325 = vmatmul.mubr.bf16.gmra.mrb[208].mxu0 %v10273_v47  ;;  %v3998_v47 = vor.u32 %v3997_v46, %v3994_v6  ;;  %v4198_v61 = vsel %vm8373_vm5, %v4193_v10, %v4197_v9  ;;  %v4166_v6 = vrot.slane %v10287_v27, 5  ;;  %v4011_v46 = vshll.u32 %v3624_v44, 16 }
 0x31e   : > { %5332 = vmatprep.mubr.bf16.mxu0 %v10260_v8  ;;  %5164 = vmatmul.mubr.bf16.gmra.mrb[176].mxu1 %v10216_v21  ;;  %v10329_v28 = vcombine.low %v4188_v33, %v4198_v61  ;;  %v4205_v9 = vsel %vm8359_vm4, %v6517_v29, %v4204_v55  ;;  %v10348_v33 = vcombine.low %v3980_v40, %v3990_v2  ;;  %v6515_v27 = vrot.slane %v10225_v24, 9  ;;  %v11022_v2 = vld [vmem:[#allocation11_spill] sm:$0xff] }
 0x31f   : > { %5171 = vmatprep.mubr.bf16.mxu1 %v10302_v4  ;;  %v6572_v10 = vcombine.low %v10327_v45, %v10343_v42  ;;  %v3999_v56 = vrot.slane %v3998_v47, 4  ;;  %v4208_v34 = vsel %vm8359_vm4, %v4206_v17, %v4207_v30  ;;  %v4167_v31 = vsel %vm8359_vm4, %v4165_v50, %v4166_v6  ;;  %v11027_v17 = vld [vmem:[#allocation12_spill] sm:$0xff]  ;;  %v11028_v50 = vld [vmem:[#allocation17_spill] sm:$0xff] }
 0x320   : > { %v10359_v40 = vcombine.low %v4205_v9, %v4208_v34  ;;  %v4013_v29 = vrot.slane %v4011_v46, 5  ;;  %v4164_v24 = vsel %vm8359_vm4, %v6515_v27, %v4163_v52  ;;  %v4170_v61 = vrot.slane %v10281_v53, 5  ;;  %v11025_v9 = vld [vmem:[#allocation13_spill] sm:$0xff]  ;;  %v11029_v34 = vld [vmem:[#allocation18_spill] sm:$0xff] }
 0x321   : > { %v10364_v5 = vcombine.low %v4164_v24, %v4167_v31  ;;  %v4004_v47 = vsel %vm8373_vm5, %v3999_v56, %v4003_v18  ;;  %v4009_v51 = vrot.slane %v4008_v25, 4  ;;  %v10370_v55 = vcombine.low %v10248_v62, %v10256_v19  ;;  %v7954_v18 = vld [vmem:[#allocation3 + $0x218] sm:$0xff]  }
 0x322   : > { %v4173_v30 = vrot.slane %v3624_v44, 5  ;;  %v6516_v53 = vrot.slane %v10266_v15, 9  ;;  %v4172_v46 = vrot.slane %v4170_v61, 4  ;;  %v7952_v15 = vld [vmem:[#allocation3 + $0x208] sm:$0xff]  }
 0x323   : > { %v4014_v6 = vsel %vm8373_vm5, %v4009_v51, %v4013_v29  ;;  %v11031_v51 = vld [vmem:[#allocation20_spill] sm:$0xff] }
 0x324   : > { %v10376_v52 = vcombine.low %v4004_v47, %v4014_v6  ;;  %v4174_v19 = vsel %vm8359_vm4, %v4172_v46, %v4173_v30  ;;  %v4171_v62 = vsel %vm8359_vm4, %v6516_v53, %v4170_v61  ;;  %v11032_v46 = vld [vmem:[#allocation19_spill] sm:$0xff]  ;;  %vm6014_vm4 = vcmask 1046528  }
 0x325   : > { %5333 = vmatmul.mubr.bf16.gmra.mrb[212].mxu0 %v10311_v59  ;;  %v10385_v44 = vcombine.low %v4171_v62, %v4174_v19 }
 0x326   : > { %5340 = vmatprep.mubr.bf16.mxu0 %v10335_v36  ;;  %5172 = vmatmul.mubr.bf16.gmra.mrb[180].mxu1 %v10242_v63 }
 0x327   : > { %5179 = vmatprep.mubr.bf16.mxu1 %v10348_v33 }
 0x32d   : > { %5341 = vmatmul.mubr.bf16.gmra.mrb[216].mxu0 %v10364_v5 }
 0x32e   : > { %5348 = vmatprep.mubr.bf16.mxu0 %v10370_v55  ;;  %5180 = vmatmul.mubr.bf16.gmra.mrb[184].mxu1 %v10260_v8 }
 0x32f   : > { %5187 = vmatprep.mubr.bf16.mxu1 %v10376_v52 }
 0x335   : > { %5349 = vmatmul.mubr.bf16.gmra.mrb[220].mxu0 %v10385_v44 }
 0x336   : > { %5550 = vmatprep.mubr.bf16.mxu0 %v9916_v37  ;;  %5188 = vmatmul.mubr.bf16.gmra.mrb[188].mxu1 %v10335_v36 }
 0x337   : > { %5389 = vmatprep.mubr.bf16.mxu1 %v9844_v41  ;;  %v7956_v41 = vld [vmem:[#allocation3 + $0x228] sm:$0xff]  }
 0x33d   : > { %5551 = vmatmul.mubr.bf16.vlgmr.msra.gmra.mrb[224].mxu0 %v9722_v54  ;;  %v7955_v54 = vld [vmem:[#allocation3 + $0x220] sm:$0xff]  }
 0x33e   : > { %5558 = vmatprep.mubr.bf16.mxu0 %v9991_v14  ;;  %5390 = vmatmul.mubr.bf16.vlgmr.msra.gmra.mrb[192].mxu1 %v9855_v32  ;;  %v7959_v32 = vld [vmem:[#allocation3 + $0x238] sm:$0xff]  }
 0x33f   : > { %5397 = vmatprep.mubr.bf16.mxu1 %v9941_v12  ;;  %7678 = vmatpush3.bf16.msra.mxu1 %v9921_v13 }
 0x340   : > { %7679 = vmatprep.subr.bf16.mxu1 %v7952_v15 }
 0x343   : > { %7680 = vmatpush3.bf16.msra.mxu1 %v7952_v15 }
 0x344   : > { %7681 = vmatprep.subr.bf16.mxu1 %v7953_v48 }
 0x345   : > { %5559 = vmatmul.mubr.bf16.gmra.mrb[228].mxu0 %v9852_v22  ;;  %v7957_v22 = vld [vmem:[#allocation3 + $0x230] sm:$0xff]  }
 0x346   : > { %5566 = vmatprep.mubr.bf16.mxu0 %v10025_v26  ;;  %5398 = vmatmul.mubr.bf16.gmra.mrb[196].mxu1 %v9916_v37 }
 0x347   : > { %5405 = vmatprep.mubr.bf16.mxu1 %v9993_v43  ;;  %7682 = vmatpush3.bf16.msra.mxu1 %v7953_v48 }
 0x348   : > { %7683 = vmatprep.subr.bf16.mxu1 %v7954_v18 }
 0x34b   : > { %7684 = vmatpush3.bf16.msra.mxu1 %v7954_v18 }
 0x34c   : > { %7685 = vmatprep.subr.bf16.mxu1 %v7955_v54 }
 0x34d   : > { %5567 = vmatmul.mubr.bf16.gmra.mrb[232].mxu0 %v9950_v60 }
 0x34e   : > { %5574 = vmatprep.mubr.bf16.mxu0 %v10046_v20  ;;  %5406 = vmatmul.mubr.bf16.gmra.mrb[200].mxu1 %v9991_v14 }
 0x34f   : > { %5413 = vmatprep.mubr.bf16.mxu1 %v10019_v35  ;;  %7686 = vmatpush3.bf16.msra.mxu1 %v7955_v54 }
 0x350   : > { %7687 = vmatprep.subr.bf16.mxu1 %v7956_v41 }
 0x353   : > { %7688 = vmatpush3.bf16.msra.mxu1 %v7956_v41 }
 0x354   : > { %7689 = vmatprep.subr.bf16.mxu1 %v7957_v22 }
 0x355   : > { %5575 = vmatmul.mubr.bf16.gmra.mrb[236].mxu0 %v9972_v39 }
 0x356   : > { %5582 = vmatprep.mubr.bf16.mxu0 %v10073_v3  ;;  %5414 = vmatmul.mubr.bf16.gmra.mrb[204].mxu1 %v10025_v26  ;;  %v11021_v26 = vld [vmem:[#allocation10_spill] sm:$0xff] }
 0x357   : > { %5421 = vmatprep.mubr.bf16.mxu1 %v10059_v49  ;;  %7690 = vmatpush3.bf16.msra.mxu1 %v7957_v22 }
 0x358   : > { %7691 = vmatprep.subr.bf16.mxu1 %v7959_v32 }
 0x35b   : > { %7692 = vmatpush3.bf16.msra.mxu1 %v7959_v32 }
 0x35d   : > { %5583 = vmatmul.mubr.bf16.gmra.mrb[240].mxu0 %v10023_v57 }
 0x35e   : > { %5590 = vmatprep.mubr.bf16.mxu0 %v10102_v0  ;;  %5422 = vmatmul.mubr.bf16.gmra.mrb[208].mxu1 %v10046_v20  ;;  %v11023_v20 = vld [vmem:[#allocation14_spill] sm:$0xff] }
 0x35f   : > { %5429 = vmatprep.mubr.bf16.mxu1 %v10088_v23 }
 0x365   : > { %5591 = vmatmul.mubr.bf16.gmra.mrb[244].mxu0 %v10051_v11  ;;  %v11024_v11 = vld [vmem:[#allocation9_spill] sm:$0xff] }
 0x366   : > { %5598 = vmatprep.mubr.bf16.mxu0 %v10132_v1  ;;  %5430 = vmatmul.mubr.bf16.gmra.mrb[212].mxu1 %v10073_v3  ;;  %v7285_v37 = vpop.f32.mrb[160].mxu0  ;;  %v11026_v3 = vld [vmem:[#allocation16_spill] sm:$0xff] }
 0x367   : > { %5437 = vmatprep.mubr.bf16.mxu1 %v10115_v7  ;;  %v7286_v13 = vpop.f32.mrb[161].mxu0 }
 0x368   : > { %v7287_v60 = vadd.f32 %v7286_v13, %v7285_v37  ;;  %v7288_v39 = vpop.f32.mrb[162].mxu0  ;;  %v11033_v13 = vld [vmem:[#allocation21_spill] sm:$0xff] }
 0x369   : > { %v7289_v14 = vpop.f32.mrb[163].mxu0 }
 0x36a   : > { %v7290_v57 = vadd.f32 %v7289_v14, %v7288_v39 }
 0x36d   : > { %5599 = vmatmul.mubr.bf16.gmra.mrb[248].mxu0 %v11021_v26 }
 0x36e   : > { %5606 = vmatprep.mubr.bf16.mxu0 %v11022_v2  ;;  %5438 = vmatmul.mubr.bf16.gmra.mrb[216].mxu1 %v10102_v0 }
 0x36f   : > { %5445 = vmatprep.mubr.bf16.mxu1 %v11023_v20 }
 0x375   : > { %5607 = vmatmul.mubr.bf16.gmra.mrb[252].mxu0 %v11024_v11  ;;  %v4219_v11 = vshll.u32 %v10304_v16, 16 }
 0x376   : > { %5614 = vmatprep.mubr.bf16.mxu0 %v11025_v9  ;;  %5446 = vmatmul.mubr.bf16.gmra.mrb[220].mxu1 %v10132_v1  ;;  %v11030_v1 = vld [vmem:[#allocation15_spill] sm:$0xff] }
 0x377   : > { %5453 = vmatprep.mubr.bf16.mxu1 %v11026_v3 }
 0x37a   : > { %v7173_v27 = vpop.f32.mrb[128].mxu1 }
 0x37b   : > { %v7174_v56 = vpop.f32.mrb[129].mxu1 }
 0x37c   : > { %v7175_v25 = vadd.f32 %v7174_v56, %v7173_v27  ;;  %v7176_v0 = vpop.f32.mrb[130].mxu1 }
 0x37d   : > { %5615 = vmatmul.mubr.bf16.gmra.mrb[0].mxu0 %v11027_v17  ;;  %v7177_v31 = vpop.f32.mrb[131].mxu1 }
 0x37e   : > { %5622 = vmatprep.mubr.bf16.mxu0 %v11028_v50  ;;  %5454 = vmatmul.mubr.bf16.gmra.mrb[224].mxu1 %v11022_v2  ;;  %v10428_v29 = vadd.f32 %v7287_v60, %v7175_v25  ;;  %v7178_v24 = vadd.f32 %v7177_v31, %v7176_v0  ;;  %v11034_v60 = vld [vmem:[#allocation22_spill] sm:$0xff] }
 0x37f   : > { %5461 = vmatprep.mubr.bf16.mxu1 %v11029_v34  ;;  %v4210_v39 = vshrl.u32 %v11034_v60, 16 }
 0x380   : > { %v10430_v61 = vadd.f32 %v7290_v57, %v7178_v24 }
 0x381   : > { %v4212_v17 = vrot.slane %v4210_v39, 4 }
 0x383   : > { %v7291_v47 = vpop.f32.mrb[164].mxu0 }
 0x384   : > { %v7292_v30 = vpop.f32.mrb[165].mxu0 }
 0x385   : > { %5623 = vmatmul.mubr.bf16.gmra.mrb[4].mxu0 %v11030_v1  ;;  %v7293_v6 = vadd.f32 %v7292_v30, %v7291_v47  ;;  %v7294_v53 = vpop.f32.mrb[166].mxu0  ;;  %v7179_v62 = vpop.f32.mrb[132].mxu1  ;;  %v4221_v1 = vrot.slane %v4219_v11, 5 }
 0x386   : > { %5630 = vmatprep.mubr.bf16.mxu0 %v11031_v51  ;;  %5462 = vmatmul.mubr.bf16.gmra.mrb[228].mxu1 %v11025_v9  ;;  %v7295_v19 = vpop.f32.mrb[167].mxu0  ;;  %v7180_v48 = vpop.f32.mrb[133].mxu1 }
 0x387   : > { %5469 = vmatprep.mubr.bf16.mxu1 %v11032_v46  ;;  %v7296_v15 = vadd.f32 %v7295_v19, %v7294_v53  ;;  %v7181_v18 = vadd.f32 %v7180_v48, %v7179_v62  ;;  %v7182_v54 = vpop.f32.mrb[134].mxu1  ;;  %v4229_v53 = vshll.u32 %v10308_v38, 16 }
 0x388   : > { %v7183_v41 = vpop.f32.mrb[135].mxu1 }
 0x389   : > { %v10436_v22 = vadd.f32 %v7293_v6, %v7181_v18  ;;  %v7184_v32 = vadd.f32 %v7183_v41, %v7182_v54 }
 0x38b   : > { %v10440_v37 = vadd.f32 %v7296_v15, %v7184_v32 }
 0x38d   : > { %5631 = vmatmul.mubr.bf16.gmra.mrb[8].mxu0 %v10216_v21  ;;  %v4213_v21 = vshll.u32 %v11034_v60, 16 }
 0x38e   : > { %5638 = vmatprep.mubr.bf16.mxu0 %v10302_v4  ;;  %5470 = vmatmul.mubr.bf16.gmra.mrb[232].mxu1 %v11028_v50  ;;  %v4223_v50 = vshrl.u32 %v10304_v16, 16 }
 0x38f   : > { %5477 = vmatprep.mubr.bf16.mxu1 %v11033_v13  ;;  %v4215_v27 = vrot.slane %v4213_v21, 5 }
 0x390   : > { %v4225_v30 = vrot.slane %v4223_v50, 4 }
 0x392   : > { %v4226_v62 = vor.u32 %v4225_v30, %v4221_v1 }
 0x394   : > { %v4227_v41 = vrot.slane %v4226_v62, 4 }
 0x395   : > { %5639 = vmatmul.mubr.bf16.gmra.mrb[12].mxu0 %v10242_v63 }
 0x396   : > { %5646 = vmatprep.mubr.bf16.mxu0 %v10348_v33  ;;  %5478 = vmatmul.mubr.bf16.gmra.mrb[236].mxu1 %v11031_v51  ;;  %v4216_v51 = vor.u32 %v4215_v27, %v4212_v17 }
 0x397   : > { %5485 = vmatprep.mubr.bf16.mxu1 %v10311_v59 }
 0x398   : > { %v7185_v14 = vpop.f32.mrb[136].mxu1  ;;  %v4217_v19 = vrot.slane %v4216_v51, 4 }
 0x399   : > { %v7186_v57 = vpop.f32.mrb[137].mxu1 }
 0x39a   : > { %v7187_v26 = vadd.f32 %v7186_v57, %v7185_v14  ;;  %v7188_v2 = vpop.f32.mrb[138].mxu1  ;;  %v4222_v54 = vsel %vm8373_vm5, %v4217_v19, %v4221_v1 }
 0x39b   : > { %v7297_v9 = vpop.f32.mrb[168].mxu0  ;;  %v7189_v63 = vpop.f32.mrb[139].mxu1 }
 0x39c   : > { %v7298_v56 = vpop.f32.mrb[169].mxu0  ;;  %v7190_v25 = vadd.f32 %v7189_v63, %v7188_v2 }
 0x39d   : > { %5647 = vmatmul.mubr.bf16.gmra.mrb[16].mxu0 %v10260_v8  ;;  %v7299_v0 = vadd.f32 %v7298_v56, %v7297_v9  ;;  %v7300_v31 = vpop.f32.mrb[170].mxu0 }
 0x39e   : > { %5654 = vmatprep.mubr.bf16.mxu0 %v10376_v52  ;;  %5486 = vmatmul.mubr.bf16.gmra.mrb[240].mxu1 %v10302_v4  ;;  %v7301_v24 = vpop.f32.mrb[171].mxu0  ;;  %v4231_v4 = vrot.slane %v4229_v53, 5 }
 0x39f   : > { %5493 = vmatprep.mubr.bf16.mxu1 %v10364_v5  ;;  %v7302_v47 = vadd.f32 %v7301_v24, %v7300_v31  ;;  %v10456_v8 = vadd.f32 %v7299_v0, %v7187_v26 }
 0x3a0   : > { %v4232_v14 = vsel %vm8373_vm5, %v4227_v41, %v4231_v4 }
 0x3a1   : > { %v10458_v6 = vadd.f32 %v7302_v47, %v7190_v25  ;;  %v6571_v26 = vcombine.low %v4222_v54, %v4232_v14  ;;  %v6570_v25 = vcombine.low %v11034_v60, %v10304_v16 }
 0x3a5   : > { %5655 = vmatmul.mubr.bf16.gmra.mrb[20].mxu0 %v10335_v36 }
 0x3a6   : > { %5662 = vmatprep.mubr.bf16.mxu0 %v10329_v28  ;;  %5494 = vmatmul.mubr.bf16.gmra.mrb[244].mxu1 %v10348_v33 }
 0x3a7   : > { %5501 = vmatprep.mubr.bf16.mxu1 %v10385_v44 }
 0x3a8   : > { %v7303_v15 = vpop.f32.mrb[172].mxu0  ;;  %v7191_v18 = vpop.f32.mrb[140].mxu1 }
 0x3a9   : > { %v7304_v48 = vpop.f32.mrb[173].mxu0  ;;  %v7192_v39 = vpop.f32.mrb[141].mxu1 }
 0x3aa   : > { %v7305_v32 = vadd.f32 %v7304_v48, %v7303_v15  ;;  %v7306_v38 = vpop.f32.mrb[174].mxu0  ;;  %v7193_v21 = vadd.f32 %v7192_v39, %v7191_v18  ;;  %v7194_v57 = vpop.f32.mrb[142].mxu1 }
 0x3ab   : > { %v7307_v36 = vpop.f32.mrb[175].mxu0  ;;  %v7195_v2 = vpop.f32.mrb[143].mxu1 }
 0x3ac   : > { %v7308_v33 = vadd.f32 %v7307_v36, %v7306_v38  ;;  %v10470_v11 = vadd.f32 %v7305_v32, %v7193_v21  ;;  %v7196_v9 = vadd.f32 %v7195_v2, %v7194_v57 }
 0x3ad   : > { %5663 = vmatmul.mubr.bf16.gmra.mrb[24].mxu0 %v10370_v55 }
 0x3ae   : > { %5670 = vmatprep.mubr.bf16.mxu0 %v6571_v26  ;;  %v10472_v63 = vadd.f32 %v7308_v33, %v7196_v9  ;;  %5502 = vmatmul.mubr.bf16.gmra.mrb[248].mxu1 %v10376_v52 }
 0x3af   : > { %5509 = vmatprep.mubr.bf16.mxu1 %v10359_v40 }
 0x3b0   : > { %v7309_v17 = vpop.f32.mrb[176].mxu0 }
 0x3b1   : > { %v7310_v27 = vpop.f32.mrb[177].mxu0  ;;  %v7197_v56 = vpop.f32.mrb[144].mxu1 }
 0x3b2   : > { %v7311_v58 = vadd.f32 %v7310_v27, %v7309_v17  ;;  %v7312_v50 = vpop.f32.mrb[178].mxu0  ;;  %v7198_v55 = vpop.f32.mrb[145].mxu1 }
 0x3b3   : > { %v7313_v0 = vpop.f32.mrb[179].mxu0  ;;  %v7199_v24 = vadd.f32 %v7198_v55, %v7197_v56  ;;  %v7200_v1 = vpop.f32.mrb[146].mxu1 }
 0x3b4   : > { %v7314_v31 = vadd.f32 %v7313_v0, %v7312_v50  ;;  %v7201_v47 = vpop.f32.mrb[147].mxu1 }
 0x3b5   : > { %5671 = vmatmul.mubr.bf16.gmra.mrb[28].mxu0 %v6570_v25  ;;  %v10478_v51 = vadd.f32 %v7311_v58, %v7199_v24  ;;  %v7202_v52 = vadd.f32 %v7201_v47, %v7200_v1 }
 0x3b6   : > { %5510 = vmatmul.mubr.bf16.gmra.mrb[252].mxu1 %v10329_v28 }
 0x3b7   : > { %v10481_v30 = vadd.f32 %v7314_v31, %v7202_v52  ;;  %7693 = vmatprep.mubr.bf16.mxu1 %v9941_v12 }
 0x3b8   : > { %v7315_v53 = vpop.f32.mrb[180].mxu0 }
 0x3b9   : > { %v7316_v19 = vpop.f32.mrb[181].mxu0  ;;  %v7203_v60 = vpop.f32.mrb[148].mxu1 }
 0x3ba   : > { %v7317_v62 = vadd.f32 %v7316_v19, %v7315_v53  ;;  %v7318_v16 = vpop.f32.mrb[182].mxu0  ;;  %v7204_v15 = vpop.f32.mrb[149].mxu1 }
 0x3bb   : > { %v7319_v4 = vpop.f32.mrb[183].mxu0  ;;  %v7205_v18 = vadd.f32 %v7204_v15, %v7203_v60  ;;  %v7206_v54 = vpop.f32.mrb[150].mxu1 }
 0x3bc   : > { %v7320_v48 = vadd.f32 %v7319_v4, %v7318_v16  ;;  %v7207_v41 = vpop.f32.mrb[151].mxu1 }
 0x3bd   : > { %v10484_v32 = vadd.f32 %v7317_v62, %v7205_v18  ;;  %v7208_v38 = vadd.f32 %v7207_v41, %v7206_v54 }
 0x3be   : > { %7694 = vmatmul.mubr.bf16.vlgmr.msra.gmra.mrb[0].mxu1 %v9993_v43 }
 0x3bf   : > { %v10487_v28 = vadd.f32 %v7320_v48, %v7208_v38  ;;  %7697 = vmatprep.mubr.bf16.mxu1 %v10019_v35 }
 0x3c0   : > { %v7321_v39 = vpop.f32.mrb[184].mxu0 }
 0x3c1   : > { %v7322_v12 = vpop.f32.mrb[185].mxu0  ;;  %v7209_v14 = vpop.f32.mrb[152].mxu1 }
 0x3c2   : > { %v7323_v36 = vadd.f32 %v7322_v12, %v7321_v39  ;;  %v7324_v21 = vpop.f32.mrb[186].mxu0  ;;  %v7210_v33 = vpop.f32.mrb[153].mxu1 }
 0x3c3   : > { %v7325_v57 = vpop.f32.mrb[187].mxu0  ;;  %v7211_v2 = vadd.f32 %v7210_v33, %v7209_v14  ;;  %v7212_v9 = vpop.f32.mrb[154].mxu1 }
 0x3c4   : > { %v7326_v26 = vadd.f32 %v7325_v57, %v7324_v21  ;;  %v7213_v17 = vpop.f32.mrb[155].mxu1 }
 0x3c5   : > { %v10490_v27 = vadd.f32 %v7323_v36, %v7211_v2  ;;  %v7214_v58 = vadd.f32 %v7213_v17, %v7212_v9 }
 0x3c6   : > { %7698 = vmatmul.mubr.bf16.gmra.mrb[4].mxu1 %v10059_v49 }
 0x3c7   : > { %v10493_v43 = vadd.f32 %v7326_v26, %v7214_v58  ;;  %7701 = vmatprep.mubr.bf16.mxu1 %v10088_v23 }
 0x3c8   : > { %v7327_v50 = vpop.f32.mrb[188].mxu0 }
 0x3c9   : > { %v7328_v35 = vpop.f32.mrb[189].mxu0  ;;  %v7215_v0 = vpop.f32.mrb[156].mxu1 }
 0x3ca   : > { %v7329_v56 = vadd.f32 %v7328_v35, %v7327_v50  ;;  %v7330_v25 = vpop.f32.mrb[190].mxu0  ;;  %v7216_v31 = vpop.f32.mrb[157].mxu1 }
 0x3cb   : > { %v7331_v55 = vpop.f32.mrb[191].mxu0  ;;  %v7217_v1 = vadd.f32 %v7216_v31, %v7215_v0  ;;  %v7218_v47 = vpop.f32.mrb[158].mxu1 }
 0x3cc   : > { %v7332_v24 = vadd.f32 %v7331_v55, %v7330_v25  ;;  %v7219_v52 = vpop.f32.mrb[159].mxu1 }
 0x3cd   : > { %v10496_v53 = vadd.f32 %v7329_v56, %v7217_v1  ;;  %v7220_v19 = vadd.f32 %v7219_v52, %v7218_v47 }
 0x3ce   : > { %7702 = vmatmul.mubr.bf16.gmra.mrb[8].mxu1 %v10115_v7 }
 0x3cf   : > { %v10499_v49 = vadd.f32 %v7332_v24, %v7220_v19  ;;  %7705 = vmatprep.mubr.bf16.mxu1 %v11023_v20 }
 0x3d0   : > { %v7333_v62 = vpop.f32.mrb[192].mxu0 }
 0x3d1   : > { %v7334_v23 = vpop.f32.mrb[193].mxu0  ;;  %v7221_v4 = vpop.f32.mrb[160].mxu1 }
 0x3d2   : > { %v7335_v16 = vadd.f32 %v7334_v23, %v7333_v62  ;;  %v7336_v60 = vpop.f32.mrb[194].mxu0  ;;  %v7222_v48 = vpop.f32.mrb[161].mxu1 }
 0x3d3   : > { %v7337_v15 = vpop.f32.mrb[195].mxu0  ;;  %v7223_v54 = vadd.f32 %v7222_v48, %v7221_v4  ;;  %v7224_v41 = vpop.f32.mrb[162].mxu1 }
 0x3d4   : > { %v7338_v18 = vadd.f32 %v7337_v15, %v7336_v60  ;;  %v7225_v38 = vpop.f32.mrb[163].mxu1 }
 0x3d5   : > { %v10502_v39 = vadd.f32 %v7335_v16, %v7223_v54  ;;  %v7226_v12 = vadd.f32 %v7225_v38, %v7224_v41 }
 0x3d6   : > { %7706 = vmatmul.mubr.bf16.gmra.mrb[12].mxu1 %v11026_v3 }
 0x3d7   : > { %v10505_v7 = vadd.f32 %v7338_v18, %v7226_v12  ;;  %7709 = vmatprep.mubr.bf16.mxu1 %v11029_v34 }
 0x3d8   : > { %v7339_v36 = vpop.f32.mrb[196].mxu0 }
 0x3d9   : > { %v7340_v20 = vpop.f32.mrb[197].mxu0  ;;  %v7227_v57 = vpop.f32.mrb[164].mxu1 }
 0x3da   : > { %v7341_v21 = vadd.f32 %v7340_v20, %v7339_v36  ;;  %v7342_v14 = vpop.f32.mrb[198].mxu0  ;;  %v7228_v26 = vpop.f32.mrb[165].mxu1 }
 0x3db   : > { %v7343_v33 = vpop.f32.mrb[199].mxu0  ;;  %v7229_v9 = vadd.f32 %v7228_v26, %v7227_v57  ;;  %v7230_v17 = vpop.f32.mrb[166].mxu1 }
 0x3dc   : > { %v7344_v2 = vadd.f32 %v7343_v33, %v7342_v14  ;;  %v7231_v58 = vpop.f32.mrb[167].mxu1 }
 0x3dd   : > { %v10508_v50 = vadd.f32 %v7341_v21, %v7229_v9  ;;  %v7232_v35 = vadd.f32 %v7231_v58, %v7230_v17 }
 0x3de   : > { %7710 = vmatmul.mubr.bf16.gmra.mrb[16].mxu1 %v11032_v46 }
 0x3df   : > { %v10511_v3 = vadd.f32 %v7344_v2, %v7232_v35  ;;  %7713 = vmatprep.mubr.bf16.mxu1 %v11033_v13 }
 0x3e0   : > { %v7345_v56 = vpop.f32.mrb[200].mxu0 }
 0x3e1   : > { %v7346_v34 = vpop.f32.mrb[201].mxu0  ;;  %v7233_v55 = vpop.f32.mrb[168].mxu1 }
 0x3e2   : > { %v7347_v25 = vadd.f32 %v7346_v34, %v7345_v56  ;;  %v7348_v0 = vpop.f32.mrb[202].mxu0  ;;  %v7234_v24 = vpop.f32.mrb[169].mxu1 }
 0x3e3   : > { %v7349_v31 = vpop.f32.mrb[203].mxu0  ;;  %v7235_v47 = vadd.f32 %v7234_v24, %v7233_v55  ;;  %v7236_v52 = vpop.f32.mrb[170].mxu1 }
 0x3e4   : > { %v7350_v1 = vadd.f32 %v7349_v31, %v7348_v0  ;;  %v7237_v19 = vpop.f32.mrb[171].mxu1 }
 0x3e5   : > { %v10514_v62 = vadd.f32 %v7347_v25, %v7235_v47  ;;  %v7238_v23 = vadd.f32 %v7237_v19, %v7236_v52 }
 0x3e6   : > { %7714 = vmatmul.mubr.bf16.gmra.mrb[20].mxu1 %v10311_v59 }
 0x3e7   : > { %v10517_v46 = vadd.f32 %v7350_v1, %v7238_v23  ;;  %7717 = vmatprep.mubr.bf16.mxu1 %v10364_v5 }
 0x3e8   : > { %v7351_v16 = vpop.f32.mrb[204].mxu0 }
 0x3e9   : > { %v7352_v13 = vpop.f32.mrb[205].mxu0  ;;  %v7239_v15 = vpop.f32.mrb[172].mxu1 }
 0x3ea   : > { %v7353_v60 = vadd.f32 %v7352_v13, %v7351_v16  ;;  %v7354_v4 = vpop.f32.mrb[206].mxu0  ;;  %v7240_v18 = vpop.f32.mrb[173].mxu1 }
 0x3eb   : > { %v7355_v48 = vpop.f32.mrb[207].mxu0  ;;  %v7241_v41 = vadd.f32 %v7240_v18, %v7239_v15  ;;  %v7242_v38 = vpop.f32.mrb[174].mxu1 }
 0x3ec   : > { %v7356_v54 = vadd.f32 %v7355_v48, %v7354_v4  ;;  %v7243_v12 = vpop.f32.mrb[175].mxu1 }
 0x3ed   : > { %v10520_v36 = vadd.f32 %v7353_v60, %v7241_v41  ;;  %v7244_v20 = vadd.f32 %v7243_v12, %v7242_v38 }
 0x3ee   : > { %7718 = vmatmul.mubr.bf16.gmra.mrb[24].mxu1 %v10385_v44 }
 0x3ef   : > { %v10523_v59 = vadd.f32 %v7356_v54, %v7244_v20  ;;  %7721 = vmatprep.mubr.bf16.mxu1 %v10359_v40 }
 0x3f0   : > { %v7357_v21 = vpop.f32.mrb[208].mxu0 }
 0x3f1   : > { %v7358_v5 = vpop.f32.mrb[209].mxu0  ;;  %v7245_v33 = vpop.f32.mrb[176].mxu1 }
 0x3f2   : > { %v7359_v14 = vadd.f32 %v7358_v5, %v7357_v21  ;;  %v7360_v57 = vpop.f32.mrb[210].mxu0  ;;  %v7246_v2 = vpop.f32.mrb[177].mxu1 }
 0x3f3   : > { %v7361_v26 = vpop.f32.mrb[211].mxu0  ;;  %v7247_v17 = vadd.f32 %v7246_v2, %v7245_v33  ;;  %v7248_v58 = vpop.f32.mrb[178].mxu1 }
 0x3f4   : > { %v7362_v9 = vadd.f32 %v7361_v26, %v7360_v57  ;;  %v7249_v35 = vpop.f32.mrb[179].mxu1 }
 0x3f5   : > { %v10526_v56 = vadd.f32 %v7359_v14, %v7247_v17  ;;  %v7250_v34 = vadd.f32 %v7249_v35, %v7248_v58 }
 0x3f6   : > { %7722 = vmatmul.mubr.bf16.gmra.mrb[28].mxu1 %v6572_v10 }
 0x3f7   : > { %v10531_v44 = vadd.f32 %v7362_v9, %v7250_v34 }
 0x3f8   : > { %v7363_v40 = vpop.f32.mrb[212].mxu0 }
 0x3f9   : > { %v7364_v25 = vpop.f32.mrb[213].mxu0  ;;  %v7251_v31 = vpop.f32.mrb[180].mxu1 }
 0x3fa   : > { %v7365_v0 = vadd.f32 %v7364_v25, %v7363_v40  ;;  %v7366_v55 = vpop.f32.mrb[214].mxu0  ;;  %v7252_v1 = vpop.f32.mrb[181].mxu1 }
 0x3fb   : > { %v7367_v24 = vpop.f32.mrb[215].mxu0  ;;  %v7253_v52 = vadd.f32 %v7252_v1, %v7251_v31  ;;  %v7254_v19 = vpop.f32.mrb[182].mxu1 }
 0x3fc   : > { %v7368_v47 = vadd.f32 %v7367_v24, %v7366_v55  ;;  %v7255_v23 = vpop.f32.mrb[183].mxu1 }
 0x3fd   : > { %v10533_v16 = vadd.f32 %v7365_v0, %v7253_v52  ;;  %v7256_v13 = vadd.f32 %v7255_v23, %v7254_v19 }
 0x3ff   : > { %v10535_v60 = vadd.f32 %v7368_v47, %v7256_v13 }
 0x400   : > { %v7369_v45 = vpop.f32.mrb[216].mxu0 }
 0x401   : > { %v7370_v42 = vpop.f32.mrb[217].mxu0  ;;  %v7257_v15 = vpop.f32.mrb[184].mxu1 }
 0x402   : > { %v7371_v10 = vadd.f32 %v7370_v42, %v7369_v45  ;;  %v7372_v4 = vpop.f32.mrb[218].mxu0  ;;  %v7258_v18 = vpop.f32.mrb[185].mxu1 }
 0x403   : > { %v7373_v48 = vpop.f32.mrb[219].mxu0  ;;  %v7259_v41 = vadd.f32 %v7258_v18, %v7257_v15  ;;  %v7260_v38 = vpop.f32.mrb[186].mxu1 }
 0x404   : > { %v7374_v54 = vadd.f32 %v7373_v48, %v7372_v4  ;;  %v7261_v12 = vpop.f32.mrb[187].mxu1 }
 0x405   : > { %v10537_v20 = vadd.f32 %v7371_v10, %v7259_v41  ;;  %v7262_v21 = vadd.f32 %v7261_v12, %v7260_v38 }
 0x407   : > { %v10539_v5 = vadd.f32 %v7374_v54, %v7262_v21 }
 0x408   : > { %v7375_v14 = vpop.f32.mrb[220].mxu0 }
 0x409   : > { %v7376_v57 = vpop.f32.mrb[221].mxu0  ;;  %v7263_v2 = vpop.f32.mrb[188].mxu1 }
 0x40a   : > { %v7377_v33 = vadd.f32 %v7376_v57, %v7375_v14  ;;  %v7378_v26 = vpop.f32.mrb[222].mxu0  ;;  %v7264_v17 = vpop.f32.mrb[189].mxu1 }
 0x40b   : > { %v7379_v9 = vpop.f32.mrb[223].mxu0  ;;  %v7265_v35 = vadd.f32 %v7264_v17, %v7263_v2  ;;  %v7266_v34 = vpop.f32.mrb[190].mxu1 }
 0x40c   : > { %v7380_v58 = vadd.f32 %v7379_v9, %v7378_v26  ;;  %v7267_v40 = vpop.f32.mrb[191].mxu1 }
 0x40d   : > { %v10541_v25 = vadd.f32 %v7377_v33, %v7265_v35  ;;  %v7268_v0 = vadd.f32 %v7267_v40, %v7266_v34 }
 0x40f   : > { %v10543_v55 = vadd.f32 %v7380_v58, %v7268_v0 }
 0x410   : > { %v7509_v31 = vpop.f32.mrb[224].mxu0 }
 0x411   : > { %v7510_v24 = vpop.f32.mrb[225].mxu0  ;;  %v7397_v52 = vpop.f32.mrb[192].mxu1 }
 0x412   : > { %v7511_v1 = vadd.f32 %v7510_v24, %v7509_v31  ;;  %v7512_v47 = vpop.f32.mrb[226].mxu0  ;;  %v7398_v23 = vpop.f32.mrb[193].mxu1 }
 0x413   : > { %v7513_v19 = vpop.f32.mrb[227].mxu0  ;;  %v7399_v45 = vadd.f32 %v7398_v23, %v7397_v52  ;;  %v7400_v42 = vpop.f32.mrb[194].mxu1 }
 0x414   : > { %v7514_v13 = vadd.f32 %v7513_v19, %v7512_v47  ;;  %v7401_v10 = vpop.f32.mrb[195].mxu1 }
 0x415   : > { %v5392_v4 = vadd.f32 %v7399_v45, %v10428_v29  ;;  %v7402_v15 = vadd.f32 %v7401_v10, %v7400_v42 }
 0x417   : > { %v5395_v48 = vadd.f32 %v7402_v15, %v10430_v61  ;;  %v10547_v54 = vadd.f32 %v7511_v1, %v5392_v4 }
 0x418   : > { %v7515_v18 = vpop.f32.mrb[228].mxu0 }
 0x419   : > { %v7516_v41 = vpop.f32.mrb[229].mxu0  ;;  %v7403_v21 = vpop.f32.mrb[196].mxu1  ;;  %v10549_v14 = vadd.f32 %v7514_v13, %v5395_v48 }
 0x41a   : > { %v7517_v38 = vadd.f32 %v7516_v41, %v7515_v18  ;;  %v7518_v12 = vpop.f32.mrb[230].mxu0  ;;  %v7404_v33 = vpop.f32.mrb[197].mxu1 }
 0x41b   : > { %v7519_v57 = vpop.f32.mrb[231].mxu0  ;;  %v7405_v2 = vadd.f32 %v7404_v33, %v7403_v21  ;;  %v7406_v9 = vpop.f32.mrb[198].mxu1 }
 0x41c   : > { %v7520_v26 = vadd.f32 %v7519_v57, %v7518_v12  ;;  %v7407_v17 = vpop.f32.mrb[199].mxu1 }
 0x41d   : > { %v5400_v29 = vadd.f32 %v7405_v2, %v10436_v22  ;;  %v7408_v58 = vadd.f32 %v7407_v17, %v7406_v9 }
 0x41f   : > { %v5403_v61 = vadd.f32 %v7408_v58, %v10440_v37  ;;  %v10553_v34 = vadd.f32 %v7517_v38, %v5400_v29 }
 0x420   : > { %v7521_v35 = vpop.f32.mrb[232].mxu0 }
 0x421   : > { %v7522_v40 = vpop.f32.mrb[233].mxu0  ;;  %v7409_v24 = vpop.f32.mrb[200].mxu1  ;;  %v10555_v1 = vadd.f32 %v7520_v26, %v5403_v61 }
 0x422   : > { %v7523_v0 = vadd.f32 %v7522_v40, %v7521_v35  ;;  %v7524_v31 = vpop.f32.mrb[234].mxu0  ;;  %v7410_v52 = vpop.f32.mrb[201].mxu1 }
 0x423   : > { %v7525_v47 = vpop.f32.mrb[235].mxu0  ;;  %v7411_v23 = vadd.f32 %v7410_v52, %v7409_v24  ;;  %v7412_v13 = vpop.f32.mrb[202].mxu1 }
 0x424   : > { %v7526_v19 = vadd.f32 %v7525_v47, %v7524_v31  ;;  %v7413_v45 = vpop.f32.mrb[203].mxu1 }
 0x425   : > { %v5408_v22 = vadd.f32 %v7411_v23, %v10456_v8  ;;  %v7414_v42 = vadd.f32 %v7413_v45, %v7412_v13 }
 0x427   : > { %v5411_v37 = vadd.f32 %v7414_v42, %v10458_v6  ;;  %v10559_v4 = vadd.f32 %v7523_v0, %v5408_v22 }
 0x428   : > { %v7527_v10 = vpop.f32.mrb[236].mxu0 }
 0x429   : > { %v7528_v15 = vpop.f32.mrb[237].mxu0  ;;  %v7415_v41 = vpop.f32.mrb[204].mxu1  ;;  %v10561_v38 = vadd.f32 %v7526_v19, %v5411_v37 }
 0x42a   : > { %v7529_v48 = vadd.f32 %v7528_v15, %v7527_v10  ;;  %v7530_v18 = vpop.f32.mrb[238].mxu0  ;;  %v7416_v21 = vpop.f32.mrb[205].mxu1 }
 0x42b   : > { %v7531_v12 = vpop.f32.mrb[239].mxu0  ;;  %v7417_v33 = vadd.f32 %v7416_v21, %v7415_v41  ;;  %v7418_v26 = vpop.f32.mrb[206].mxu1 }
 0x42c   : > { %v7532_v57 = vadd.f32 %v7531_v12, %v7530_v18  ;;  %v7419_v2 = vpop.f32.mrb[207].mxu1 }
 0x42d   : > { %v5416_v8 = vadd.f32 %v7417_v33, %v10470_v11  ;;  %v7420_v9 = vadd.f32 %v7419_v2, %v7418_v26 }
 0x42f   : > { %v5419_v6 = vadd.f32 %v7420_v9, %v10472_v63  ;;  %v10565_v29 = vadd.f32 %v7529_v48, %v5416_v8 }
 0x430   : > { %v7533_v17 = vpop.f32.mrb[240].mxu0 }
 0x431   : > { %v7534_v58 = vpop.f32.mrb[241].mxu0  ;;  %v7421_v40 = vpop.f32.mrb[208].mxu1  ;;  %v10567_v0 = vadd.f32 %v7532_v57, %v5419_v6 }
 0x432   : > { %v7535_v61 = vadd.f32 %v7534_v58, %v7533_v17  ;;  %v7536_v35 = vpop.f32.mrb[242].mxu0  ;;  %v7422_v24 = vpop.f32.mrb[209].mxu1 }
 0x433   : > { %v7537_v31 = vpop.f32.mrb[243].mxu0  ;;  %v7423_v52 = vadd.f32 %v7422_v24, %v7421_v40  ;;  %v7424_v19 = vpop.f32.mrb[210].mxu1 }
 0x434   : > { %v7538_v47 = vadd.f32 %v7537_v31, %v7536_v35  ;;  %v7425_v23 = vpop.f32.mrb[211].mxu1 }
 0x435   : > { %v5424_v11 = vadd.f32 %v7423_v52, %v10478_v51  ;;  %v7426_v13 = vadd.f32 %v7425_v23, %v7424_v19 }
 0x437   : > { %v5427_v63 = vadd.f32 %v7426_v13, %v10481_v30  ;;  %v10571_v22 = vadd.f32 %v7535_v61, %v5424_v11 }
 0x438   : > { %v7539_v45 = vpop.f32.mrb[244].mxu0 }
 0x439   : > { %v7540_v42 = vpop.f32.mrb[245].mxu0  ;;  %v7427_v15 = vpop.f32.mrb[212].mxu1  ;;  %v10573_v48 = vadd.f32 %v7538_v47, %v5427_v63 }
 0x43a   : > { %v7541_v37 = vadd.f32 %v7540_v42, %v7539_v45  ;;  %v7542_v10 = vpop.f32.mrb[246].mxu0  ;;  %v7428_v41 = vpop.f32.mrb[213].mxu1 }
 0x43b   : > { %v7543_v18 = vpop.f32.mrb[247].mxu0  ;;  %v7429_v21 = vadd.f32 %v7428_v41, %v7427_v15  ;;  %v7430_v57 = vpop.f32.mrb[214].mxu1 }
 0x43c   : > { %v7544_v12 = vadd.f32 %v7543_v18, %v7542_v10  ;;  %v7431_v33 = vpop.f32.mrb[215].mxu1 }
 0x43d   : > { %v5432_v51 = vadd.f32 %v7429_v21, %v10484_v32  ;;  %v7432_v26 = vadd.f32 %v7431_v33, %v7430_v57 }
 0x43f   : > { %v5435_v30 = vadd.f32 %v7432_v26, %v10487_v28  ;;  %v10577_v8 = vadd.f32 %v7541_v37, %v5432_v51 }
 0x440   : > { %v7545_v2 = vpop.f32.mrb[248].mxu0 }
 0x441   : > { %v7546_v9 = vpop.f32.mrb[249].mxu0  ;;  %v7433_v58 = vpop.f32.mrb[216].mxu1  ;;  %v10579_v61 = vadd.f32 %v7544_v12, %v5435_v30 }
 0x442   : > { %v7547_v6 = vadd.f32 %v7546_v9, %v7545_v2  ;;  %v7548_v17 = vpop.f32.mrb[250].mxu0  ;;  %v7434_v40 = vpop.f32.mrb[217].mxu1 }
 0x443   : > { %v7549_v35 = vpop.f32.mrb[251].mxu0  ;;  %v7435_v24 = vadd.f32 %v7434_v40, %v7433_v58  ;;  %v7436_v47 = vpop.f32.mrb[218].mxu1 }
 0x444   : > { %v7550_v31 = vadd.f32 %v7549_v35, %v7548_v17  ;;  %v7437_v52 = vpop.f32.mrb[219].mxu1 }
 0x445   : > { %v5440_v32 = vadd.f32 %v7435_v24, %v10490_v27  ;;  %v7438_v19 = vadd.f32 %v7437_v52, %v7436_v47 }
 0x447   : > { %v5443_v28 = vadd.f32 %v7438_v19, %v10493_v43  ;;  %v10583_v11 = vadd.f32 %v7547_v6, %v5440_v32 }
 0x448   : > { %v7551_v23 = vpop.f32.mrb[252].mxu0 }
 0x449   : > { %v7552_v13 = vpop.f32.mrb[253].mxu0  ;;  %v7439_v42 = vpop.f32.mrb[220].mxu1  ;;  %v10585_v37 = vadd.f32 %v7550_v31, %v5443_v28 }
 0x44a   : > { %v7553_v63 = vadd.f32 %v7552_v13, %v7551_v23  ;;  %v7554_v45 = vpop.f32.mrb[254].mxu0  ;;  %v7440_v15 = vpop.f32.mrb[221].mxu1 }
 0x44b   : > { %v7555_v10 = vpop.f32.mrb[255].mxu0  ;;  %v7441_v41 = vadd.f32 %v7440_v15, %v7439_v42  ;;  %v7442_v12 = vpop.f32.mrb[222].mxu1 }
 0x44c   : > { %v7556_v18 = vadd.f32 %v7555_v10, %v7554_v45  ;;  %v7443_v21 = vpop.f32.mrb[223].mxu1 }
 0x44d   : > { %v5448_v27 = vadd.f32 %v7441_v41, %v10496_v53  ;;  %v7444_v57 = vadd.f32 %v7443_v21, %v7442_v12 }
 0x44f   : > { %v5451_v43 = vadd.f32 %v7444_v57, %v10499_v49  ;;  %v10589_v51 = vadd.f32 %v7553_v63, %v5448_v27 }
 0x450   : > { %v7557_v33 = vpop.f32.mrb[0].mxu0 }
 0x451   : > { %v7558_v26 = vpop.f32.mrb[1].mxu0  ;;  %v7445_v9 = vpop.f32.mrb[224].mxu1  ;;  %v10591_v6 = vadd.f32 %v7556_v18, %v5451_v43 }
 0x452   : > { %v7559_v30 = vadd.f32 %v7558_v26, %v7557_v33  ;;  %v7560_v2 = vpop.f32.mrb[2].mxu0  ;;  %v7446_v58 = vpop.f32.mrb[225].mxu1 }
 0x453   : > { %v7561_v17 = vpop.f32.mrb[3].mxu0  ;;  %v7447_v40 = vadd.f32 %v7446_v58, %v7445_v9  ;;  %v7448_v31 = vpop.f32.mrb[226].mxu1 }
 0x454   : > { %v7562_v35 = vadd.f32 %v7561_v17, %v7560_v2  ;;  %v7449_v24 = vpop.f32.mrb[227].mxu1 }
 0x455   : > { %v5456_v53 = vadd.f32 %v7447_v40, %v10502_v39  ;;  %v7450_v47 = vadd.f32 %v7449_v24, %v7448_v31 }
 0x457   : > { %v5459_v49 = vadd.f32 %v7450_v47, %v10505_v7  ;;  %v10595_v32 = vadd.f32 %v7559_v30, %v5456_v53 }
 0x458   : > { %v7563_v52 = vpop.f32.mrb[4].mxu0 }
 0x459   : > { %v7564_v19 = vpop.f32.mrb[5].mxu0  ;;  %v7451_v13 = vpop.f32.mrb[228].mxu1  ;;  %v10597_v63 = vadd.f32 %v7562_v35, %v5459_v49 }
 0x45a   : > { %v7565_v28 = vadd.f32 %v7564_v19, %v7563_v52  ;;  %v7566_v23 = vpop.f32.mrb[6].mxu0  ;;  %v7452_v42 = vpop.f32.mrb[229].mxu1 }
 0x45b   : > { %v7567_v45 = vpop.f32.mrb[7].mxu0  ;;  %v7453_v15 = vadd.f32 %v7452_v42, %v7451_v13  ;;  %v7454_v18 = vpop.f32.mrb[230].mxu1 }
 0x45c   : > { %v7568_v10 = vadd.f32 %v7567_v45, %v7566_v23  ;;  %v7455_v41 = vpop.f32.mrb[231].mxu1 }
 0x45d   : > { %v5464_v39 = vadd.f32 %v7453_v15, %v10508_v50  ;;  %v7456_v12 = vadd.f32 %v7455_v41, %v7454_v18 }
 0x45f   : > { %v5467_v7 = vadd.f32 %v7456_v12, %v10511_v3  ;;  %v10601_v27 = vadd.f32 %v7565_v28, %v5464_v39 }
 0x460   : > { %v7569_v21 = vpop.f32.mrb[8].mxu0 }
 0x461   : > { %v7570_v57 = vpop.f32.mrb[9].mxu0  ;;  %v7457_v26 = vpop.f32.mrb[232].mxu1  ;;  %v10603_v30 = vadd.f32 %v7568_v10, %v5467_v7 }
 0x462   : > { %v7571_v43 = vadd.f32 %v7570_v57, %v7569_v21  ;;  %v7572_v33 = vpop.f32.mrb[10].mxu0  ;;  %v7458_v9 = vpop.f32.mrb[233].mxu1 }
 0x463   : > { %v7573_v2 = vpop.f32.mrb[11].mxu0  ;;  %v7459_v58 = vadd.f32 %v7458_v9, %v7457_v26  ;;  %v7460_v35 = vpop.f32.mrb[234].mxu1 }
 0x464   : > { %v7574_v17 = vadd.f32 %v7573_v2, %v7572_v33  ;;  %v7461_v40 = vpop.f32.mrb[235].mxu1 }
 0x465   : > { %v5472_v50 = vadd.f32 %v7459_v58, %v10514_v62  ;;  %v7462_v31 = vadd.f32 %v7461_v40, %v7460_v35 }
 0x467   : > { %v5475_v3 = vadd.f32 %v7462_v31, %v10517_v46  ;;  %v10607_v53 = vadd.f32 %v7571_v43, %v5472_v50 }
 0x468   : > { %v7575_v24 = vpop.f32.mrb[12].mxu0 }
 0x469   : > { %v7576_v47 = vpop.f32.mrb[13].mxu0  ;;  %v7463_v19 = vpop.f32.mrb[236].mxu1  ;;  %v10609_v28 = vadd.f32 %v7574_v17, %v5475_v3 }
 0x46a   : > { %v7577_v49 = vadd.f32 %v7576_v47, %v7575_v24  ;;  %v7578_v52 = vpop.f32.mrb[14].mxu0  ;;  %v7464_v13 = vpop.f32.mrb[237].mxu1 }
 0x46b   : > { %v7579_v23 = vpop.f32.mrb[15].mxu0  ;;  %v7465_v42 = vadd.f32 %v7464_v13, %v7463_v19  ;;  %v7466_v10 = vpop.f32.mrb[238].mxu1 }
 0x46c   : > { %v7580_v45 = vadd.f32 %v7579_v23, %v7578_v52  ;;  %v7467_v15 = vpop.f32.mrb[239].mxu1 }
 0x46d   : > { %v5480_v62 = vadd.f32 %v7465_v42, %v10520_v36  ;;  %v7468_v18 = vadd.f32 %v7467_v15, %v7466_v10 }
 0x46f   : > { %v5483_v46 = vadd.f32 %v7468_v18, %v10523_v59  ;;  %v10613_v39 = vadd.f32 %v7577_v49, %v5480_v62 }
 0x470   : > { %v7581_v41 = vpop.f32.mrb[16].mxu0 }
 0x471   : > { %v7582_v12 = vpop.f32.mrb[17].mxu0  ;;  %v7469_v57 = vpop.f32.mrb[240].mxu1  ;;  %v10615_v43 = vadd.f32 %v7580_v45, %v5483_v46 }
 0x472   : > { %v7583_v7 = vadd.f32 %v7582_v12, %v7581_v41  ;;  %v7584_v21 = vpop.f32.mrb[18].mxu0  ;;  %v7470_v26 = vpop.f32.mrb[241].mxu1 }
 0x473   : > { %v7585_v33 = vpop.f32.mrb[19].mxu0  ;;  %v7471_v9 = vadd.f32 %v7470_v26, %v7469_v57  ;;  %v7472_v17 = vpop.f32.mrb[242].mxu1 }
 0x474   : > { %v7586_v2 = vadd.f32 %v7585_v33, %v7584_v21  ;;  %v7473_v58 = vpop.f32.mrb[243].mxu1 }
 0x475   : > { %v5488_v36 = vadd.f32 %v7471_v9, %v10526_v56  ;;  %v7474_v35 = vadd.f32 %v7473_v58, %v7472_v17 }
 0x477   : > { %v5491_v59 = vadd.f32 %v7474_v35, %v10531_v44  ;;  %v10619_v50 = vadd.f32 %v7583_v7, %v5488_v36 }
 0x478   : > { %v7587_v40 = vpop.f32.mrb[20].mxu0 }
 0x479   : > { %v7588_v31 = vpop.f32.mrb[21].mxu0  ;;  %v7475_v47 = vpop.f32.mrb[244].mxu1  ;;  %v10621_v49 = vadd.f32 %v7586_v2, %v5491_v59 }
 0x47a   : > { %v7589_v3 = vadd.f32 %v7588_v31, %v7587_v40  ;;  %v7590_v24 = vpop.f32.mrb[22].mxu0  ;;  %v7476_v19 = vpop.f32.mrb[245].mxu1 }
 0x47b   : > { %v7591_v52 = vpop.f32.mrb[23].mxu0  ;;  %v7477_v13 = vadd.f32 %v7476_v19, %v7475_v47  ;;  %v7478_v45 = vpop.f32.mrb[246].mxu1  ;;  %v7963_v47 = vld [vmem:[%s8330_s23 + $0x1c] sm:$0xf] }
 0x47c   : > { %v7592_v23 = vadd.f32 %v7591_v52, %v7590_v24  ;;  %v7479_v42 = vpop.f32.mrb[247].mxu1  ;;  %v5922_v52 = vunpack.c.l.bf16 %v7963_v47 }
 0x47d   : > { %v5496_v56 = vadd.f32 %v7477_v13, %v10533_v16  ;;  %v7480_v10 = vadd.f32 %v7479_v42, %v7478_v45 }
 0x47f   : > { %v5499_v44 = vadd.f32 %v7480_v10, %v10535_v60  ;;  %v10625_v62 = vadd.f32 %v7589_v3, %v5496_v56  ;;  %v7962_v3 = vld [vmem:[%s8330_s23 + $0x18] sm:$0xf] }
 0x480   : > { %v7593_v15 = vpop.f32.mrb[24].mxu0  ;;  %v5921_v24 = vunpack.c.l.bf16 %v7962_v3 }
 0x481   : > { %v7594_v18 = vpop.f32.mrb[25].mxu0  ;;  %v7481_v12 = vpop.f32.mrb[248].mxu1  ;;  %v10627_v7 = vadd.f32 %v7592_v23, %v5499_v44 }
 0x482   : > { %v7595_v46 = vadd.f32 %v7594_v18, %v7593_v15  ;;  %v7596_v41 = vpop.f32.mrb[26].mxu0  ;;  %v7482_v57 = vpop.f32.mrb[249].mxu1  ;;  %v6020_v44 = vrot.slane %v5921_v24, 1  ;;  %v6021_v15 = vrot.slane %v5922_v52, 1  ;;  %v7964_v18 = vld [vmem:[%s8330_s23 + $0xc] sm:$0xf] }
 0x483   : > { %v7597_v21 = vpop.f32.mrb[27].mxu0  ;;  %v7483_v26 = vadd.f32 %v7482_v57, %v7481_v12  ;;  %v7484_v2 = vpop.f32.mrb[250].mxu1  ;;  %v7971_v24 = vld [vmem:[%s8330_s23 + $0x28] sm:$0xf] }
 0x484   : > { %v7598_v33 = vadd.f32 %v7597_v21, %v7596_v41  ;;  %v7485_v16 = vpop.f32.mrb[251].mxu1  ;;  %v7965_v41 = vld [vmem:[%s8330_s23 + $0x10] sm:$0xf]  ;;  %v7966_v21 = vld [vmem:[%s8330_s23 + $0x20] sm:$0x1]  ;;  %v6022_v3 = vsel %vm6014_vm4, %v6020_v44, %v6021_v15 }
 0x485   : > { %v5504_v9 = vadd.f32 %v7483_v26, %v10537_v20  ;;  %v7486_v60 = vadd.f32 %v7485_v16, %v7484_v2  ;;  %v5919_v12 = vunpack.c.l.bf16 %v7965_v41  ;;  %v5923_v57 = vunpack.c.l.bf16 %v7966_v21  ;;  %v7968_v16 = vld [vmem:[%s8330_s23 + $0x30] sm:$0xf] }
 0x487   : > { %v5507_v17 = vadd.f32 %v7486_v60, %v10539_v5  ;;  %v10631_v36 = vadd.f32 %v7595_v46, %v5504_v9  ;;  %v5918_v46 = vunpack.c.l.bf16 %v7964_v18  ;;  %v5927_v9 = vunpack.c.l.bf16 %v7968_v16  ;;  %v7969_v60 = vld [vmem:[%s8330_s23 + $0x34] sm:$0xf] }
 0x488   : > { %v7599_v58 = vpop.f32.mrb[28].mxu0 }
 0x489   : > { %v7600_v35 = vpop.f32.mrb[29].mxu0  ;;  %v7487_v31 = vpop.f32.mrb[252].mxu1  ;;  %v10635_v19 = vadd.f32 %v7598_v33, %v5507_v17  ;;  %v7967_v33 = vld [vmem:[%s8330_s23 + $0x14] sm:$0x1]  ;;  %v6030_v44 = vrot.slane %v5927_v9, 1 }
 0x48a   : > { %v7601_v59 = vadd.f32 %v7600_v35, %v7599_v58  ;;  %v7602_v40 = vpop.f32.mrb[30].mxu0  ;;  %v7488_v23 = vpop.f32.mrb[253].mxu1  ;;  %v5920_v26 = vunpack.c.l.bf16 %v7967_v33  ;;  %v7970_v58 = vld [vmem:[%s8330_s23 + $0x24] sm:$0xf] }
 0x48b   : > { %v7603_v20 = vpop.f32.mrb[31].mxu0  ;;  %v7489_v13 = vadd.f32 %v7488_v23, %v7487_v31  ;;  %v7490_v45 = vpop.f32.mrb[254].mxu1  ;;  %v5924_v35 = vunpack.c.l.bf16 %v7970_v58  ;;  %v10652_v31 = vld [vmem:[%s10921_s5] ss:$0 sm:$0xff]  ;;  %v6016_v23 = vrot.slane %v5919_v12, 1 }
 0x48c   : > { %v7604_v5 = vadd.f32 %v7603_v20, %v7602_v40  ;;  %v7491_v42 = vpop.f32.mrb[255].mxu1  ;;  %v6015_v20 = vrot.slane %v5918_v46, 1  ;;  %v7972_v12 = vld [vmem:[%s8330_s23 + $0x38] sm:$0x1] }
 0x48d   : > { %v5512_v56 = vadd.f32 %v7489_v13, %v10541_v25  ;;  %v7492_v10 = vadd.f32 %v7491_v42, %v7490_v45  ;;  %v5928_v25 = vunpack.c.l.bf16 %v7969_v60  ;;  %v6023_v13 = vrot.slane %v5923_v57, 1  ;;  %v10662_v45 = vld [vmem:[%s10922_s6] ss:$0 sm:$0xff] }
 0x48e   : > { %v6025_v41 = vrot.slane %v5924_v35, 1  ;;  %v5929_v21 = vunpack.c.l.bf16 %v7972_v12  ;;  %v6017_v9 = vsel %vm6014_vm4, %v6015_v20, %v6016_v23  ;;  %v7976_v12 = vld [vmem:[%s8330_s23 + $0x3c] sm:$0xf] }
 0x48f   : > { %v5515_v2 = vadd.f32 %v7492_v10, %v10543_v55  ;;  %v10645_v17 = vadd.f32 %v7601_v59, %v5512_v56  ;;  %v5925_v55 = vunpack.c.l.bf16 %v7971_v24  ;;  %v6018_v10 = vrot.slane %v5920_v26, 1 }
 0x491   : > { %v7695_v40 = vpop.f32.mrb[0].mxu1  ;;  %v10656_v47 = vadd.f32 %v7604_v5, %v5515_v2  ;;  %v6031_v5 = vrot.slane %v5928_v25, 1  ;;  %v6026_v2 = vrot.slane %v5925_v55, 1  ;;  %v6019_v35 = vsel %vm6014_vm4, %v6016_v23, %v6018_v10 }
 0x492   : > { %v5722_v52 = vadd.f32 %v7695_v40, %v10553_v34  ;;  %v5713_v59 = vpop.f32.mrb[1].mxu1  ;;  %v6033_v55 = vrot.slane %v5929_v21, 1  ;;  %v5930_v21 = vunpack.c.l.bf16 %v7976_v12 }
 0x493   : > { %v5714_v42 = vadd.f32 %v5713_v59, %v10547_v54  ;;  %v7696_v56 = vpop.f32.mrb[2].mxu1  ;;  %v7973_v54 = vld [vmem:[%s8330_s23 + $0x2c] sm:$0x1]  ;;  %v6032_v24 = vsel %vm6014_vm4, %v6030_v44, %v6031_v5 }
 0x494   : > { %v5849_v34 = vmul.f32 %v10652_v31, %v5722_v52  ;;  %v5725_v18 = vadd.f32 %v7696_v56, %v10555_v1  ;;  %v5716_v46 = vpop.f32.mrb[3].mxu1  ;;  %v5926_v16 = vunpack.c.l.bf16 %v7973_v54  ;;  %v6024_v1 = vsel %vm6014_vm4, %v6021_v15, %v6023_v13  ;;  %v7974_v56 = vld [vmem:[%s8330_s23 + $0x48] sm:$0xf]  ;;  %v7975_v44 = vld [vmem:[%s8330_s23 + $0x4c] sm:$0xf] }
 0x495   : > { %v5847_v57 = vmul.f32 %v10652_v31, %v5714_v42  ;;  %v5717_v33 = vadd.f32 %v5716_v46, %v10549_v14  ;;  %v6027_v42 = vsel %vm6014_vm4, %v6025_v41, %v6026_v2  ;;  %v5933_v10 = vunpack.c.l.bf16 %v7974_v56 }
 0x496   : > { %v5888_v26 = vadd.f32 %v10662_v45, %v5849_v34  ;;  %v5850_v60 = vmul.f32 %v10652_v31, %v5725_v18  ;;  %v6028_v15 = vrot.slane %v5926_v16, 1  ;;  %v5934_v34 = vunpack.c.l.bf16 %v7975_v44 }
 0x497   : > { %v5886_v25 = vadd.f32 %v10662_v45, %v5847_v57  ;;  %v5848_v58 = vmul.f32 %v10652_v31, %v5717_v33  ;;  %v7977_v57 = vld [vmem:[%s8330_s23 + $0x40] sm:$0xf] }
 0x498   : > { %v6129_v40 = vadd.f32 %v6022_v3, %v5888_v26  ;;  %v5889_v14 = vadd.f32 %v10662_v45, %v5850_v60  ;;  %v5931_v33 = vunpack.c.l.bf16 %v7977_v57  ;;  %v7978_v26 = vld [vmem:[%s8330_s23 + $0x50] sm:$0x1]  ;;  %v7979_v60 = vld [vmem:[%s8330_s23 + $0x44] sm:$0x1] }
 0x499   : > { %v6127_v52 = vadd.f32 %v6017_v9, %v5886_v25  ;;  %v5887_v59 = vadd.f32 %v10662_v45, %v5848_v58  ;;  %v7699_v20 = vpop.f32.mrb[4].mxu1  ;;  %v5935_v9 = vunpack.c.l.bf16 %v7978_v26  ;;  %v5932_v25 = vunpack.c.l.bf16 %v7979_v60 }
 0x49a   : > { %6161 = vst [vmem:[%s10684_s21 + $0x10] sm:$0xff] %v6129_v40  ;;  %v6130_v3 = vadd.f32 %v6024_v1, %v5889_v14  ;;  %v5738_v23 = vadd.f32 %v7699_v20, %v10565_v29  ;;  %v5729_v13 = vpop.f32.mrb[5].mxu1 }
 0x49b   : > { %6159 = vst [vmem:[%s10684_s21] sm:$0xff] %v6127_v52  ;;  %v6128_v18 = vadd.f32 %v6019_v35, %v5887_v59  ;;  %v5730_v46 = vadd.f32 %v5729_v13, %v10559_v4  ;;  %v7700_v41 = vpop.f32.mrb[6].mxu1  ;;  %v6034_v4 = vsel %vm6014_vm4, %v6031_v5, %v6033_v55  ;;  %v6029_v35 = vsel %vm6014_vm4, %v6026_v2, %v6028_v15 }
 0x49c   : > { %6162 = vst [vmem:[%s10684_s21 + $0x18] sm:$0xff] %v6130_v3  ;;  %v5853_v29 = vmul.f32 %v10652_v31, %v5738_v23  ;;  %v5741_v54 = vadd.f32 %v7700_v41, %v10567_v0  ;;  %v5732_v16 = vpop.f32.mrb[7].mxu1  ;;  %v6040_v0 = vrot.slane %v5933_v10, 1  ;;  %v6041_v52 = vrot.slane %v5934_v34, 1  ;;  %v7980_v10 = vld [vmem:[%s8330_s23 + $0x60] sm:$0xf] }
 0x49d   : > { %6160 = vst [vmem:[%s10684_s21 + $0x8] sm:$0xff] %v6128_v18  ;;  %v5851_v1 = vmul.f32 %v10652_v31, %v5730_v46  ;;  %v5733_v58 = vadd.f32 %v5732_v16, %v10561_v38  ;;  %v6035_v3 = vrot.slane %v5930_v21, 1  ;;  %v6036_v23 = vrot.slane %v5931_v33, 1  ;;  %v7981_v34 = vld [vmem:[%s8330_s23 + $0x64] sm:$0xf] }
 0x49e   : > { %v5892_v40 = vadd.f32 %v10662_v45, %v5853_v29  ;;  %v5854_v14 = vmul.f32 %v10652_v31, %v5741_v54  ;;  %v6043_v2 = vrot.slane %v5935_v9, 1  ;;  %v6038_v55 = vrot.slane %v5932_v25, 1  ;;  %v7982_v21 = vld [vmem:[%s8330_s23 + $0x54] sm:$0xf]  ;;  %v7983_v16 = vld [vmem:[%s8330_s23 + $0x58] sm:$0xf] }
 0x49f   : > { %v5890_v59 = vadd.f32 %v10662_v45, %v5851_v1  ;;  %v5852_v20 = vmul.f32 %v10652_v31, %v5733_v58  ;;  %v5939_v44 = vunpack.c.l.bf16 %v7980_v10  ;;  %v5940_v18 = vunpack.c.l.bf16 %v7981_v34 }
 0x4a0   : > { %v6133_v5 = vadd.f32 %v6032_v24, %v5892_v40  ;;  %v5893_v38 = vadd.f32 %v10662_v45, %v5854_v14  ;;  %v6042_v41 = vsel %vm6014_vm4, %v6040_v0, %v6041_v52  ;;  %v5936_v57 = vunpack.c.l.bf16 %v7982_v21  ;;  %v7984_v0 = vld [vmem:[%s8330_s23 + $0x68] sm:$0x1] }
 0x4a1   : > { %v6131_v15 = vadd.f32 %v6027_v42, %v5890_v59  ;;  %v5891_v13 = vadd.f32 %v10662_v45, %v5852_v20  ;;  %v7703_v56 = vpop.f32.mrb[8].mxu1  ;;  %v6037_v29 = vsel %vm6014_vm4, %v6035_v3, %v6036_v23  ;;  %v5937_v26 = vunpack.c.l.bf16 %v7983_v16 }
 0x4a2   : > { %6165 = vst [vmem:[%s10684_s21 + $0x30] sm:$0xff] %v6133_v5  ;;  %v6134_v46 = vadd.f32 %v6034_v4, %v5893_v38  ;;  %v5754_v24 = vadd.f32 %v7703_v56, %v10577_v8  ;;  %v5745_v12 = vpop.f32.mrb[9].mxu1  ;;  %v6044_v60 = vsel %vm6014_vm4, %v6041_v52, %v6043_v2  ;;  %v6039_v1 = vsel %vm6014_vm4, %v6036_v23, %v6038_v55  ;;  %v7985_v23 = vld [vmem:[%s8330_s23 + $0x5c] sm:$0x1]  ;;  %v7986_v2 = vld [vmem:[%s8330_s23 + $0x78] sm:$0xf] }
 0x4a3   : > { %6163 = vst [vmem:[%s10684_s21 + $0x20] sm:$0xff] %v6131_v15  ;;  %v6132_v42 = vadd.f32 %v6029_v35, %v5891_v13  ;;  %v5746_v33 = vadd.f32 %v5745_v12, %v10571_v22  ;;  %v7704_v54 = vpop.f32.mrb[10].mxu1  ;;  %v6050_v58 = vrot.slane %v5939_v44, 1  ;;  %v6051_v35 = vrot.slane %v5940_v18, 1  ;;  %v7987_v15 = vld [vmem:[%s8330_s23 + $0x7c] sm:$0xf] }
 0x4a4   : > { %6166 = vst [vmem:[%s10684_s21 + $0x38] sm:$0xff] %v6134_v46  ;;  %v5857_v9 = vmul.f32 %v10652_v31, %v5754_v24  ;;  %v5757_v8 = vadd.f32 %v7704_v54, %v10579_v61  ;;  %v5748_v25 = vpop.f32.mrb[11].mxu1  ;;  %v6045_v61 = vrot.slane %v5936_v57, 1  ;;  %v5941_v52 = vunpack.c.l.bf16 %v7984_v0  ;;  %v7988_v18 = vld [vmem:[%s8330_s23 + $0x6c] sm:$0xf] }
 0x4a5   : > { %6164 = vst [vmem:[%s10684_s21 + $0x28] sm:$0xff] %v6132_v42  ;;  %v5855_v22 = vmul.f32 %v10652_v31, %v5746_v33  ;;  %v5749_v4 = vadd.f32 %v5748_v25, %v10573_v48  ;;  %v6046_v3 = vrot.slane %v5937_v26, 1  ;;  %v5938_v5 = vunpack.c.l.bf16 %v7985_v23  ;;  %v7989_v57 = vld [vmem:[%s8330_s23 + $0x70] sm:$0xf]  ;;  %v7991_v0 = vld [vmem:[%s8330_s23 + $0x74] sm:$0x1] }
 0x4a6   : > { %v5896_v40 = vadd.f32 %v10662_v45, %v5857_v9  ;;  %v5858_v14 = vmul.f32 %v10652_v31, %v5757_v8  ;;  %v5945_v55 = vunpack.c.l.bf16 %v7986_v2  ;;  %v5946_v13 = vunpack.c.l.bf16 %v7987_v15 }
 0x4a7   : > { %v5894_v59 = vadd.f32 %v10662_v45, %v5855_v22  ;;  %v5856_v20 = vmul.f32 %v10652_v31, %v5749_v4  ;;  %v6052_v34 = vsel %vm6014_vm4, %v6050_v58, %v6051_v35  ;;  %v5942_v46 = vunpack.c.l.bf16 %v7988_v18 }
 0x4a8   : > { %v6137_v48 = vadd.f32 %v6042_v41, %v5896_v40  ;;  %v5897_v38 = vadd.f32 %v10662_v45, %v5858_v14  ;;  %v6053_v21 = vrot.slane %v5941_v52, 1  ;;  %v5943_v42 = vunpack.c.l.bf16 %v7989_v57 }
 0x4a9   : > { %v6135_v56 = vadd.f32 %v6037_v29, %v5894_v59  ;;  %v5895_v10 = vadd.f32 %v10662_v45, %v5856_v20  ;;  %v7707_v44 = vpop.f32.mrb[12].mxu1  ;;  %v6047_v54 = vsel %vm6014_vm4, %v6045_v61, %v6046_v3  ;;  %v6048_v26 = vrot.slane %v5938_v5, 1 }
 0x4aa   : > { %6169 = vst [vmem:[%s10684_s21 + $0x50] sm:$0xff] %v6137_v48  ;;  %v6138_v24 = vadd.f32 %v6044_v60, %v5897_v38  ;;  %v5770_v41 = vadd.f32 %v7707_v44, %v10589_v51  ;;  %v5761_v12 = vpop.f32.mrb[13].mxu1  ;;  %v6060_v60 = vrot.slane %v5945_v55, 1  ;;  %v6061_v25 = vrot.slane %v5946_v13, 1 }
 0x4ab   : > { %6167 = vst [vmem:[%s10684_s21 + $0x40] sm:$0xff] %v6135_v56  ;;  %v6136_v33 = vadd.f32 %v6039_v1, %v5895_v10  ;;  %v5762_v29 = vadd.f32 %v5761_v12, %v10583_v11  ;;  %v7708_v16 = vpop.f32.mrb[14].mxu1  ;;  %v6055_v4 = vrot.slane %v5942_v46, 1  ;;  %v7990_v11 = vld [vmem:[%s8330_s23 + $0x80] sm:$0x1]  ;;  %v6056_v61 = vrot.slane %v5943_v42, 1 }
 0x4ac   : > { %6170 = vst [vmem:[%s10684_s21 + $0x58] sm:$0xff] %v6138_v24  ;;  %v5861_v9 = vmul.f32 %v10652_v31, %v5770_v41  ;;  %v5773_v51 = vadd.f32 %v7708_v16, %v10591_v6  ;;  %v5764_v8 = vpop.f32.mrb[15].mxu1  ;;  %v5947_v58 = vunpack.c.l.bf16 %v7990_v11  ;;  %v5944_v52 = vunpack.c.l.bf16 %v7991_v0  ;;  %v7992_v46 = vld [vmem:[%s8330_s23 + $0x90] sm:$0xf]  ;;  %v7993_v41 = vld [vmem:[%s8330_s23 + $0x94] sm:$0xf] }
 0x4ad   : > { %6168 = vst [vmem:[%s10684_s21 + $0x48] sm:$0xff] %v6136_v33  ;;  %v5859_v22 = vmul.f32 %v10652_v31, %v5762_v29  ;;  %v5765_v1 = vadd.f32 %v5764_v8, %v10585_v37  ;;  %v6054_v59 = vsel %vm6014_vm4, %v6051_v35, %v6053_v21  ;;  %v6049_v5 = vsel %vm6014_vm4, %v6046_v3, %v6048_v26  ;;  %v7994_v42 = vld [vmem:[%s8330_s23 + $0x84] sm:$0xf]  ;;  %v7995_v29 = vld [vmem:[%s8330_s23 + $0x88] sm:$0xf] }
 0x4ae   : > { %v5900_v40 = vadd.f32 %v10662_v45, %v5861_v9  ;;  %v5862_v14 = vmul.f32 %v10652_v31, %v5773_v51  ;;  %v6062_v55 = vsel %vm6014_vm4, %v6060_v60, %v6061_v25  ;;  %v6063_v15 = vrot.slane %v5947_v58, 1  ;;  %v7996_v26 = vld [vmem:[%s8330_s23 + $0x98] sm:$0x1]  ;;  %v7997_v51 = vld [vmem:[%s8330_s23 + $0x8c] sm:$0x1] }
 0x4af   : > { %v5898_v6 = vadd.f32 %v10662_v45, %v5859_v22  ;;  %v5860_v20 = vmul.f32 %v10652_v31, %v5765_v1  ;;  %v6057_v10 = vsel %vm6014_vm4, %v6055_v4, %v6056_v61  ;;  %v6058_v3 = vrot.slane %v5944_v52, 1 }
 0x4b0   : > { %v6141_v23 = vadd.f32 %v6052_v34, %v5900_v40  ;;  %v5901_v37 = vadd.f32 %v10662_v45, %v5862_v14  ;;  %v5951_v24 = vunpack.c.l.bf16 %v7992_v46  ;;  %v5952_v12 = vunpack.c.l.bf16 %v7993_v41  ;;  %v8001_v46 = vld [vmem:[%s8330_s23 + $0xa0] sm:$0xf] }
 0x4b1   : > { %v6139_v48 = vadd.f32 %v6047_v54, %v5898_v6  ;;  %v5899_v38 = vadd.f32 %v10662_v45, %v5860_v20  ;;  %v7711_v2 = vpop.f32.mrb[16].mxu1  ;;  %v5948_v33 = vunpack.c.l.bf16 %v7994_v42  ;;  %v5949_v54 = vunpack.c.l.bf16 %v7995_v29 }
 0x4b2   : > { %6173 = vst [vmem:[%s10684_s21 + $0x70] sm:$0xff] %v6141_v23  ;;  %v6142_v35 = vadd.f32 %v6054_v59, %v5901_v37  ;;  %v5786_v13 = vadd.f32 %v7711_v2, %v10601_v27  ;;  %v5777_v56 = vpop.f32.mrb[17].mxu1  ;;  %v5953_v9 = vunpack.c.l.bf16 %v7996_v26  ;;  %v5950_v8 = vunpack.c.l.bf16 %v7997_v51  ;;  %v7999_v2 = vld [vmem:[%s8330_s23 + $0xac] sm:$0xf]  ;;  %v8003_v51 = vld [vmem:[%s8330_s23 + $0xa4] sm:$0x1] }
 0x4b3   : > { %6171 = vst [vmem:[%s10684_s21 + $0x60] sm:$0xff] %v6139_v48  ;;  %v6140_v44 = vadd.f32 %v6049_v5, %v5899_v38  ;;  %v5778_v34 = vadd.f32 %v5777_v56, %v10595_v32  ;;  %v7712_v18 = vpop.f32.mrb[18].mxu1  ;;  %v6059_v1 = vsel %vm6014_vm4, %v6056_v61, %v6058_v3  ;;  %v6070_v58 = vrot.slane %v5951_v24, 1  ;;  %v7998_v48 = vld [vmem:[%s8330_s23 + $0xa8] sm:$0xf] }
 0x4b4   : > { %6174 = vst [vmem:[%s10684_s21 + $0x78] sm:$0xff] %v6142_v35  ;;  %v5865_v27 = vmul.f32 %v10652_v31, %v5786_v13  ;;  %v5789_v21 = vadd.f32 %v7712_v18, %v10603_v30  ;;  %v5780_v57 = vpop.f32.mrb[19].mxu1  ;;  %v6064_v30 = vsel %vm6014_vm4, %v6061_v25, %v6063_v15  ;;  %v6065_v0 = vrot.slane %v5948_v33, 1 }
 0x4b5   : > { %6172 = vst [vmem:[%s10684_s21 + $0x68] sm:$0xff] %v6140_v44  ;;  %v5863_v32 = vmul.f32 %v10652_v31, %v5778_v34  ;;  %v5781_v16 = vadd.f32 %v5780_v57, %v10597_v63  ;;  %v6071_v63 = vrot.slane %v5952_v12, 1  ;;  %v6066_v52 = vrot.slane %v5949_v54, 1 }
 0x4b6   : > { %v5904_v60 = vadd.f32 %v10662_v45, %v5865_v27  ;;  %v5866_v22 = vmul.f32 %v10652_v31, %v5789_v21  ;;  %v6073_v61 = vrot.slane %v5953_v9, 1  ;;  %v6068_v20 = vrot.slane %v5950_v8, 1 }
 0x4b7   : > { %v5902_v4 = vadd.f32 %v10662_v45, %v5863_v32  ;;  %v5864_v11 = vmul.f32 %v10652_v31, %v5781_v16  ;;  %v5957_v38 = vunpack.c.l.bf16 %v7998_v48  ;;  %v6072_v35 = vsel %vm6014_vm4, %v6070_v58, %v6071_v63  ;;  %v8002_v32 = vld [vmem:[%s8330_s23 + $0xb0] sm:$0x1] }
 0x4b8   : > { %v6145_v40 = vadd.f32 %v6062_v55, %v5904_v60  ;;  %v5905_v14 = vadd.f32 %v10662_v45, %v5866_v22  ;;  %v5958_v55 = vunpack.c.l.bf16 %v7999_v2  ;;  %v5955_v24 = vunpack.c.l.bf16 %v8001_v46  ;;  %v8006_v2 = vld [vmem:[%s8330_s23 + $0xb4] sm:$0xf] }
 0x4b9   : > { %v6143_v6 = vadd.f32 %v6057_v10, %v5902_v4  ;;  %v5903_v59 = vadd.f32 %v10662_v45, %v5864_v11  ;;  %v7715_v25 = vpop.f32.mrb[20].mxu1  ;;  %v8000_v10 = vld [vmem:[%s8330_s23 + $0x9c] sm:$0xf]  ;;  %v6069_v27 = vsel %vm6014_vm4, %v6066_v52, %v6068_v20  ;;  %v5959_v16 = vunpack.c.l.bf16 %v8002_v32 }
 0x4ba   : > { %6177 = vst [vmem:[%s10684_s21 + $0x90] sm:$0xff] %v6145_v40  ;;  %v6146_v23 = vadd.f32 %v6064_v30, %v5905_v14  ;;  %v5802_v37 = vadd.f32 %v7715_v25, %v10613_v39  ;;  %v5793_v5 = vpop.f32.mrb[21].mxu1  ;;  %v5954_v3 = vunpack.c.l.bf16 %v8000_v10  ;;  %v6067_v39 = vsel %vm6014_vm4, %v6065_v0, %v6066_v52 }
 0x4bb   : > { %6175 = vst [vmem:[%s10684_s21 + $0x80] sm:$0xff] %v6143_v6  ;;  %v6144_v15 = vadd.f32 %v6059_v1, %v5903_v59  ;;  %v5794_v13 = vadd.f32 %v5793_v5, %v10607_v53  ;;  %v7716_v56 = vpop.f32.mrb[22].mxu1  ;;  %v6074_v53 = vsel %vm6014_vm4, %v6071_v63, %v6073_v61  ;;  %v6081_v42 = vrot.slane %v5958_v55, 1 }
 0x4bc   : > { %6178 = vst [vmem:[%s10684_s21 + $0x98] sm:$0xff] %v6146_v23  ;;  %v5869_v44 = vmul.f32 %v10652_v31, %v5802_v37  ;;  %v5805_v34 = vadd.f32 %v7716_v56, %v10615_v43  ;;  %v5796_v18 = vpop.f32.mrb[23].mxu1  ;;  %v6080_v43 = vrot.slane %v5957_v38, 1  ;;  %v6075_v54 = vrot.slane %v5954_v3, 1  ;;  %v8005_v37 = vld [vmem:[%s8330_s23 + $0xc4] sm:$0xf] }
 0x4bd   : > { %6176 = vst [vmem:[%s10684_s21 + $0x88] sm:$0xff] %v6144_v15  ;;  %v5867_v41 = vmul.f32 %v10652_v31, %v5794_v13  ;;  %v5797_v12 = vadd.f32 %v5796_v18, %v10609_v28  ;;  %v6076_v9 = vrot.slane %v5955_v24, 1  ;;  %v5956_v8 = vunpack.c.l.bf16 %v8003_v51  ;;  %v8008_v56 = vld [vmem:[%s8330_s23 + $0xc8] sm:$0x1] }
 0x4be   : > { %v5908_v21 = vadd.f32 %v10662_v45, %v5869_v44  ;;  %v5870_v57 = vmul.f32 %v10652_v31, %v5805_v34  ;;  %v6082_v63 = vsel %vm6014_vm4, %v6080_v43, %v6081_v42  ;;  %v6083_v0 = vrot.slane %v5959_v16, 1  ;;  %v8009_v34 = vld [vmem:[%s8330_s23 + $0xbc] sm:$0x1] }
 0x4bf   : > { %v5906_v33 = vadd.f32 %v10662_v45, %v5867_v41  ;;  %v5868_v29 = vmul.f32 %v10652_v31, %v5797_v12  ;;  %v6077_v6 = vsel %vm6014_vm4, %v6075_v54, %v6076_v9  ;;  %v6078_v25 = vrot.slane %v5956_v8, 1 }
 0x4c0   : > { %v6149_v26 = vadd.f32 %v6072_v35, %v5908_v21  ;;  %v5909_v28 = vadd.f32 %v10662_v45, %v5870_v57  ;;  %v5964_v5 = vunpack.c.l.bf16 %v8005_v37  ;;  %v5960_v55 = vunpack.c.l.bf16 %v8006_v2 }
 0x4c1   : > { %v6147_v60 = vadd.f32 %v6067_v39, %v5906_v33  ;;  %v5907_v22 = vadd.f32 %v10662_v45, %v5868_v29  ;;  %v7719_v30 = vpop.f32.mrb[24].mxu1  ;;  %v6084_v13 = vsel %vm6014_vm4, %v6081_v42, %v6083_v0  ;;  %v5965_v10 = vunpack.c.l.bf16 %v8008_v56 }
 0x4c2   : > { %6181 = vst [vmem:[%s10684_s21 + $0xb0] sm:$0xff] %v6149_v26  ;;  %v6150_v1 = vadd.f32 %v6074_v53, %v5909_v28  ;;  %v5818_v4 = vadd.f32 %v7719_v30, %v10625_v62  ;;  %v5809_v11 = vpop.f32.mrb[25].mxu1  ;;  %v6079_v39 = vsel %vm6014_vm4, %v6076_v9, %v6078_v25  ;;  %v5962_v18 = vunpack.c.l.bf16 %v8009_v34 }
 0x4c3   : > { %6179 = vst [vmem:[%s10684_s21 + $0xa0] sm:$0xff] %v6147_v60  ;;  %v6148_v58 = vadd.f32 %v6069_v27, %v5907_v22  ;;  %v5810_v40 = vadd.f32 %v5809_v11, %v10619_v50  ;;  %v7720_v14 = vpop.f32.mrb[26].mxu1  ;;  %v8004_v50 = vld [vmem:[%s8330_s23 + $0xc0] sm:$0xf]  ;;  %v6091_v12 = vrot.slane %v5964_v5, 1  ;;  %v6085_v43 = vrot.slane %v5960_v55, 1 }
 0x4c4   : > { %6182 = vst [vmem:[%s10684_s21 + $0xb8] sm:$0xff] %v6150_v1  ;;  %v5873_v52 = vmul.f32 %v10652_v31, %v5818_v4  ;;  %v5821_v62 = vadd.f32 %v7720_v14, %v10627_v7  ;;  %v5812_v59 = vpop.f32.mrb[27].mxu1  ;;  %v5963_v23 = vunpack.c.l.bf16 %v8004_v50  ;;  %v8007_v7 = vld [vmem:[%s8330_s23 + $0xb8] sm:$0xf]  ;;  %v6093_v32 = vrot.slane %v5965_v10, 1  ;;  %s6684_s23 = sshll.u32 %s8173_s28, 12 }
 0x4c5   : > { %6180 = vst [vmem:[%s10684_s21 + $0xa8] sm:$0xff] %v6148_v58  ;;  %v5871_v61 = vmul.f32 %v10652_v31, %v5810_v40  ;;  %v5813_v20 = vadd.f32 %v5812_v59, %v10621_v49  ;;  %v5961_v15 = vunpack.c.l.bf16 %v8007_v7  ;;  %v6088_v9 = vrot.slane %v5962_v18, 1  ;;  %s10866_s13 = scalar_lea.hbm %s10923_s7, %s6684_s23  ;;  %s10875_s28 = scalar_lea.sflag [#allocation5], %s284_s8 }
 0x4c6   : > { %v5912_v48 = vadd.f32 %v10662_v45, %v5873_v52  ;;  %v5874_v38 = vmul.f32 %v10652_v31, %v5821_v62  ;;  %v6090_v53 = vrot.slane %v5963_v23, 1 }
 0x4c7   : > { %v5910_v35 = vadd.f32 %v10662_v45, %v5871_v61  ;;  %v5872_v49 = vmul.f32 %v10652_v31, %v5813_v20  ;;  %v6086_v42 = vrot.slane %v5961_v15, 1 }
 0x4c8   : > { %v6153_v3 = vadd.f32 %v6082_v63, %v5912_v48  ;;  %v5913_v44 = vadd.f32 %v10662_v45, %v5874_v38 }
 0x4c9   : > { %v6151_v46 = vadd.f32 %v6077_v6, %v5910_v35  ;;  %v5911_v24 = vadd.f32 %v10662_v45, %v5872_v49  ;;  %v7723_v41 = vpop.f32.mrb[28].mxu1  ;;  %v6087_v60 = vsel %vm6014_vm4, %v6085_v43, %v6086_v42  ;;  %v6089_v11 = vsel %vm6014_vm4, %v6086_v42, %v6088_v9 }
 0x4ca   : > { %6185 = vst [vmem:[%s10684_s21 + $0xd0] sm:$0xff] %v6153_v3  ;;  %v6154_v27 = vadd.f32 %v6084_v13, %v5913_v44  ;;  %v5834_v21 = vadd.f32 %v7723_v41, %v10645_v17  ;;  %v5825_v57 = vpop.f32.mrb[29].mxu1  ;;  %v6092_v17 = vsel %vm6014_vm4, %v6090_v53, %v6091_v12 }
 0x4cb   : > { %6183 = vst [vmem:[%s10684_s21 + $0xc0] sm:$0xff] %v6151_v46  ;;  %v6152_v33 = vadd.f32 %v6079_v39, %v5911_v24  ;;  %v5826_v29 = vadd.f32 %v5825_v57, %v10631_v36  ;;  %v7724_v54 = vpop.f32.mrb[30].mxu1 }
 0x4cc   : > { %6186 = vst [vmem:[%s10684_s21 + $0xd8] sm:$0xff] %v6154_v27  ;;  %v5877_v16 = vmul.f32 %v10652_v31, %v5834_v21  ;;  %v5837_v26 = vadd.f32 %v7724_v54, %v10656_v47  ;;  %v5828_v28 = vpop.f32.mrb[31].mxu1  ;;  %v6094_v47 = vsel %vm6014_vm4, %v6091_v12, %v6093_v32 }
 0x4cd   : > { %6184 = vst [vmem:[%s10684_s21 + $0xc8] sm:$0xff] %v6152_v33  ;;  %v5875_v51 = vmul.f32 %v10652_v31, %v5826_v29  ;;  %v5829_v8 = vadd.f32 %v5828_v28, %v10635_v19 }
 0x4ce   : > { %v5916_v36 = vadd.f32 %v10662_v45, %v5877_v16  ;;  %v5878_v22 = vmul.f32 %v10652_v31, %v5837_v26 }
 0x4cf   : > { %v5914_v30 = vadd.f32 %v10662_v45, %v5875_v51  ;;  %v5876_v1 = vmul.f32 %v10652_v31, %v5829_v8 }
 0x4d0   : > { %v6157_v4 = vadd.f32 %v6092_v17, %v5916_v36  ;;  %v5917_v19 = vadd.f32 %v10662_v45, %v5878_v22 }
 0x4d1   : > { %v6155_v58 = vadd.f32 %v6087_v60, %v5914_v30  ;;  %v5915_v63 = vadd.f32 %v10662_v45, %v5876_v1 }
 0x4d2   : > { %6189 = vst [vmem:[%s10684_s21 + $0xf0] sm:$0xff] %v6157_v4  ;;  %v6158_v40 = vadd.f32 %v6094_v47, %v5917_v19 }
 0x4d3   : > { %6187 = vst [vmem:[%s10684_s21 + $0xe0] sm:$0xff] %v6155_v58  ;;  %v6156_v31 = vadd.f32 %v6089_v11, %v5915_v63 }
 0x4d4   : > { %6190 = vst [vmem:[%s10684_s21 + $0xf8] sm:$0xff] %v6158_v40 }
 0x4d5   : > { %6188 = vst [vmem:[%s10684_s21 + $0xe8] sm:$0xff] %v6156_v31 }
 0x4d6   : > { %8051 = shalt.err (!%p8048_p7)
}
 0x4d7   : > { %s8052_s8 = scalar_lea.hbm %s10866_s13, 4096  ;;  %s8056_s19 = scalar_lea.hbm %s10923_s7, 8192 }
 0x4d8   : > { %p8053_p8 = scmp.ne.s32.totalorder %s10866_s13, %s8052_s8  ;;  %p8057_p1 = scmp.lt.u32.totalorder %s10866_s13, %s10923_s7 }
 0x4d9   : > { %p8058_p0 = scmp.lt.u32.totalorder %s8056_s19, %s8052_s8  ;;  %p8060_p6 = scmp.lt.u32.totalorder %s8052_s8, %s10866_s13 }
 0x4da   : > { %p8054_p11 = pnand %p8053_p8, %p11035_p9 }
 0x4db   : > { %p8059_p5 = por %p8058_p0, %p8057_p1 }
 0x4dc   : > { %p8055_p13 = pneg %p8054_p11 }
 0x4dd   : > { %p8061_p10 = por %p8060_p6, %p8059_p5 }
 0x4df   : > { %p8062_p12 = pnand %p8061_p10, %p8055_p13 }
 0x4e1   : > { %8065 = shalt.err (!%p8062_p12)
}
 0x4e2   : > { %s8110_s15 = smov 128   ;;  %s8111_s20 = smov 8  }
 0x4e3   : > { %7730 = dma.vmem_to_hbm [thread:$0]  (%p11035_p9), %s10868_s16, 4096, %s10866_s13, %s10875_s28, %s8110_s15, %s8110_s15, %s8111_s20  }
 0x4e4 PF: > { %p7742_p2 = scmp.ge.s32.totalorder %s8104_s27, 2  ;;  %s6220_s22 = sand.u32 1, %s8092_s24  }
 0x4e5   : > { %p11036_p3 = scmp.ne.s32.totalorder %s10969_s12, 0  ;;  %s6221_s29 = scalar_lea.sflag [#allocation5], %s6220_s22 }
 0x4e7   : > { %p7737_p4 = pnand %p7742_p2, %p11036_p3 }
 0x4e9   : > { %8087 = dma.done.wait (!%p7737_p4), %s6221_s29, 4096  }
 0x4ea   : > { %8089 = vsyncadd (!%p7737_p4), %s6221_s29, 4294963200  ;;  %p18_p7 = scmp.ge.s32.totalorder %s8177_s30, 4   ;;  %s11037_s24 = smov %s8096_s25 }
 0x4eb   : > { %s11038_s25 = smov %s8100_s26  ;;  %s11039_s26 = smov %s8188_s10 }
 0x4ec   : > { %s11040_s27 = smov %s8177_s30  ;;  %20 = sbr.rel (!%p18_p7) target bundleno = 4 (0x4), region = 90 }
 0x4f3   :  { %6226 = vsyncpa [#allocation4], 1 }
 0x4f4   :  { %6228 = vsyncpa [#allocation4 + $0x1], 1 }
 0x4f5   :  { %6229 = vsyncpa [#allocation5], 1 }
 0x4f6   :  { %6231 = vsyncpa [#allocation5 + $0x1], 1 }

</bundles_post_ra>
